<compile_context>
chip_gen: v7x
topology: tpu7x:2x2x1
jax: 0.10.0
libtpu: 0.0.40
codegen_flags: <defaults>
</compile_context>

<pallas_src>
import functools

import numpy as np
import jax
import jax.numpy as jnp
from jax.experimental import pallas as pl
from jax.experimental.pallas import tpu as pltpu


def _spatial_attn_kernel(wm_ref, x_ref, out_ref, *, kk, shifts):
    """One batch tile of SpatialAttention.

    wm_ref : (2*kk, HWp) f32   rows [0:kk)   = w_avg[tap] * valid_mask[tap]
                               rows [kk:2kk) = w_max[tap] * valid_mask[tap]
    x_ref  : (TB, C, HWp)      native-dtype input block (flattened spatial)
    out_ref: (TB, C, HWp)      gated output block
    """
    # Channel reduction with f32 accumulation; no full-block f32 copy of x is
    # kept live across the kernel.
    avg = jnp.mean(x_ref[...], axis=1, dtype=jnp.float32)        # (TB, HWp)
    mx = jnp.max(x_ref[...], axis=1).astype(jnp.float32)         # (TB, HWp)

    # k*k conv (2 in-channels -> 1 out-channel, zero padding) as
    # shift-and-accumulate in the flat lane-dense layout.  Shifts run on the
    # XLU via pltpu.roll; the border-validity mask is pre-multiplied into the
    # per-tap weight rows, so each tap is just two VPU multiply-adds.
    acc = jnp.zeros_like(avg)                                     # (TB, HWp)
    for t in range(kk):
        s = shifts[t]
        a_sh = pltpu.roll(avg, s, 1) if s else avg
        m_sh = pltpu.roll(mx, s, 1) if s else mx
        w_a = wm_ref[pl.ds(t, 1), :]                              # (1, HWp)
        w_m = wm_ref[pl.ds(kk + t, 1), :]                         # (1, HWp)
        acc = acc + w_a * a_sh + w_m * m_sh

    # Sigmoid gate, broadcast over channels, single lane-dense store.
    attn = jax.nn.sigmoid(acc)                                    # (TB, HWp)
    out_ref[...] = (attn[:, None, :] * x_ref[...]).astype(out_ref.dtype)


def _build_weight_masks(weight, kernel_size, pad, H, W, HWp):
    """Fold conv weights with per-tap border-validity masks.

    Returns:
      wm     : (2*k*k, HWp) f32 — rows [0:kk) for the channel-mean feature,
               rows [kk:2kk) for the channel-max feature.
      shifts : tuple of k*k static lane-roll amounts (one per tap).

    For output position i = y*W + x and tap offset (oy, ox) the source is
    i + oy*W + ox, which stays inside [0, H*W) exactly when the tap is valid;
    invalid (border) taps are zeroed by the mask, so a cyclic roll is safe.
    """
    k = kernel_size
    kk = k * k
    HW = H * W
    ys = np.arange(H)
    xs = np.arange(W)
    masks = np.zeros((kk, HWp), np.float32)
    shifts = []
    for dy in range(k):
        for dx in range(k):
            oy, ox = dy - pad, dx - pad
            valid = (((ys + oy) >= 0) & ((ys + oy) < H))[:, None] & \
                    (((xs + ox) >= 0) & ((xs + ox) < W))[None, :]
            masks[dy * k + dx, :HW] = valid.reshape(-1).astype(np.float32)
            shifts.append(int((-(oy * W + ox)) % HWp))
    w = jnp.asarray(weight, jnp.float32).reshape(2, kk)           # (2, kk)
    masks = jnp.asarray(masks)                                    # (kk, HWp)
    wm = jnp.concatenate([w[0][:, None] * masks,
                          w[1][:, None] * masks], axis=0)         # (2kk, HWp)
    return wm, tuple(shifts)


def _vmem_budget_bytes():
    """~75% of this chip's physical VMEM (96 MiB on v5e/v6e, 48 MiB on v7x)."""
    default_cap = 64 << 20
    try:
        cap = getattr(pltpu.get_tpu_info(), "vmem_capacity_bytes", default_cap)
    except Exception:
        cap = default_cap
    cap = max(int(cap), 32 << 20)
    return cap * 3 // 4


def _pick_batch_tile(N, C, HWp, kk, itemsize, budget_bytes,
                     max_tb=64, min_steps=4):
    """Largest batch tile TB (dividing N) whose footprint fits the budget.

    TB is capped so the grid keeps >= min_steps steps when N allows it (v7x
    megacore sharding + pipeline priming) and at max_tb to bound the
    statically unrolled tap loop.
    """
    cap = min(max_tb, max(1, N // min(min_steps, N)))
    best = 1
    for tb in range(1, cap + 1):
        if N % tb:
            continue
        io_block = tb * C * HWp * itemsize         # one x (or out) block
        foot = 2 * 2 * io_block                    # x + out, double-buffered
        foot += 2 * 2 * kk * HWp * 4               # weight*mask rows, double-buffered
        foot += tb * C * HWp * 4                   # f32 gating intermediate
        foot += 12 * tb * HWp * 4                  # avg/max/acc/rolled/attn temps
        if foot <= budget_bytes:
            best = tb
    return best


def spatial_attention(x, weight, *, kernel_size=7):
    """x: (N, C, H, W); weight: (1, 2, k, k) (nn.Conv2d(2, 1, k, bias=False))."""
    assert kernel_size in (3, 7), "kernel size must be 3 or 7"
    pad = 3 if kernel_size == 7 else 1
    N, C, H, W = x.shape
    HW = H * W
    HWp = ((HW + 127) // 128) * 128                # lane-dense I/O for any H, W
    kk = kernel_size * kernel_size

    wm, shifts = _build_weight_masks(weight, kernel_size, pad, H, W, HWp)

    budget = _vmem_budget_bytes()
    TB = _pick_batch_tile(N, C, HWp, kk, x.dtype.itemsize, budget)
    grid = (N // TB,)

    # Free reshape; pad the flat spatial axis only when HW % 128 != 0.
    x_flat = x.reshape(N, C, HW)
    if HWp != HW:
        x_flat = jnp.pad(x_flat, ((0, 0), (0, 0), (0, HWp - HW)))

    kernel = functools.partial(_spatial_attn_kernel, kk=kk, shifts=shifts)

    cost = pl.CostEstimate(
        flops=N * HWp * (3 * C + 4 * kk + 2),
        transcendentals=N * HWp,                                   # sigmoid
        bytes_accessed=2 * N * C * HWp * x.dtype.itemsize + 2 * kk * HWp * 4,
    )

    out_flat = pl.pallas_call(
        kernel,
        out_shape=jax.ShapeDtypeStruct((N, C, HWp), x.dtype),
        grid=grid,
        in_specs=[
            pl.BlockSpec((2 * kk, HWp), lambda n: (0, 0)),         # weight*mask
            pl.BlockSpec((TB, C, HWp), lambda n: (n, 0, 0)),       # input block
        ],
        out_specs=pl.BlockSpec((TB, C, HWp), lambda n: (n, 0, 0)),
        compiler_params=pltpu.CompilerParams(
            dimension_semantics=("parallel",),                     # megacore
            vmem_limit_bytes=budget),
        cost_estimate=cost,
    )(wm, x_flat)

    out = out_flat[..., :HW] if HWp != HW else out_flat
    return out.reshape(N, C, H, W)


def spatial_attention_ref(x, weight, *, kernel_size=7):
    """Pure-JAX reference matching the PyTorch forward."""
    pad = 3 if kernel_size == 7 else 1
    avg = jnp.mean(x, axis=1, keepdims=True)
    mx = jnp.max(x, axis=1, keepdims=True)
    feat = jnp.concatenate([avg, mx], axis=1)                      # (N, 2, H, W)
    conv = jax.lax.conv_general_dilated(
        feat, weight, window_strides=(1, 1),
        padding=[(pad, pad), (pad, pad)],
        dimension_numbers=("NCHW", "OIHW", "NCHW"))
    return jax.nn.sigmoid(conv) * x


if __name__ == "__main__":
    key = jax.random.PRNGKey(0)
    kx, kw = jax.random.split(key)

    N, C, H, W = 2, 4, 16, 16
    kernel_size = 7

    x = jax.random.normal(kx, (N, C, H, W), dtype=jnp.float32)
    # Deterministic synthetic conv1 weight (nn.Conv2d(2, 1, 7, bias=False)).
    weight = jax.random.normal(kw, (1, 2, kernel_size, kernel_size),
                               dtype=jnp.float32) * 0.1

    out = spatial_attention(x, weight, kernel_size=kernel_size)
    out = jax.block_until_ready(out)

    ref = spatial_attention_ref(x, weight, kernel_size=kernel_size)
    assert out.shape == (N, C, H, W)
    assert jnp.allclose(out, ref, atol=1e-5, rtol=1e-5), "mismatch vs reference"

    print("KERNEL_OK")
</pallas_src>

<mosaic_0001>
module attributes {stable_mosaic.version = 11 : i64} {
  func.func @_spatial_attn_kernel(%arg0: i32, %arg1: memref<98x256xf32, #tpu.memory_space<vmem>>, %arg2: memref<1x4x256xf32, #tpu.memory_space<vmem>>, %arg3: memref<1x4x256xf32, #tpu.memory_space<vmem>>) attributes {dimension_semantics = [#tpu.dimension_semantics<parallel>], iteration_bounds = array<i64: 2>, scalar_prefetch = 0 : i64, scratch_operands = 0 : i64, tpu.core_type = #tpu.core_type<tc>, window_params = [{pipeline_mode = #tpu.pipeline_mode<synchronous>, transform_indices = @transform_0, window_bounds = array<i64: 98, 256>}, {transform_indices = @transform_1, window_bounds = array<i64: 1, 4, 256>}, {transform_indices = @transform_2, window_bounds = array<i64: 1, 4, 256>}]} {
    %c0 = arith.constant 0 : index
    %c0_0 = arith.constant 0 : index
    %c0_1 = arith.constant 0 : index
    %0 = vector.load %arg2[%c0, %c0_0, %c0_1] : memref<1x4x256xf32, #tpu.memory_space<vmem>>, vector<1x4x256xf32>
    %cst = arith.constant dense<0.000000e+00> : vector<1x256xf32>
    %1 = vector.multi_reduction <add>, %0, %cst [1] : vector<1x4x256xf32> to vector<1x256xf32>
    %cst_2 = arith.constant 4.000000e+00 : f32
    %2 = vector.broadcast %cst_2 : f32 to vector<1x256xf32>
    %3 = arith.divf %1, %2 : vector<1x256xf32>
    %c0_3 = arith.constant 0 : index
    %c0_4 = arith.constant 0 : index
    %c0_5 = arith.constant 0 : index
    %4 = vector.load %arg2[%c0_3, %c0_4, %c0_5] : memref<1x4x256xf32, #tpu.memory_space<vmem>>, vector<1x4x256xf32>
    %cst_6 = arith.constant dense<0xFF800000> : vector<1x256xf32>
    %5 = vector.multi_reduction <maximumf>, %4, %cst_6 [1] : vector<1x4x256xf32> to vector<1x256xf32>
    %cst_7 = arith.constant 0.000000e+00 : f32
    %6 = vector.broadcast %cst_7 : f32 to vector<1x256xf32>
    %c51_i32 = arith.constant 51 : i32
    %7 = tpu.dynamic_rotate %3 by %c51_i32 dim 1 : vector<1x256xf32>, i32 -> vector<1x256xf32>
    %c51_i32_8 = arith.constant 51 : i32
    %8 = tpu.dynamic_rotate %5 by %c51_i32_8 dim 1 : vector<1x256xf32>, i32 -> vector<1x256xf32>
    %c0_9 = arith.constant 0 : index
    %c0_10 = arith.constant 0 : index
    %9 = vector.load %arg1[%c0_9, %c0_10] : memref<98x256xf32, #tpu.memory_space<vmem>>, vector<1x256xf32>
    %c49 = arith.constant 49 : index
    %c0_11 = arith.constant 0 : index
    %10 = vector.load %arg1[%c49, %c0_11] : memref<98x256xf32, #tpu.memory_space<vmem>>, vector<1x256xf32>
    %11 = arith.mulf %9, %7 : vector<1x256xf32>
    %12 = arith.addf %6, %11 : vector<1x256xf32>
    %13 = arith.mulf %10, %8 : vector<1x256xf32>
    %14 = arith.addf %12, %13 : vector<1x256xf32>
    %c50_i32 = arith.constant 50 : i32
    %15 = tpu.dynamic_rotate %3 by %c50_i32 dim 1 : vector<1x256xf32>, i32 -> vector<1x256xf32>
    %c50_i32_12 = arith.constant 50 : i32
    %16 = tpu.dynamic_rotate %5 by %c50_i32_12 dim 1 : vector<1x256xf32>, i32 -> vector<1x256xf32>
    %c1 = arith.constant 1 : index
    %c0_13 = arith.constant 0 : index
    %17 = vector.load %arg1[%c1, %c0_13] : memref<98x256xf32, #tpu.memory_space<vmem>>, vector<1x256xf32>
    %c50 = arith.constant 50 : index
    %c0_14 = arith.constant 0 : index
    %18 = vector.load %arg1[%c50, %c0_14] : memref<98x256xf32, #tpu.memory_space<vmem>>, vector<1x256xf32>
    %19 = arith.mulf %17, %15 : vector<1x256xf32>
    %20 = arith.addf %14, %19 : vector<1x256xf32>
    %21 = arith.mulf %18, %16 : vector<1x256xf32>
    %22 = arith.addf %20, %21 : vector<1x256xf32>
    %c49_i32 = arith.constant 49 : i32
    %23 = tpu.dynamic_rotate %3 by %c49_i32 dim 1 : vector<1x256xf32>, i32 -> vector<1x256xf32>
    %c49_i32_15 = arith.constant 49 : i32
    %24 = tpu.dynamic_rotate %5 by %c49_i32_15 dim 1 : vector<1x256xf32>, i32 -> vector<1x256xf32>
    %c2 = arith.constant 2 : index
    %c0_16 = arith.constant 0 : index
    %25 = vector.load %arg1[%c2, %c0_16] : memref<98x256xf32, #tpu.memory_space<vmem>>, vector<1x256xf32>
    %c51 = arith.constant 51 : index
    %c0_17 = arith.constant 0 : index
    %26 = vector.load %arg1[%c51, %c0_17] : memref<98x256xf32, #tpu.memory_space<vmem>>, vector<1x256xf32>
    %27 = arith.mulf %25, %23 : vector<1x256xf32>
    %28 = arith.addf %22, %27 : vector<1x256xf32>
    %29 = arith.mulf %26, %24 : vector<1x256xf32>
    %30 = arith.addf %28, %29 : vector<1x256xf32>
    %c48_i32 = arith.constant 48 : i32
    %31 = tpu.dynamic_rotate %3 by %c48_i32 dim 1 : vector<1x256xf32>, i32 -> vector<1x256xf32>
    %c48_i32_18 = arith.constant 48 : i32
    %32 = tpu.dynamic_rotate %5 by %c48_i32_18 dim 1 : vector<1x256xf32>, i32 -> vector<1x256xf32>
    %c3 = arith.constant 3 : index
    %c0_19 = arith.constant 0 : index
    %33 = vector.load %arg1[%c3, %c0_19] : memref<98x256xf32, #tpu.memory_space<vmem>>, vector<1x256xf32>
    %c52 = arith.constant 52 : index
    %c0_20 = arith.constant 0 : index
    %34 = vector.load %arg1[%c52, %c0_20] : memref<98x256xf32, #tpu.memory_space<vmem>>, vector<1x256xf32>
    %35 = arith.mulf %33, %31 : vector<1x256xf32>
    %36 = arith.addf %30, %35 : vector<1x256xf32>
    %37 = arith.mulf %34, %32 : vector<1x256xf32>
    %38 = arith.addf %36, %37 : vector<1x256xf32>
    %c47_i32 = arith.constant 47 : i32
    %39 = tpu.dynamic_rotate %3 by %c47_i32 dim 1 : vector<1x256xf32>, i32 -> vector<1x256xf32>
    %c47_i32_21 = arith.constant 47 : i32
    %40 = tpu.dynamic_rotate %5 by %c47_i32_21 dim 1 : vector<1x256xf32>, i32 -> vector<1x256xf32>
    %c4 = arith.constant 4 : index
    %c0_22 = arith.constant 0 : index
    %41 = vector.load %arg1[%c4, %c0_22] : memref<98x256xf32, #tpu.memory_space<vmem>>, vector<1x256xf32>
    %c53 = arith.constant 53 : index
    %c0_23 = arith.constant 0 : index
    %42 = vector.load %arg1[%c53, %c0_23] : memref<98x256xf32, #tpu.memory_space<vmem>>, vector<1x256xf32>
    %43 = arith.mulf %41, %39 : vector<1x256xf32>
    %44 = arith.addf %38, %43 : vector<1x256xf32>
    %45 = arith.mulf %42, %40 : vector<1x256xf32>
    %46 = arith.addf %44, %45 : vector<1x256xf32>
    %c46_i32 = arith.constant 46 : i32
    %47 = tpu.dynamic_rotate %3 by %c46_i32 dim 1 : vector<1x256xf32>, i32 -> vector<1x256xf32>
    %c46_i32_24 = arith.constant 46 : i32
    %48 = tpu.dynamic_rotate %5 by %c46_i32_24 dim 1 : vector<1x256xf32>, i32 -> vector<1x256xf32>
    %c5 = arith.constant 5 : index
    %c0_25 = arith.constant 0 : index
    %49 = vector.load %arg1[%c5, %c0_25] : memref<98x256xf32, #tpu.memory_space<vmem>>, vector<1x256xf32>
    %c54 = arith.constant 54 : index
    %c0_26 = arith.constant 0 : index
    %50 = vector.load %arg1[%c54, %c0_26] : memref<98x256xf32, #tpu.memory_space<vmem>>, vector<1x256xf32>
    %51 = arith.mulf %49, %47 : vector<1x256xf32>
    %52 = arith.addf %46, %51 : vector<1x256xf32>
    %53 = arith.mulf %50, %48 : vector<1x256xf32>
    %54 = arith.addf %52, %53 : vector<1x256xf32>
    %c45_i32 = arith.constant 45 : i32
    %55 = tpu.dynamic_rotate %3 by %c45_i32 dim 1 : vector<1x256xf32>, i32 -> vector<1x256xf32>
    %c45_i32_27 = arith.constant 45 : i32
    %56 = tpu.dynamic_rotate %5 by %c45_i32_27 dim 1 : vector<1x256xf32>, i32 -> vector<1x256xf32>
    %c6 = arith.constant 6 : index
    %c0_28 = arith.constant 0 : index
    %57 = vector.load %arg1[%c6, %c0_28] : memref<98x256xf32, #tpu.memory_space<vmem>>, vector<1x256xf32>
    %c55 = arith.constant 55 : index
    %c0_29 = arith.constant 0 : index
    %58 = vector.load %arg1[%c55, %c0_29] : memref<98x256xf32, #tpu.memory_space<vmem>>, vector<1x256xf32>
    %59 = arith.mulf %57, %55 : vector<1x256xf32>
    %60 = arith.addf %54, %59 : vector<1x256xf32>
    %61 = arith.mulf %58, %56 : vector<1x256xf32>
    %62 = arith.addf %60, %61 : vector<1x256xf32>
    %c35_i32 = arith.constant 35 : i32
    %63 = tpu.dynamic_rotate %3 by %c35_i32 dim 1 : vector<1x256xf32>, i32 -> vector<1x256xf32>
    %c35_i32_30 = arith.constant 35 : i32
    %64 = tpu.dynamic_rotate %5 by %c35_i32_30 dim 1 : vector<1x256xf32>, i32 -> vector<1x256xf32>
    %c7 = arith.constant 7 : index
    %c0_31 = arith.constant 0 : index
    %65 = vector.load %arg1[%c7, %c0_31] : memref<98x256xf32, #tpu.memory_space<vmem>>, vector<1x256xf32>
    %c56 = arith.constant 56 : index
    %c0_32 = arith.constant 0 : index
    %66 = vector.load %arg1[%c56, %c0_32] : memref<98x256xf32, #tpu.memory_space<vmem>>, vector<1x256xf32>
    %67 = arith.mulf %65, %63 : vector<1x256xf32>
    %68 = arith.addf %62, %67 : vector<1x256xf32>
    %69 = arith.mulf %66, %64 : vector<1x256xf32>
    %70 = arith.addf %68, %69 : vector<1x256xf32>
    %c34_i32 = arith.constant 34 : i32
    %71 = tpu.dynamic_rotate %3 by %c34_i32 dim 1 : vector<1x256xf32>, i32 -> vector<1x256xf32>
    %c34_i32_33 = arith.constant 34 : i32
    %72 = tpu.dynamic_rotate %5 by %c34_i32_33 dim 1 : vector<1x256xf32>, i32 -> vector<1x256xf32>
    %c8 = arith.constant 8 : index
    %c0_34 = arith.constant 0 : index
    %73 = vector.load %arg1[%c8, %c0_34] : memref<98x256xf32, #tpu.memory_space<vmem>>, vector<1x256xf32>
    %c57 = arith.constant 57 : index
    %c0_35 = arith.constant 0 : index
    %74 = vector.load %arg1[%c57, %c0_35] : memref<98x256xf32, #tpu.memory_space<vmem>>, vector<1x256xf32>
    %75 = arith.mulf %73, %71 : vector<1x256xf32>
    %76 = arith.addf %70, %75 : vector<1x256xf32>
    %77 = arith.mulf %74, %72 : vector<1x256xf32>
    %78 = arith.addf %76, %77 : vector<1x256xf32>
    %c33_i32 = arith.constant 33 : i32
    %79 = tpu.dynamic_rotate %3 by %c33_i32 dim 1 : vector<1x256xf32>, i32 -> vector<1x256xf32>
    %c33_i32_36 = arith.constant 33 : i32
    %80 = tpu.dynamic_rotate %5 by %c33_i32_36 dim 1 : vector<1x256xf32>, i32 -> vector<1x256xf32>
    %c9 = arith.constant 9 : index
    %c0_37 = arith.constant 0 : index
    %81 = vector.load %arg1[%c9, %c0_37] : memref<98x256xf32, #tpu.memory_space<vmem>>, vector<1x256xf32>
    %c58 = arith.constant 58 : index
    %c0_38 = arith.constant 0 : index
    %82 = vector.load %arg1[%c58, %c0_38] : memref<98x256xf32, #tpu.memory_space<vmem>>, vector<1x256xf32>
    %83 = arith.mulf %81, %79 : vector<1x256xf32>
    %84 = arith.addf %78, %83 : vector<1x256xf32>
    %85 = arith.mulf %82, %80 : vector<1x256xf32>
    %86 = arith.addf %84, %85 : vector<1x256xf32>
    %c32_i32 = arith.constant 32 : i32
    %87 = tpu.dynamic_rotate %3 by %c32_i32 dim 1 : vector<1x256xf32>, i32 -> vector<1x256xf32>
    %c32_i32_39 = arith.constant 32 : i32
    %88 = tpu.dynamic_rotate %5 by %c32_i32_39 dim 1 : vector<1x256xf32>, i32 -> vector<1x256xf32>
    %c10 = arith.constant 10 : index
    %c0_40 = arith.constant 0 : index
    %89 = vector.load %arg1[%c10, %c0_40] : memref<98x256xf32, #tpu.memory_space<vmem>>, vector<1x256xf32>
    %c59 = arith.constant 59 : index
    %c0_41 = arith.constant 0 : index
    %90 = vector.load %arg1[%c59, %c0_41] : memref<98x256xf32, #tpu.memory_space<vmem>>, vector<1x256xf32>
    %91 = arith.mulf %89, %87 : vector<1x256xf32>
    %92 = arith.addf %86, %91 : vector<1x256xf32>
    %93 = arith.mulf %90, %88 : vector<1x256xf32>
    %94 = arith.addf %92, %93 : vector<1x256xf32>
    %c31_i32 = arith.constant 31 : i32
    %95 = tpu.dynamic_rotate %3 by %c31_i32 dim 1 : vector<1x256xf32>, i32 -> vector<1x256xf32>
    %c31_i32_42 = arith.constant 31 : i32
    %96 = tpu.dynamic_rotate %5 by %c31_i32_42 dim 1 : vector<1x256xf32>, i32 -> vector<1x256xf32>
    %c11 = arith.constant 11 : index
    %c0_43 = arith.constant 0 : index
    %97 = vector.load %arg1[%c11, %c0_43] : memref<98x256xf32, #tpu.memory_space<vmem>>, vector<1x256xf32>
    %c60 = arith.constant 60 : index
    %c0_44 = arith.constant 0 : index
    %98 = vector.load %arg1[%c60, %c0_44] : memref<98x256xf32, #tpu.memory_space<vmem>>, vector<1x256xf32>
    %99 = arith.mulf %97, %95 : vector<1x256xf32>
    %100 = arith.addf %94, %99 : vector<1x256xf32>
    %101 = arith.mulf %98, %96 : vector<1x256xf32>
    %102 = arith.addf %100, %101 : vector<1x256xf32>
    %c30_i32 = arith.constant 30 : i32
    %103 = tpu.dynamic_rotate %3 by %c30_i32 dim 1 : vector<1x256xf32>, i32 -> vector<1x256xf32>
    %c30_i32_45 = arith.constant 30 : i32
    %104 = tpu.dynamic_rotate %5 by %c30_i32_45 dim 1 : vector<1x256xf32>, i32 -> vector<1x256xf32>
    %c12 = arith.constant 12 : index
    %c0_46 = arith.constant 0 : index
    %105 = vector.load %arg1[%c12, %c0_46] : memref<98x256xf32, #tpu.memory_space<vmem>>, vector<1x256xf32>
    %c61 = arith.constant 61 : index
    %c0_47 = arith.constant 0 : index
    %106 = vector.load %arg1[%c61, %c0_47] : memref<98x256xf32, #tpu.memory_space<vmem>>, vector<1x256xf32>
    %107 = arith.mulf %105, %103 : vector<1x256xf32>
    %108 = arith.addf %102, %107 : vector<1x256xf32>
    %109 = arith.mulf %106, %104 : vector<1x256xf32>
    %110 = arith.addf %108, %109 : vector<1x256xf32>
    %c29_i32 = arith.constant 29 : i32
    %111 = tpu.dynamic_rotate %3 by %c29_i32 dim 1 : vector<1x256xf32>, i32 -> vector<1x256xf32>
    %c29_i32_48 = arith.constant 29 : i32
    %112 = tpu.dynamic_rotate %5 by %c29_i32_48 dim 1 : vector<1x256xf32>, i32 -> vector<1x256xf32>
    %c13 = arith.constant 13 : index
    %c0_49 = arith.constant 0 : index
    %113 = vector.load %arg1[%c13, %c0_49] : memref<98x256xf32, #tpu.memory_space<vmem>>, vector<1x256xf32>
    %c62 = arith.constant 62 : index
    %c0_50 = arith.constant 0 : index
    %114 = vector.load %arg1[%c62, %c0_50] : memref<98x256xf32, #tpu.memory_space<vmem>>, vector<1x256xf32>
    %115 = arith.mulf %113, %111 : vector<1x256xf32>
    %116 = arith.addf %110, %115 : vector<1x256xf32>
    %117 = arith.mulf %114, %112 : vector<1x256xf32>
    %118 = arith.addf %116, %117 : vector<1x256xf32>
    %c19_i32 = arith.constant 19 : i32
    %119 = tpu.dynamic_rotate %3 by %c19_i32 dim 1 : vector<1x256xf32>, i32 -> vector<1x256xf32>
    %c19_i32_51 = arith.constant 19 : i32
    %120 = tpu.dynamic_rotate %5 by %c19_i32_51 dim 1 : vector<1x256xf32>, i32 -> vector<1x256xf32>
    %c14 = arith.constant 14 : index
    %c0_52 = arith.constant 0 : index
    %121 = vector.load %arg1[%c14, %c0_52] : memref<98x256xf32, #tpu.memory_space<vmem>>, vector<1x256xf32>
    %c63 = arith.constant 63 : index
    %c0_53 = arith.constant 0 : index
    %122 = vector.load %arg1[%c63, %c0_53] : memref<98x256xf32, #tpu.memory_space<vmem>>, vector<1x256xf32>
    %123 = arith.mulf %121, %119 : vector<1x256xf32>
    %124 = arith.addf %118, %123 : vector<1x256xf32>
    %125 = arith.mulf %122, %120 : vector<1x256xf32>
    %126 = arith.addf %124, %125 : vector<1x256xf32>
    %c18_i32 = arith.constant 18 : i32
    %127 = tpu.dynamic_rotate %3 by %c18_i32 dim 1 : vector<1x256xf32>, i32 -> vector<1x256xf32>
    %c18_i32_54 = arith.constant 18 : i32
    %128 = tpu.dynamic_rotate %5 by %c18_i32_54 dim 1 : vector<1x256xf32>, i32 -> vector<1x256xf32>
    %c15 = arith.constant 15 : index
    %c0_55 = arith.constant 0 : index
    %129 = vector.load %arg1[%c15, %c0_55] : memref<98x256xf32, #tpu.memory_space<vmem>>, vector<1x256xf32>
    %c64 = arith.constant 64 : index
    %c0_56 = arith.constant 0 : index
    %130 = vector.load %arg1[%c64, %c0_56] : memref<98x256xf32, #tpu.memory_space<vmem>>, vector<1x256xf32>
    %131 = arith.mulf %129, %127 : vector<1x256xf32>
    %132 = arith.addf %126, %131 : vector<1x256xf32>
    %133 = arith.mulf %130, %128 : vector<1x256xf32>
    %134 = arith.addf %132, %133 : vector<1x256xf32>
    %c17_i32 = arith.constant 17 : i32
    %135 = tpu.dynamic_rotate %3 by %c17_i32 dim 1 : vector<1x256xf32>, i32 -> vector<1x256xf32>
    %c17_i32_57 = arith.constant 17 : i32
    %136 = tpu.dynamic_rotate %5 by %c17_i32_57 dim 1 : vector<1x256xf32>, i32 -> vector<1x256xf32>
    %c16 = arith.constant 16 : index
    %c0_58 = arith.constant 0 : index
    %137 = vector.load %arg1[%c16, %c0_58] : memref<98x256xf32, #tpu.memory_space<vmem>>, vector<1x256xf32>
    %c65 = arith.constant 65 : index
    %c0_59 = arith.constant 0 : index
    %138 = vector.load %arg1[%c65, %c0_59] : memref<98x256xf32, #tpu.memory_space<vmem>>, vector<1x256xf32>
    %139 = arith.mulf %137, %135 : vector<1x256xf32>
    %140 = arith.addf %134, %139 : vector<1x256xf32>
    %141 = arith.mulf %138, %136 : vector<1x256xf32>
    %142 = arith.addf %140, %141 : vector<1x256xf32>
    %c16_i32 = arith.constant 16 : i32
    %143 = tpu.dynamic_rotate %3 by %c16_i32 dim 1 : vector<1x256xf32>, i32 -> vector<1x256xf32>
    %c16_i32_60 = arith.constant 16 : i32
    %144 = tpu.dynamic_rotate %5 by %c16_i32_60 dim 1 : vector<1x256xf32>, i32 -> vector<1x256xf32>
    %c17 = arith.constant 17 : index
    %c0_61 = arith.constant 0 : index
    %145 = vector.load %arg1[%c17, %c0_61] : memref<98x256xf32, #tpu.memory_space<vmem>>, vector<1x256xf32>
    %c66 = arith.constant 66 : index
    %c0_62 = arith.constant 0 : index
    %146 = vector.load %arg1[%c66, %c0_62] : memref<98x256xf32, #tpu.memory_space<vmem>>, vector<1x256xf32>
    %147 = arith.mulf %145, %143 : vector<1x256xf32>
    %148 = arith.addf %142, %147 : vector<1x256xf32>
    %149 = arith.mulf %146, %144 : vector<1x256xf32>
    %150 = arith.addf %148, %149 : vector<1x256xf32>
    %c15_i32 = arith.constant 15 : i32
    %151 = tpu.dynamic_rotate %3 by %c15_i32 dim 1 : vector<1x256xf32>, i32 -> vector<1x256xf32>
    %c15_i32_63 = arith.constant 15 : i32
    %152 = tpu.dynamic_rotate %5 by %c15_i32_63 dim 1 : vector<1x256xf32>, i32 -> vector<1x256xf32>
    %c18 = arith.constant 18 : index
    %c0_64 = arith.constant 0 : index
    %153 = vector.load %arg1[%c18, %c0_64] : memref<98x256xf32, #tpu.memory_space<vmem>>, vector<1x256xf32>
    %c67 = arith.constant 67 : index
    %c0_65 = arith.constant 0 : index
    %154 = vector.load %arg1[%c67, %c0_65] : memref<98x256xf32, #tpu.memory_space<vmem>>, vector<1x256xf32>
    %155 = arith.mulf %153, %151 : vector<1x256xf32>
    %156 = arith.addf %150, %155 : vector<1x256xf32>
    %157 = arith.mulf %154, %152 : vector<1x256xf32>
    %158 = arith.addf %156, %157 : vector<1x256xf32>
    %c14_i32 = arith.constant 14 : i32
    %159 = tpu.dynamic_rotate %3 by %c14_i32 dim 1 : vector<1x256xf32>, i32 -> vector<1x256xf32>
    %c14_i32_66 = arith.constant 14 : i32
    %160 = tpu.dynamic_rotate %5 by %c14_i32_66 dim 1 : vector<1x256xf32>, i32 -> vector<1x256xf32>
    %c19 = arith.constant 19 : index
    %c0_67 = arith.constant 0 : index
    %161 = vector.load %arg1[%c19, %c0_67] : memref<98x256xf32, #tpu.memory_space<vmem>>, vector<1x256xf32>
    %c68 = arith.constant 68 : index
    %c0_68 = arith.constant 0 : index
    %162 = vector.load %arg1[%c68, %c0_68] : memref<98x256xf32, #tpu.memory_space<vmem>>, vector<1x256xf32>
    %163 = arith.mulf %161, %159 : vector<1x256xf32>
    %164 = arith.addf %158, %163 : vector<1x256xf32>
    %165 = arith.mulf %162, %160 : vector<1x256xf32>
    %166 = arith.addf %164, %165 : vector<1x256xf32>
    %c13_i32 = arith.constant 13 : i32
    %167 = tpu.dynamic_rotate %3 by %c13_i32 dim 1 : vector<1x256xf32>, i32 -> vector<1x256xf32>
    %c13_i32_69 = arith.constant 13 : i32
    %168 = tpu.dynamic_rotate %5 by %c13_i32_69 dim 1 : vector<1x256xf32>, i32 -> vector<1x256xf32>
    %c20 = arith.constant 20 : index
    %c0_70 = arith.constant 0 : index
    %169 = vector.load %arg1[%c20, %c0_70] : memref<98x256xf32, #tpu.memory_space<vmem>>, vector<1x256xf32>
    %c69 = arith.constant 69 : index
    %c0_71 = arith.constant 0 : index
    %170 = vector.load %arg1[%c69, %c0_71] : memref<98x256xf32, #tpu.memory_space<vmem>>, vector<1x256xf32>
    %171 = arith.mulf %169, %167 : vector<1x256xf32>
    %172 = arith.addf %166, %171 : vector<1x256xf32>
    %173 = arith.mulf %170, %168 : vector<1x256xf32>
    %174 = arith.addf %172, %173 : vector<1x256xf32>
    %c3_i32 = arith.constant 3 : i32
    %175 = tpu.dynamic_rotate %3 by %c3_i32 dim 1 : vector<1x256xf32>, i32 -> vector<1x256xf32>
    %c3_i32_72 = arith.constant 3 : i32
    %176 = tpu.dynamic_rotate %5 by %c3_i32_72 dim 1 : vector<1x256xf32>, i32 -> vector<1x256xf32>
    %c21 = arith.constant 21 : index
    %c0_73 = arith.constant 0 : index
    %177 = vector.load %arg1[%c21, %c0_73] : memref<98x256xf32, #tpu.memory_space<vmem>>, vector<1x256xf32>
    %c70 = arith.constant 70 : index
    %c0_74 = arith.constant 0 : index
    %178 = vector.load %arg1[%c70, %c0_74] : memref<98x256xf32, #tpu.memory_space<vmem>>, vector<1x256xf32>
    %179 = arith.mulf %177, %175 : vector<1x256xf32>
    %180 = arith.addf %174, %179 : vector<1x256xf32>
    %181 = arith.mulf %178, %176 : vector<1x256xf32>
    %182 = arith.addf %180, %181 : vector<1x256xf32>
    %c2_i32 = arith.constant 2 : i32
    %183 = tpu.dynamic_rotate %3 by %c2_i32 dim 1 : vector<1x256xf32>, i32 -> vector<1x256xf32>
    %c2_i32_75 = arith.constant 2 : i32
    %184 = tpu.dynamic_rotate %5 by %c2_i32_75 dim 1 : vector<1x256xf32>, i32 -> vector<1x256xf32>
    %c22 = arith.constant 22 : index
    %c0_76 = arith.constant 0 : index
    %185 = vector.load %arg1[%c22, %c0_76] : memref<98x256xf32, #tpu.memory_space<vmem>>, vector<1x256xf32>
    %c71 = arith.constant 71 : index
    %c0_77 = arith.constant 0 : index
    %186 = vector.load %arg1[%c71, %c0_77] : memref<98x256xf32, #tpu.memory_space<vmem>>, vector<1x256xf32>
    %187 = arith.mulf %185, %183 : vector<1x256xf32>
    %188 = arith.addf %182, %187 : vector<1x256xf32>
    %189 = arith.mulf %186, %184 : vector<1x256xf32>
    %190 = arith.addf %188, %189 : vector<1x256xf32>
    %c1_i32 = arith.constant 1 : i32
    %191 = tpu.dynamic_rotate %3 by %c1_i32 dim 1 : vector<1x256xf32>, i32 -> vector<1x256xf32>
    %c1_i32_78 = arith.constant 1 : i32
    %192 = tpu.dynamic_rotate %5 by %c1_i32_78 dim 1 : vector<1x256xf32>, i32 -> vector<1x256xf32>
    %c23 = arith.constant 23 : index
    %c0_79 = arith.constant 0 : index
    %193 = vector.load %arg1[%c23, %c0_79] : memref<98x256xf32, #tpu.memory_space<vmem>>, vector<1x256xf32>
    %c72 = arith.constant 72 : index
    %c0_80 = arith.constant 0 : index
    %194 = vector.load %arg1[%c72, %c0_80] : memref<98x256xf32, #tpu.memory_space<vmem>>, vector<1x256xf32>
    %195 = arith.mulf %193, %191 : vector<1x256xf32>
    %196 = arith.addf %190, %195 : vector<1x256xf32>
    %197 = arith.mulf %194, %192 : vector<1x256xf32>
    %198 = arith.addf %196, %197 : vector<1x256xf32>
    %c24 = arith.constant 24 : index
    %c0_81 = arith.constant 0 : index
    %199 = vector.load %arg1[%c24, %c0_81] : memref<98x256xf32, #tpu.memory_space<vmem>>, vector<1x256xf32>
    %c73 = arith.constant 73 : index
    %c0_82 = arith.constant 0 : index
    %200 = vector.load %arg1[%c73, %c0_82] : memref<98x256xf32, #tpu.memory_space<vmem>>, vector<1x256xf32>
    %201 = arith.mulf %199, %3 : vector<1x256xf32>
    %202 = arith.addf %198, %201 : vector<1x256xf32>
    %203 = arith.mulf %200, %5 : vector<1x256xf32>
    %204 = arith.addf %202, %203 : vector<1x256xf32>
    %c255_i32 = arith.constant 255 : i32
    %205 = tpu.dynamic_rotate %3 by %c255_i32 dim 1 : vector<1x256xf32>, i32 -> vector<1x256xf32>
    %c255_i32_83 = arith.constant 255 : i32
    %206 = tpu.dynamic_rotate %5 by %c255_i32_83 dim 1 : vector<1x256xf32>, i32 -> vector<1x256xf32>
    %c25 = arith.constant 25 : index
    %c0_84 = arith.constant 0 : index
    %207 = vector.load %arg1[%c25, %c0_84] : memref<98x256xf32, #tpu.memory_space<vmem>>, vector<1x256xf32>
    %c74 = arith.constant 74 : index
    %c0_85 = arith.constant 0 : index
    %208 = vector.load %arg1[%c74, %c0_85] : memref<98x256xf32, #tpu.memory_space<vmem>>, vector<1x256xf32>
    %209 = arith.mulf %207, %205 : vector<1x256xf32>
    %210 = arith.addf %204, %209 : vector<1x256xf32>
    %211 = arith.mulf %208, %206 : vector<1x256xf32>
    %212 = arith.addf %210, %211 : vector<1x256xf32>
    %c254_i32 = arith.constant 254 : i32
    %213 = tpu.dynamic_rotate %3 by %c254_i32 dim 1 : vector<1x256xf32>, i32 -> vector<1x256xf32>
    %c254_i32_86 = arith.constant 254 : i32
    %214 = tpu.dynamic_rotate %5 by %c254_i32_86 dim 1 : vector<1x256xf32>, i32 -> vector<1x256xf32>
    %c26 = arith.constant 26 : index
    %c0_87 = arith.constant 0 : index
    %215 = vector.load %arg1[%c26, %c0_87] : memref<98x256xf32, #tpu.memory_space<vmem>>, vector<1x256xf32>
    %c75 = arith.constant 75 : index
    %c0_88 = arith.constant 0 : index
    %216 = vector.load %arg1[%c75, %c0_88] : memref<98x256xf32, #tpu.memory_space<vmem>>, vector<1x256xf32>
    %217 = arith.mulf %215, %213 : vector<1x256xf32>
    %218 = arith.addf %212, %217 : vector<1x256xf32>
    %219 = arith.mulf %216, %214 : vector<1x256xf32>
    %220 = arith.addf %218, %219 : vector<1x256xf32>
    %c253_i32 = arith.constant 253 : i32
    %221 = tpu.dynamic_rotate %3 by %c253_i32 dim 1 : vector<1x256xf32>, i32 -> vector<1x256xf32>
    %c253_i32_89 = arith.constant 253 : i32
    %222 = tpu.dynamic_rotate %5 by %c253_i32_89 dim 1 : vector<1x256xf32>, i32 -> vector<1x256xf32>
    %c27 = arith.constant 27 : index
    %c0_90 = arith.constant 0 : index
    %223 = vector.load %arg1[%c27, %c0_90] : memref<98x256xf32, #tpu.memory_space<vmem>>, vector<1x256xf32>
    %c76 = arith.constant 76 : index
    %c0_91 = arith.constant 0 : index
    %224 = vector.load %arg1[%c76, %c0_91] : memref<98x256xf32, #tpu.memory_space<vmem>>, vector<1x256xf32>
    %225 = arith.mulf %223, %221 : vector<1x256xf32>
    %226 = arith.addf %220, %225 : vector<1x256xf32>
    %227 = arith.mulf %224, %222 : vector<1x256xf32>
    %228 = arith.addf %226, %227 : vector<1x256xf32>
    %c243_i32 = arith.constant 243 : i32
    %229 = tpu.dynamic_rotate %3 by %c243_i32 dim 1 : vector<1x256xf32>, i32 -> vector<1x256xf32>
    %c243_i32_92 = arith.constant 243 : i32
    %230 = tpu.dynamic_rotate %5 by %c243_i32_92 dim 1 : vector<1x256xf32>, i32 -> vector<1x256xf32>
    %c28 = arith.constant 28 : index
    %c0_93 = arith.constant 0 : index
    %231 = vector.load %arg1[%c28, %c0_93] : memref<98x256xf32, #tpu.memory_space<vmem>>, vector<1x256xf32>
    %c77 = arith.constant 77 : index
    %c0_94 = arith.constant 0 : index
    %232 = vector.load %arg1[%c77, %c0_94] : memref<98x256xf32, #tpu.memory_space<vmem>>, vector<1x256xf32>
    %233 = arith.mulf %231, %229 : vector<1x256xf32>
    %234 = arith.addf %228, %233 : vector<1x256xf32>
    %235 = arith.mulf %232, %230 : vector<1x256xf32>
    %236 = arith.addf %234, %235 : vector<1x256xf32>
    %c242_i32 = arith.constant 242 : i32
    %237 = tpu.dynamic_rotate %3 by %c242_i32 dim 1 : vector<1x256xf32>, i32 -> vector<1x256xf32>
    %c242_i32_95 = arith.constant 242 : i32
    %238 = tpu.dynamic_rotate %5 by %c242_i32_95 dim 1 : vector<1x256xf32>, i32 -> vector<1x256xf32>
    %c29 = arith.constant 29 : index
    %c0_96 = arith.constant 0 : index
    %239 = vector.load %arg1[%c29, %c0_96] : memref<98x256xf32, #tpu.memory_space<vmem>>, vector<1x256xf32>
    %c78 = arith.constant 78 : index
    %c0_97 = arith.constant 0 : index
    %240 = vector.load %arg1[%c78, %c0_97] : memref<98x256xf32, #tpu.memory_space<vmem>>, vector<1x256xf32>
    %241 = arith.mulf %239, %237 : vector<1x256xf32>
    %242 = arith.addf %236, %241 : vector<1x256xf32>
    %243 = arith.mulf %240, %238 : vector<1x256xf32>
    %244 = arith.addf %242, %243 : vector<1x256xf32>
    %c241_i32 = arith.constant 241 : i32
    %245 = tpu.dynamic_rotate %3 by %c241_i32 dim 1 : vector<1x256xf32>, i32 -> vector<1x256xf32>
    %c241_i32_98 = arith.constant 241 : i32
    %246 = tpu.dynamic_rotate %5 by %c241_i32_98 dim 1 : vector<1x256xf32>, i32 -> vector<1x256xf32>
    %c30 = arith.constant 30 : index
    %c0_99 = arith.constant 0 : index
    %247 = vector.load %arg1[%c30, %c0_99] : memref<98x256xf32, #tpu.memory_space<vmem>>, vector<1x256xf32>
    %c79 = arith.constant 79 : index
    %c0_100 = arith.constant 0 : index
    %248 = vector.load %arg1[%c79, %c0_100] : memref<98x256xf32, #tpu.memory_space<vmem>>, vector<1x256xf32>
    %249 = arith.mulf %247, %245 : vector<1x256xf32>
    %250 = arith.addf %244, %249 : vector<1x256xf32>
    %251 = arith.mulf %248, %246 : vector<1x256xf32>
    %252 = arith.addf %250, %251 : vector<1x256xf32>
    %c240_i32 = arith.constant 240 : i32
    %253 = tpu.dynamic_rotate %3 by %c240_i32 dim 1 : vector<1x256xf32>, i32 -> vector<1x256xf32>
    %c240_i32_101 = arith.constant 240 : i32
    %254 = tpu.dynamic_rotate %5 by %c240_i32_101 dim 1 : vector<1x256xf32>, i32 -> vector<1x256xf32>
    %c31 = arith.constant 31 : index
    %c0_102 = arith.constant 0 : index
    %255 = vector.load %arg1[%c31, %c0_102] : memref<98x256xf32, #tpu.memory_space<vmem>>, vector<1x256xf32>
    %c80 = arith.constant 80 : index
    %c0_103 = arith.constant 0 : index
    %256 = vector.load %arg1[%c80, %c0_103] : memref<98x256xf32, #tpu.memory_space<vmem>>, vector<1x256xf32>
    %257 = arith.mulf %255, %253 : vector<1x256xf32>
    %258 = arith.addf %252, %257 : vector<1x256xf32>
    %259 = arith.mulf %256, %254 : vector<1x256xf32>
    %260 = arith.addf %258, %259 : vector<1x256xf32>
    %c239_i32 = arith.constant 239 : i32
    %261 = tpu.dynamic_rotate %3 by %c239_i32 dim 1 : vector<1x256xf32>, i32 -> vector<1x256xf32>
    %c239_i32_104 = arith.constant 239 : i32
    %262 = tpu.dynamic_rotate %5 by %c239_i32_104 dim 1 : vector<1x256xf32>, i32 -> vector<1x256xf32>
    %c32 = arith.constant 32 : index
    %c0_105 = arith.constant 0 : index
    %263 = vector.load %arg1[%c32, %c0_105] : memref<98x256xf32, #tpu.memory_space<vmem>>, vector<1x256xf32>
    %c81 = arith.constant 81 : index
    %c0_106 = arith.constant 0 : index
    %264 = vector.load %arg1[%c81, %c0_106] : memref<98x256xf32, #tpu.memory_space<vmem>>, vector<1x256xf32>
    %265 = arith.mulf %263, %261 : vector<1x256xf32>
    %266 = arith.addf %260, %265 : vector<1x256xf32>
    %267 = arith.mulf %264, %262 : vector<1x256xf32>
    %268 = arith.addf %266, %267 : vector<1x256xf32>
    %c238_i32 = arith.constant 238 : i32
    %269 = tpu.dynamic_rotate %3 by %c238_i32 dim 1 : vector<1x256xf32>, i32 -> vector<1x256xf32>
    %c238_i32_107 = arith.constant 238 : i32
    %270 = tpu.dynamic_rotate %5 by %c238_i32_107 dim 1 : vector<1x256xf32>, i32 -> vector<1x256xf32>
    %c33 = arith.constant 33 : index
    %c0_108 = arith.constant 0 : index
    %271 = vector.load %arg1[%c33, %c0_108] : memref<98x256xf32, #tpu.memory_space<vmem>>, vector<1x256xf32>
    %c82 = arith.constant 82 : index
    %c0_109 = arith.constant 0 : index
    %272 = vector.load %arg1[%c82, %c0_109] : memref<98x256xf32, #tpu.memory_space<vmem>>, vector<1x256xf32>
    %273 = arith.mulf %271, %269 : vector<1x256xf32>
    %274 = arith.addf %268, %273 : vector<1x256xf32>
    %275 = arith.mulf %272, %270 : vector<1x256xf32>
    %276 = arith.addf %274, %275 : vector<1x256xf32>
    %c237_i32 = arith.constant 237 : i32
    %277 = tpu.dynamic_rotate %3 by %c237_i32 dim 1 : vector<1x256xf32>, i32 -> vector<1x256xf32>
    %c237_i32_110 = arith.constant 237 : i32
    %278 = tpu.dynamic_rotate %5 by %c237_i32_110 dim 1 : vector<1x256xf32>, i32 -> vector<1x256xf32>
    %c34 = arith.constant 34 : index
    %c0_111 = arith.constant 0 : index
    %279 = vector.load %arg1[%c34, %c0_111] : memref<98x256xf32, #tpu.memory_space<vmem>>, vector<1x256xf32>
    %c83 = arith.constant 83 : index
    %c0_112 = arith.constant 0 : index
    %280 = vector.load %arg1[%c83, %c0_112] : memref<98x256xf32, #tpu.memory_space<vmem>>, vector<1x256xf32>
    %281 = arith.mulf %279, %277 : vector<1x256xf32>
    %282 = arith.addf %276, %281 : vector<1x256xf32>
    %283 = arith.mulf %280, %278 : vector<1x256xf32>
    %284 = arith.addf %282, %283 : vector<1x256xf32>
    %c227_i32 = arith.constant 227 : i32
    %285 = tpu.dynamic_rotate %3 by %c227_i32 dim 1 : vector<1x256xf32>, i32 -> vector<1x256xf32>
    %c227_i32_113 = arith.constant 227 : i32
    %286 = tpu.dynamic_rotate %5 by %c227_i32_113 dim 1 : vector<1x256xf32>, i32 -> vector<1x256xf32>
    %c35 = arith.constant 35 : index
    %c0_114 = arith.constant 0 : index
    %287 = vector.load %arg1[%c35, %c0_114] : memref<98x256xf32, #tpu.memory_space<vmem>>, vector<1x256xf32>
    %c84 = arith.constant 84 : index
    %c0_115 = arith.constant 0 : index
    %288 = vector.load %arg1[%c84, %c0_115] : memref<98x256xf32, #tpu.memory_space<vmem>>, vector<1x256xf32>
    %289 = arith.mulf %287, %285 : vector<1x256xf32>
    %290 = arith.addf %284, %289 : vector<1x256xf32>
    %291 = arith.mulf %288, %286 : vector<1x256xf32>
    %292 = arith.addf %290, %291 : vector<1x256xf32>
    %c226_i32 = arith.constant 226 : i32
    %293 = tpu.dynamic_rotate %3 by %c226_i32 dim 1 : vector<1x256xf32>, i32 -> vector<1x256xf32>
    %c226_i32_116 = arith.constant 226 : i32
    %294 = tpu.dynamic_rotate %5 by %c226_i32_116 dim 1 : vector<1x256xf32>, i32 -> vector<1x256xf32>
    %c36 = arith.constant 36 : index
    %c0_117 = arith.constant 0 : index
    %295 = vector.load %arg1[%c36, %c0_117] : memref<98x256xf32, #tpu.memory_space<vmem>>, vector<1x256xf32>
    %c85 = arith.constant 85 : index
    %c0_118 = arith.constant 0 : index
    %296 = vector.load %arg1[%c85, %c0_118] : memref<98x256xf32, #tpu.memory_space<vmem>>, vector<1x256xf32>
    %297 = arith.mulf %295, %293 : vector<1x256xf32>
    %298 = arith.addf %292, %297 : vector<1x256xf32>
    %299 = arith.mulf %296, %294 : vector<1x256xf32>
    %300 = arith.addf %298, %299 : vector<1x256xf32>
    %c225_i32 = arith.constant 225 : i32
    %301 = tpu.dynamic_rotate %3 by %c225_i32 dim 1 : vector<1x256xf32>, i32 -> vector<1x256xf32>
    %c225_i32_119 = arith.constant 225 : i32
    %302 = tpu.dynamic_rotate %5 by %c225_i32_119 dim 1 : vector<1x256xf32>, i32 -> vector<1x256xf32>
    %c37 = arith.constant 37 : index
    %c0_120 = arith.constant 0 : index
    %303 = vector.load %arg1[%c37, %c0_120] : memref<98x256xf32, #tpu.memory_space<vmem>>, vector<1x256xf32>
    %c86 = arith.constant 86 : index
    %c0_121 = arith.constant 0 : index
    %304 = vector.load %arg1[%c86, %c0_121] : memref<98x256xf32, #tpu.memory_space<vmem>>, vector<1x256xf32>
    %305 = arith.mulf %303, %301 : vector<1x256xf32>
    %306 = arith.addf %300, %305 : vector<1x256xf32>
    %307 = arith.mulf %304, %302 : vector<1x256xf32>
    %308 = arith.addf %306, %307 : vector<1x256xf32>
    %c224_i32 = arith.constant 224 : i32
    %309 = tpu.dynamic_rotate %3 by %c224_i32 dim 1 : vector<1x256xf32>, i32 -> vector<1x256xf32>
    %c224_i32_122 = arith.constant 224 : i32
    %310 = tpu.dynamic_rotate %5 by %c224_i32_122 dim 1 : vector<1x256xf32>, i32 -> vector<1x256xf32>
    %c38 = arith.constant 38 : index
    %c0_123 = arith.constant 0 : index
    %311 = vector.load %arg1[%c38, %c0_123] : memref<98x256xf32, #tpu.memory_space<vmem>>, vector<1x256xf32>
    %c87 = arith.constant 87 : index
    %c0_124 = arith.constant 0 : index
    %312 = vector.load %arg1[%c87, %c0_124] : memref<98x256xf32, #tpu.memory_space<vmem>>, vector<1x256xf32>
    %313 = arith.mulf %311, %309 : vector<1x256xf32>
    %314 = arith.addf %308, %313 : vector<1x256xf32>
    %315 = arith.mulf %312, %310 : vector<1x256xf32>
    %316 = arith.addf %314, %315 : vector<1x256xf32>
    %c223_i32 = arith.constant 223 : i32
    %317 = tpu.dynamic_rotate %3 by %c223_i32 dim 1 : vector<1x256xf32>, i32 -> vector<1x256xf32>
    %c223_i32_125 = arith.constant 223 : i32
    %318 = tpu.dynamic_rotate %5 by %c223_i32_125 dim 1 : vector<1x256xf32>, i32 -> vector<1x256xf32>
    %c39 = arith.constant 39 : index
    %c0_126 = arith.constant 0 : index
    %319 = vector.load %arg1[%c39, %c0_126] : memref<98x256xf32, #tpu.memory_space<vmem>>, vector<1x256xf32>
    %c88 = arith.constant 88 : index
    %c0_127 = arith.constant 0 : index
    %320 = vector.load %arg1[%c88, %c0_127] : memref<98x256xf32, #tpu.memory_space<vmem>>, vector<1x256xf32>
    %321 = arith.mulf %319, %317 : vector<1x256xf32>
    %322 = arith.addf %316, %321 : vector<1x256xf32>
    %323 = arith.mulf %320, %318 : vector<1x256xf32>
    %324 = arith.addf %322, %323 : vector<1x256xf32>
    %c222_i32 = arith.constant 222 : i32
    %325 = tpu.dynamic_rotate %3 by %c222_i32 dim 1 : vector<1x256xf32>, i32 -> vector<1x256xf32>
    %c222_i32_128 = arith.constant 222 : i32
    %326 = tpu.dynamic_rotate %5 by %c222_i32_128 dim 1 : vector<1x256xf32>, i32 -> vector<1x256xf32>
    %c40 = arith.constant 40 : index
    %c0_129 = arith.constant 0 : index
    %327 = vector.load %arg1[%c40, %c0_129] : memref<98x256xf32, #tpu.memory_space<vmem>>, vector<1x256xf32>
    %c89 = arith.constant 89 : index
    %c0_130 = arith.constant 0 : index
    %328 = vector.load %arg1[%c89, %c0_130] : memref<98x256xf32, #tpu.memory_space<vmem>>, vector<1x256xf32>
    %329 = arith.mulf %327, %325 : vector<1x256xf32>
    %330 = arith.addf %324, %329 : vector<1x256xf32>
    %331 = arith.mulf %328, %326 : vector<1x256xf32>
    %332 = arith.addf %330, %331 : vector<1x256xf32>
    %c221_i32 = arith.constant 221 : i32
    %333 = tpu.dynamic_rotate %3 by %c221_i32 dim 1 : vector<1x256xf32>, i32 -> vector<1x256xf32>
    %c221_i32_131 = arith.constant 221 : i32
    %334 = tpu.dynamic_rotate %5 by %c221_i32_131 dim 1 : vector<1x256xf32>, i32 -> vector<1x256xf32>
    %c41 = arith.constant 41 : index
    %c0_132 = arith.constant 0 : index
    %335 = vector.load %arg1[%c41, %c0_132] : memref<98x256xf32, #tpu.memory_space<vmem>>, vector<1x256xf32>
    %c90 = arith.constant 90 : index
    %c0_133 = arith.constant 0 : index
    %336 = vector.load %arg1[%c90, %c0_133] : memref<98x256xf32, #tpu.memory_space<vmem>>, vector<1x256xf32>
    %337 = arith.mulf %335, %333 : vector<1x256xf32>
    %338 = arith.addf %332, %337 : vector<1x256xf32>
    %339 = arith.mulf %336, %334 : vector<1x256xf32>
    %340 = arith.addf %338, %339 : vector<1x256xf32>
    %c211_i32 = arith.constant 211 : i32
    %341 = tpu.dynamic_rotate %3 by %c211_i32 dim 1 : vector<1x256xf32>, i32 -> vector<1x256xf32>
    %c211_i32_134 = arith.constant 211 : i32
    %342 = tpu.dynamic_rotate %5 by %c211_i32_134 dim 1 : vector<1x256xf32>, i32 -> vector<1x256xf32>
    %c42 = arith.constant 42 : index
    %c0_135 = arith.constant 0 : index
    %343 = vector.load %arg1[%c42, %c0_135] : memref<98x256xf32, #tpu.memory_space<vmem>>, vector<1x256xf32>
    %c91 = arith.constant 91 : index
    %c0_136 = arith.constant 0 : index
    %344 = vector.load %arg1[%c91, %c0_136] : memref<98x256xf32, #tpu.memory_space<vmem>>, vector<1x256xf32>
    %345 = arith.mulf %343, %341 : vector<1x256xf32>
    %346 = arith.addf %340, %345 : vector<1x256xf32>
    %347 = arith.mulf %344, %342 : vector<1x256xf32>
    %348 = arith.addf %346, %347 : vector<1x256xf32>
    %c210_i32 = arith.constant 210 : i32
    %349 = tpu.dynamic_rotate %3 by %c210_i32 dim 1 : vector<1x256xf32>, i32 -> vector<1x256xf32>
    %c210_i32_137 = arith.constant 210 : i32
    %350 = tpu.dynamic_rotate %5 by %c210_i32_137 dim 1 : vector<1x256xf32>, i32 -> vector<1x256xf32>
    %c43 = arith.constant 43 : index
    %c0_138 = arith.constant 0 : index
    %351 = vector.load %arg1[%c43, %c0_138] : memref<98x256xf32, #tpu.memory_space<vmem>>, vector<1x256xf32>
    %c92 = arith.constant 92 : index
    %c0_139 = arith.constant 0 : index
    %352 = vector.load %arg1[%c92, %c0_139] : memref<98x256xf32, #tpu.memory_space<vmem>>, vector<1x256xf32>
    %353 = arith.mulf %351, %349 : vector<1x256xf32>
    %354 = arith.addf %348, %353 : vector<1x256xf32>
    %355 = arith.mulf %352, %350 : vector<1x256xf32>
    %356 = arith.addf %354, %355 : vector<1x256xf32>
    %c209_i32 = arith.constant 209 : i32
    %357 = tpu.dynamic_rotate %3 by %c209_i32 dim 1 : vector<1x256xf32>, i32 -> vector<1x256xf32>
    %c209_i32_140 = arith.constant 209 : i32
    %358 = tpu.dynamic_rotate %5 by %c209_i32_140 dim 1 : vector<1x256xf32>, i32 -> vector<1x256xf32>
    %c44 = arith.constant 44 : index
    %c0_141 = arith.constant 0 : index
    %359 = vector.load %arg1[%c44, %c0_141] : memref<98x256xf32, #tpu.memory_space<vmem>>, vector<1x256xf32>
    %c93 = arith.constant 93 : index
    %c0_142 = arith.constant 0 : index
    %360 = vector.load %arg1[%c93, %c0_142] : memref<98x256xf32, #tpu.memory_space<vmem>>, vector<1x256xf32>
    %361 = arith.mulf %359, %357 : vector<1x256xf32>
    %362 = arith.addf %356, %361 : vector<1x256xf32>
    %363 = arith.mulf %360, %358 : vector<1x256xf32>
    %364 = arith.addf %362, %363 : vector<1x256xf32>
    %c208_i32 = arith.constant 208 : i32
    %365 = tpu.dynamic_rotate %3 by %c208_i32 dim 1 : vector<1x256xf32>, i32 -> vector<1x256xf32>
    %c208_i32_143 = arith.constant 208 : i32
    %366 = tpu.dynamic_rotate %5 by %c208_i32_143 dim 1 : vector<1x256xf32>, i32 -> vector<1x256xf32>
    %c45 = arith.constant 45 : index
    %c0_144 = arith.constant 0 : index
    %367 = vector.load %arg1[%c45, %c0_144] : memref<98x256xf32, #tpu.memory_space<vmem>>, vector<1x256xf32>
    %c94 = arith.constant 94 : index
    %c0_145 = arith.constant 0 : index
    %368 = vector.load %arg1[%c94, %c0_145] : memref<98x256xf32, #tpu.memory_space<vmem>>, vector<1x256xf32>
    %369 = arith.mulf %367, %365 : vector<1x256xf32>
    %370 = arith.addf %364, %369 : vector<1x256xf32>
    %371 = arith.mulf %368, %366 : vector<1x256xf32>
    %372 = arith.addf %370, %371 : vector<1x256xf32>
    %c207_i32 = arith.constant 207 : i32
    %373 = tpu.dynamic_rotate %3 by %c207_i32 dim 1 : vector<1x256xf32>, i32 -> vector<1x256xf32>
    %c207_i32_146 = arith.constant 207 : i32
    %374 = tpu.dynamic_rotate %5 by %c207_i32_146 dim 1 : vector<1x256xf32>, i32 -> vector<1x256xf32>
    %c46 = arith.constant 46 : index
    %c0_147 = arith.constant 0 : index
    %375 = vector.load %arg1[%c46, %c0_147] : memref<98x256xf32, #tpu.memory_space<vmem>>, vector<1x256xf32>
    %c95 = arith.constant 95 : index
    %c0_148 = arith.constant 0 : index
    %376 = vector.load %arg1[%c95, %c0_148] : memref<98x256xf32, #tpu.memory_space<vmem>>, vector<1x256xf32>
    %377 = arith.mulf %375, %373 : vector<1x256xf32>
    %378 = arith.addf %372, %377 : vector<1x256xf32>
    %379 = arith.mulf %376, %374 : vector<1x256xf32>
    %380 = arith.addf %378, %379 : vector<1x256xf32>
    %c206_i32 = arith.constant 206 : i32
    %381 = tpu.dynamic_rotate %3 by %c206_i32 dim 1 : vector<1x256xf32>, i32 -> vector<1x256xf32>
    %c206_i32_149 = arith.constant 206 : i32
    %382 = tpu.dynamic_rotate %5 by %c206_i32_149 dim 1 : vector<1x256xf32>, i32 -> vector<1x256xf32>
    %c47 = arith.constant 47 : index
    %c0_150 = arith.constant 0 : index
    %383 = vector.load %arg1[%c47, %c0_150] : memref<98x256xf32, #tpu.memory_space<vmem>>, vector<1x256xf32>
    %c96 = arith.constant 96 : index
    %c0_151 = arith.constant 0 : index
    %384 = vector.load %arg1[%c96, %c0_151] : memref<98x256xf32, #tpu.memory_space<vmem>>, vector<1x256xf32>
    %385 = arith.mulf %383, %381 : vector<1x256xf32>
    %386 = arith.addf %380, %385 : vector<1x256xf32>
    %387 = arith.mulf %384, %382 : vector<1x256xf32>
    %388 = arith.addf %386, %387 : vector<1x256xf32>
    %c205_i32 = arith.constant 205 : i32
    %389 = tpu.dynamic_rotate %3 by %c205_i32 dim 1 : vector<1x256xf32>, i32 -> vector<1x256xf32>
    %c205_i32_152 = arith.constant 205 : i32
    %390 = tpu.dynamic_rotate %5 by %c205_i32_152 dim 1 : vector<1x256xf32>, i32 -> vector<1x256xf32>
    %c48 = arith.constant 48 : index
    %c0_153 = arith.constant 0 : index
    %391 = vector.load %arg1[%c48, %c0_153] : memref<98x256xf32, #tpu.memory_space<vmem>>, vector<1x256xf32>
    %c97 = arith.constant 97 : index
    %c0_154 = arith.constant 0 : index
    %392 = vector.load %arg1[%c97, %c0_154] : memref<98x256xf32, #tpu.memory_space<vmem>>, vector<1x256xf32>
    %393 = arith.mulf %391, %389 : vector<1x256xf32>
    %394 = arith.addf %388, %393 : vector<1x256xf32>
    %395 = arith.mulf %392, %390 : vector<1x256xf32>
    %396 = arith.addf %394, %395 : vector<1x256xf32>
    %397 = arith.negf %396 : vector<1x256xf32>
    %398 = math.exp %397 : vector<1x256xf32>
    %cst_155 = arith.constant 1.000000e+00 : f32
    %399 = vector.broadcast %cst_155 : f32 to vector<1x256xf32>
    %400 = arith.addf %399, %398 : vector<1x256xf32>
    %401 = arith.divf %399, %400 : vector<1x256xf32>
    %402 = vector.shape_cast %401 : vector<1x256xf32> to vector<1x1x256xf32>
    %c0_156 = arith.constant 0 : index
    %c0_157 = arith.constant 0 : index
    %c0_158 = arith.constant 0 : index
    %403 = vector.load %arg2[%c0_156, %c0_157, %c0_158] : memref<1x4x256xf32, #tpu.memory_space<vmem>>, vector<1x4x256xf32>
    %404 = vector.broadcast %402 : vector<1x1x256xf32> to vector<1x4x256xf32>
    %405 = arith.mulf %404, %403 : vector<1x4x256xf32>
    %c0_159 = arith.constant 0 : index
    %c0_160 = arith.constant 0 : index
    %c0_161 = arith.constant 0 : index
    %406 = vector.load %arg3[%c0_159, %c0_160, %c0_161] : memref<1x4x256xf32, #tpu.memory_space<vmem>>, vector<1x4x256xf32>
    tpu.vector_store %arg3[%c0_159, %c0_160, %c0_161], %405 {strides = array<i32>} : memref<1x4x256xf32, #tpu.memory_space<vmem>>, vector<1x4x256xf32>,
    return
  }
  func.func @transform_0(%arg0: i32) -> (i32, i32) {
    %c0_i32 = arith.constant 0 : i32
    %c0_i32_0 = arith.constant 0 : i32
    %c0_i32_1 = arith.constant 0 : i32
    return %c0_i32, %c0_i32_0 : i32, i32
  }
  func.func @transform_1(%arg0: i32) -> (i32, i32, i32) {
    %c0_i32 = arith.constant 0 : i32
    %c0_i32_0 = arith.constant 0 : i32
    %c0_i32_1 = arith.constant 0 : i32
    return %arg0, %c0_i32, %c0_i32_0 : i32, i32, i32
  }
  func.func @transform_2(%arg0: i32) -> (i32, i32, i32) {
    %c0_i32 = arith.constant 0 : i32
    %c0_i32_0 = arith.constant 0 : i32
    %c0_i32_1 = arith.constant 0 : i32
    return %arg0, %c0_i32, %c0_i32_0 : i32, i32, i32
  }
}

</mosaic_0001>

<bundles_post_ra>
// kernel: tpu_custom_call.1
= control target key start
LH: loop header
LB: loop body
LE: loop exit
PB: predicated region body
PF: predicated region fallthrough
CT: control target
= control target key end

     0   :  { %7 = vsyncpa [#allocation3], 0  ;;  %s4818_s0 = inlined_call_operand.hbm [shape: f32[98,256], index: 0, kind: input, shape index: {}]   ;;  %s4819_s1 = inlined_call_operand.hbm [shape: f32[2,4,256], index: 1, kind: input, shape index: {}]   ;;  %s4820_s2 = inlined_call_operand.hbm [shape: f32[2,4,256], index: 2, kind: output, shape index: {}]  }
   0x1   :  { %8 = vsyncpa [#allocation6], 0 }
   0x2   :  { %10 = vsyncpa [#allocation6 + $0x1], 0 }
   0x3   :  { %11 = vsyncpa [#allocation4], 0 }
   0x4   :  { %13 = vsyncpa [#allocation4 + $0x1], 0  ;;  %s3445_s9 = smov 0   ;;  %s3447_s10 = smov 0  }
   0x5   :  { %s3449_s11 = smov 0   ;;  %s3451_s12 = smov 0  }
   0x6 LB: > { %s3466_s13 = sadd.s32 4294967295, %s3374_s12   ;;  %s3113_s14 = sadd.s32 4294967294, %s3374_s12   ;;  %s3374_s12 = sphi %s3451_s12, %s4840_s12   ;;  %s3370_s11 = sphi %s3449_s11, %s4839_s11   ;;  %s3366_s10 = sphi %s3447_s10, %s4838_s10   ;;  %s3362_s9 = sphi %s3445_s9, %s4837_s9  }
   0x7   : > { %p60_p0 = scmp.ne.s32.totalorder %s3366_s10, %s3362_s9  ;;  %p4821_p1 = scmp.eq.s32.totalorder %s3466_s13, 0 }
   0x8   : > { %p90_p3 = scmp.eq.s32.totalorder %s3113_s14, 1  ;;  %p3114_p5 = scmp.ge.s32.totalorder %s3374_s12, 1 }
   0x9   : > { %p3475_p4 = por %p4821_p1, %p60_p0  ;;  %p97_p7 = scmp.lt.s32.totalorder %s3374_s12, 3 }
   0xa   : > { %p3480_p6 = por %p90_p3, %p60_p0  ;;  %s3376_s18 = smov [#allocation2]  }
   0xb   : > { %s4824_s15 = scalar_select %p3475_p4, 1, 0 }
   0xc   : > { %s4825_s16 = scalar_select %p3480_p6, 1, 0 }
   0xd   : > { %p3485_p8 = pnand %p3114_p5, %p97_p7  ;;  %s109_s19 = sshll.u32 %s3376_s18, 4  ;;  %s3489_s19 = int_to_ptr.vmem [resolvable:$true] %s109_s19 }
   0xe   : > { %s3501_s21 = sadd.s32 1, %s3374_s12   ;;  %s47_s22 = sadd.s32 1, %s3370_s11 }
   0xf   : > { %s4826_s17 = scalar_select %p3485_p8, 1, 0 }
  0x10   : > { %p3140_p9 = pneg %p3485_p8  ;;  %s44_s23 = ssub.s32 %s3374_s12, %s3501_s21 }
  0x11   : > { %s3246_s26 = scalar_lea.hbm %s4818_s0, 3328 }
  0x12   : > { %p3496_p11 = pnand %p3140_p9, %p4821_p1  ;;  %p3247_p12 = scmp.ne.s32.totalorder %s4818_s0, %s3246_s26 }
  0x13   : > { %p3253_p5 = scmp.lt.u32.totalorder %s3246_s26, %s4818_s0 }
  0x14   : > { %p3248_p13 = pneg %p3496_p11 }
  0x16   : > { %p3249_p0 = pnand %p3248_p13, %p3247_p12 }
  0x18   : > { %p3250_p3 = pneg %p3249_p0 }
  0x1a   : > { %p3255_p7 = pnand %p3253_p5, %p3250_p3 }
  0x1c   : > { %3258 = shalt.err (!%p3255_p7)
}
  0x1d   : > { %s3259_s3 = scalar_lea.vmem %s3489_s19, 3328  ;;  %p3267_p2 = scmp.lt.s32.totalorder %s3489_s19, %s3489_s19 }
  0x1e   : > { %p3260_p9 = scmp.ne.s32.totalorder %s3489_s19, %s3259_s3  ;;  %p3268_p6 = scmp.lt.s32.totalorder %s3259_s3, %s3259_s3 }
  0x20   : > { %p3262_p10 = pnand %p3260_p9, %p3248_p13  ;;  %p3269_p4 = por %p3268_p6, %p3267_p2 }
  0x22   : > { %p3263_p1 = pneg %p3262_p10 }
  0x24   : > { %p3270_p8 = pnand %p3269_p4, %p3263_p1 }
  0x26   : > { %3273 = shalt.err (!%p3270_p8)
}
  0x27   : > { %s3377_s4 = smov 256   ;;  %s3378_s5 = smov 16  }
  0x28   : > { %3143 = dma.hbm_to_vmem [thread:$0]  (!%p3496_p11), %s4818_s0, 3328, %s3489_s19, [#allocation3], %s3377_s4, %s3377_s4, %s3378_s5  }
  0x29   : > { %p45_p2 = scmp.eq.s32.totalorder %s44_s23, 0  ;;  %p54_p1 = scmp.ne.s32.totalorder %s3370_s11, %s3366_s10 }
  0x2a   : > { %p55_p4 = scmp.eq.s32.totalorder %s3374_s12, 0  ;;  %p3153_p6 = scmp.lt.s32.totalorder %s3374_s12, 2 }
  0x2b   : > { %s3532_s8 = scalar_select %p45_p2, %s3370_s11, %s47_s22  }
  0x2c   : > { %p56_p8 = por %p55_p4, %p54_p1  ;;  %p4828_p10 = scmp.eq.s32.totalorder %s3466_s13, 1 }
  0x2d   : > { %s123_s18 = sand.u32 1, %s3370_s11   ;;  %s3130_s24 = sshll.u32 %s3374_s12, 7 }
  0x2e   : > { %p3536_p12 = por %p4828_p10, %p54_p1  ;;  %s3117_s25 = sshll.u32 %s123_s18, 3 }
  0x2f   : > { %s3545_s27 = scalar_lea.hbm %s4819_s1, %s3130_s24  ;;  %s127_s19 = scalar_lea.vmem [#allocation5], %s3117_s25 }
  0x30   : > { %s135_s22 = sshll.u32 %s127_s19, 4  ;;  %p3547_p11 = pnand %p3153_p6, %p56_p8  ;;  %s3551_s22 = int_to_ptr.vmem [resolvable:$true] %s135_s22 }
  0x31   : > { %s124_s28 = scalar_lea.sflag [#allocation6], %s123_s18  ;;  %s3274_s29 = scalar_lea.hbm %s3545_s27, 128 }
  0x32   : > { %p3275_p13 = scmp.ne.s32.totalorder %s3545_s27, %s3274_s29  ;;  %p3276_p0 = pneg %p3547_p11 }
  0x33   : > { %s3279_s4 = scalar_lea.hbm %s4819_s1, 256  ;;  %p3280_p7 = scmp.lt.u32.totalorder %s3545_s27, %s4819_s1 }
  0x34   : > { %p3277_p3 = pnand %p3276_p0, %p3275_p13  ;;  %p3281_p9 = scmp.lt.u32.totalorder %s3279_s4, %s3274_s29 }
  0x35   : > { %p3283_p1 = scmp.lt.u32.totalorder %s3274_s29, %s3545_s27 }
  0x36   : > { %p3278_p5 = pneg %p3277_p3  ;;  %p3282_p2 = por %p3281_p9, %p3280_p7 }
  0x38   : > { %p3284_p4 = por %p3283_p1, %p3282_p2 }
  0x3a   : > { %p3285_p6 = pnand %p3284_p4, %p3278_p5 }
  0x3c   : > { %3288 = shalt.err (!%p3285_p6)
}
  0x3d   : > { %s3289_s7 = scalar_lea.vmem %s3551_s22, 128  ;;  %s3379_s18 = smov [#allocation5]  }
  0x3e   : > { %p3290_p8 = scmp.ne.s32.totalorder %s3551_s22, %s3289_s7  ;;  %s3294_s24 = sshll.u32 %s3379_s18, 4  ;;  %s3295_s24 = int_to_ptr.vmem [resolvable:$false] %s3294_s24 }
  0x3f   : > { %s3296_s25 = scalar_lea.vmem %s3295_s24, 256  ;;  %p3297_p3 = scmp.lt.s32.totalorder %s3551_s22, %s3295_s24 }
  0x40   : > { %p3292_p10 = pnand %p3290_p8, %p3276_p0  ;;  %p3298_p7 = scmp.lt.s32.totalorder %s3296_s25, %s3289_s7 }
  0x42   : > { %p3293_p13 = pneg %p3292_p10  ;;  %p3299_p9 = por %p3298_p7, %p3297_p3 }
  0x44   : > { %p3300_p2 = pnand %p3299_p9, %p3293_p13 }
  0x46   : > { %3303 = shalt.err (!%p3300_p2)
}
  0x47   : > { %3147 = dma.hbm_to_vmem [thread:$0]  (!%p3547_p11), %s3545_s27, 128, %s3551_s22, %s124_s28  }
  0x48   : > { %p4831_p5 = scmp.ne.s32.totalorder %s4826_s17, 0 }
  0x49   : > { %p4832_p0 = scmp.eq.s32.totalorder (!%p4831_p5), %s3466_s13, 0 }
  0x4a   : > { %144 = sbr.rel (%p4831_p5) target bundleno = 652 (0x28c), region = 28 }
  0x51   : > { %3349 = dma.done.wait (%p4832_p0), [#allocation3], 3328   ;;  %p4833_p1 = pmov %p4832_p0 }
  0x52   : > { %s3585_s20 = sand.u32 1, %s3366_s10   ;;  %p4834_p11 = scmp.ne.s32.totalorder %s4824_s15, 0 }
  0x53   : > { %3351 = vsyncadd (%p4833_p1), [#allocation3], 4294963968  ;;  %s3122_s26 = sshll.u32 %s3585_s20, 3  ;;  %s151_s19 = scalar_lea.sflag [#allocation6], %s3585_s20 }
  0x54   : > { %s3591_s27 = scalar_lea.vmem [#allocation5], %s3122_s26 }
  0x55   : > { %3353 = dma.done.wait (%p4834_p11), %s151_s19, 128  }
  0x56   : > { %3355 = vsyncadd (%p4834_p11), %s151_s19, 4294967168  ;;  %vm179_vm0 = vcmask 1043456   ;;  %v175_v0 = vld [vmem:[%s3591_s27] sm:$0xff]  ;;  %s3380_s15 = smov 50   ;;  %s3381_s17 = smov 51   ;;  %v215_v56 = vlaneseq }
  0x57   : > { %v197_v1 = vsel %vm179_vm0, %v175_v0, -inf  ;;  %v3598_v2 = vcombine.high %v175_v0, %v175_v0  ;;  %v180_v3 = vsel %vm179_vm0, %v175_v0, 0.0  ;;  %s3382_s22 = smov 49   ;;  %s3383_s23 = smov 48   ;;  %v3401_v62 = vmov 1966171168  }
  0x58   : > { %v198_v4 = vrot.slane %v197_v1, 4  ;;  %v181_v5 = vrot.slane %v180_v3, 4  ;;  %s3384_s28 = smov 47   ;;  %s3385_s29 = smov 46   ;;  %v3744_v59 = vand.u32 127, %v215_v56  ;;  %v233_v63 = vunpack.c.l.s4 %v3401_v62 }
  0x59   : > { %v204_v6 = vsel %vm179_vm0, %v3598_v2, -inf  ;;  %v187_v7 = vsel %vm179_vm0, %v3598_v2, 0.0  ;;  %s3386_s30 = smov 45   ;;  %s3387_s3 = smov 35  }
  0x5a   : > { %v199_v8 = vmax.f32 %v197_v1, %v198_v4  ;;  %v205_v9 = vrot.slane %v204_v6, 4  ;;  %v182_v10 = vadd.f32 %v181_v5, %v180_v3  ;;  %v188_v11 = vrot.slane %v187_v7, 4  ;;  %s3388_s4 = smov 34   ;;  %s3389_s5 = smov 33  }
  0x5b   : > { %s3390_s6 = smov 32   ;;  %s3391_s7 = smov 31   ;;  %vm217_vm1 = vcmp.lt.s32.totalorder %v3744_v59, 51  ;;  %v234_v3 = vunpack.c.0.s8 %v233_v63  ;;  %v3757_v4 = vshrl.u32 %v215_v56, 7  ;;  %vm273_vm2 = vcmp.lt.s32.totalorder %v3744_v59, 50 }
  0x5c   : > { %v200_v12 = vrot.slane %v199_v8, 2  ;;  %v206_v13 = vmax.f32 %v204_v6, %v205_v9  ;;  %v183_v14 = vrot.slane %v182_v10, 2  ;;  %v189_v15 = vadd.f32 %v188_v11, %v187_v7  ;;  %s3392_s18 = smov 30   ;;  %s3393_s24 = smov 29  }
  0x5d   : > { %s3394_s25 = smov 19   ;;  %s3395_s19 = smov 18   ;;  %vm330_vm3 = vcmp.lt.s32.totalorder %v3744_v59, 49  ;;  %vm387_vm4 = vcmp.lt.s32.totalorder %v3744_v59, 48  ;;  %vm444_vm5 = vcmp.lt.s32.totalorder %v3744_v59, 47  ;;  %vm501_vm6 = vcmp.lt.s32.totalorder %v3744_v59, 46 }
  0x5e   : > { %v201_v16 = vmax.f32 %v199_v8, %v200_v12  ;;  %v207_v17 = vrot.slane %v206_v13, 2  ;;  %v184_v18 = vadd.f32 %v183_v14, %v182_v10  ;;  %v190_v22 = vrot.slane %v189_v15, 2 }
  0x5f   : > { %v3772_v12 = vsub.s32 %v234_v3, %v3757_v4  ;;  %vm558_vm7 = vcmp.lt.s32.totalorder %v3744_v59, 45  ;;  %vm615_vm8 = vcmp.lt.s32.totalorder %v3744_v59, 35  ;;  %vm672_vm9 = vcmp.lt.s32.totalorder %v3744_v59, 34 }
  0x60   : > { %v202_v19 = vrot.slane %v201_v16, 1  ;;  %v208_v20 = vmax.f32 %v206_v13, %v207_v17  ;;  %v185_v21 = vrot.slane %v184_v18, 1  ;;  %v191_v27 = vadd.f32 %v190_v22, %v189_v15 }
  0x61   : > { %vm729_vm10 = vcmp.lt.s32.totalorder %v3744_v59, 33  ;;  %vm786_vm11 = vcmp.lt.s32.totalorder %v3744_v59, 32  ;;  %vm843_vm12 = vcmp.lt.s32.totalorder %v3744_v59, 31  ;;  %vm900_vm13 = vcmp.lt.s32.totalorder %v3744_v59, 30 }
  0x62   : > { %v3602_v23 = vmax.f32 %v201_v16, %v202_v19  ;;  %v209_v24 = vrot.slane %v208_v20, 1  ;;  %v186_v26 = vadd.f32 %v185_v21, %v184_v18  ;;  %v192_v29 = vrot.slane %v191_v27, 1 }
  0x63   : > { %vm957_vm14 = vcmp.lt.s32.totalorder %v3744_v59, 29  ;;  %vm1014_vm15 = vcmp.lt.s32.totalorder %v3744_v59, 19  ;;  %vm1071_vm0 = vcmp.lt.s32.totalorder %v3744_v59, 18 }
  0x64   : > { %276 = vrot.lane.b32.xlu0 %v3602_v23, %s3380_s15  ;;  %220 = vrot.lane.b32.xlu1 %v3602_v23, %s3381_s17  ;;  %v3606_v25 = vmax.f32 %v208_v20, %v209_v24  ;;  %v3610_v28 = vmul.f32 0.25, %v186_v26  ;;  %v193_v30 = vadd.f32 %v192_v29, %v191_v27 }
  0x66   : > { %v3616_v31 = vmul.f32 0.25, %v193_v30 }
  0x68   : > { %333 = vrot.lane.b32.xlu0 %v3602_v23, %s3382_s22  ;;  %222 = vrot.lane.b32.xlu1 %v3606_v25, %s3381_s17 }
  0x6c   : > { %211 = vrot.lane.b32.xlu0 %v3610_v28, %s3381_s17  ;;  %278 = vrot.lane.b32.xlu1 %v3606_v25, %s3380_s15 }
  0x70   : > { %269 = vrot.lane.b32.xlu0 %v3610_v28, %s3380_s15  ;;  %335 = vrot.lane.b32.xlu1 %v3606_v25, %s3382_s22 }
  0x74   : > { %326 = vrot.lane.b32.xlu0 %v3610_v28, %s3382_s22  ;;  %271 = vrot.lane.b32.xlu1 %v3616_v31, %s3380_s15  ;;  %s3396_s15 = smov 17  }
  0x78   : > { %383 = vrot.lane.b32.xlu0 %v3610_v28, %s3383_s23  ;;  %328 = vrot.lane.b32.xlu1 %v3616_v31, %s3382_s22  ;;  %s3398_s22 = smov 15  }
  0x7c   : > { %385 = vrot.lane.b32.xlu1 %v3616_v31, %s3383_s23  ;;  %213 = vrot.lane.b32.xlu0 %v3616_v31, %s3381_s17  ;;  %s3397_s17 = smov 16  }
  0x80   : > { %392 = vrot.lane.b32.xlu1 %v3606_v25, %s3383_s23  ;;  %390 = vrot.lane.b32.xlu0 %v3602_v23, %s3383_s23  ;;  %s3399_s23 = smov 14  }
  0x84   : > { %442 = vrot.lane.b32.xlu1 %v3616_v31, %s3384_s28  ;;  %440 = vrot.lane.b32.xlu0 %v3610_v28, %s3384_s28 }
  0x88   : > { %449 = vrot.lane.b32.xlu1 %v3606_v25, %s3384_s28  ;;  %447 = vrot.lane.b32.xlu0 %v3602_v23, %s3384_s28  ;;  %s3400_s28 = smov 13  }
  0x8c   : > { %499 = vrot.lane.b32.xlu1 %v3616_v31, %s3385_s29  ;;  %497 = vrot.lane.b32.xlu0 %v3610_v28, %s3385_s29 }
  0x90   : > { %506 = vrot.lane.b32.xlu1 %v3606_v25, %s3385_s29  ;;  %504 = vrot.lane.b32.xlu0 %v3602_v23, %s3385_s29  ;;  %s3402_s29 = smov 3  }
  0x94   : > { %556 = vrot.lane.b32.xlu1 %v3616_v31, %s3386_s30  ;;  %554 = vrot.lane.b32.xlu0 %v3610_v28, %s3386_s30 }
  0x98   : > { %563 = vrot.lane.b32.xlu1 %v3606_v25, %s3386_s30  ;;  %561 = vrot.lane.b32.xlu0 %v3602_v23, %s3386_s30  ;;  %s3403_s30 = smov 2  }
  0x9c   : > { %613 = vrot.lane.b32.xlu1 %v3616_v31, %s3387_s3  ;;  %611 = vrot.lane.b32.xlu0 %v3610_v28, %s3387_s3 }
  0xa0   : > { %620 = vrot.lane.b32.xlu1 %v3606_v25, %s3387_s3  ;;  %618 = vrot.lane.b32.xlu0 %v3602_v23, %s3387_s3  ;;  %s3404_s3 = smov 1  }
  0xa4   : > { %670 = vrot.lane.b32.xlu1 %v3616_v31, %s3388_s4  ;;  %668 = vrot.lane.b32.xlu0 %v3610_v28, %s3388_s4 }
  0xa8   : > { %677 = vrot.lane.b32.xlu1 %v3606_v25, %s3388_s4  ;;  %675 = vrot.lane.b32.xlu0 %v3602_v23, %s3388_s4  ;;  %s3405_s4 = smov 127  }
  0xac   : > { %727 = vrot.lane.b32.xlu1 %v3616_v31, %s3389_s5  ;;  %725 = vrot.lane.b32.xlu0 %v3610_v28, %s3389_s5 }
  0xb0   : > { %734 = vrot.lane.b32.xlu1 %v3606_v25, %s3389_s5  ;;  %732 = vrot.lane.b32.xlu0 %v3602_v23, %s3389_s5  ;;  %s3406_s5 = smov 126  }
  0xb4   : > { %784 = vrot.lane.b32.xlu1 %v3616_v31, %s3390_s6  ;;  %782 = vrot.lane.b32.xlu0 %v3610_v28, %s3390_s6 }
  0xb8   : > { %791 = vrot.lane.b32.xlu1 %v3606_v25, %s3390_s6  ;;  %789 = vrot.lane.b32.xlu0 %v3602_v23, %s3390_s6  ;;  %s3407_s6 = smov 125  }
  0xbc   : > { %841 = vrot.lane.b32.xlu1 %v3616_v31, %s3391_s7  ;;  %839 = vrot.lane.b32.xlu0 %v3610_v28, %s3391_s7 }
  0xc0   : > { %848 = vrot.lane.b32.xlu1 %v3606_v25, %s3391_s7  ;;  %846 = vrot.lane.b32.xlu0 %v3602_v23, %s3391_s7  ;;  %s3408_s7 = smov 115  }
  0xc4   : > { %898 = vrot.lane.b32.xlu1 %v3616_v31, %s3392_s18  ;;  %896 = vrot.lane.b32.xlu0 %v3610_v28, %s3392_s18 }
  0xc8   : > { %905 = vrot.lane.b32.xlu1 %v3606_v25, %s3392_s18  ;;  %903 = vrot.lane.b32.xlu0 %v3602_v23, %s3392_s18  ;;  %s3409_s18 = smov 114  }
  0xcc   : > { %955 = vrot.lane.b32.xlu1 %v3616_v31, %s3393_s24  ;;  %953 = vrot.lane.b32.xlu0 %v3610_v28, %s3393_s24 }
  0xd0   : > { %962 = vrot.lane.b32.xlu1 %v3606_v25, %s3393_s24  ;;  %960 = vrot.lane.b32.xlu0 %v3602_v23, %s3393_s24  ;;  %s3410_s24 = smov 113  }
  0xd4   : > { %1012 = vrot.lane.b32.xlu1 %v3616_v31, %s3394_s25  ;;  %1010 = vrot.lane.b32.xlu0 %v3610_v28, %s3394_s25 }
  0xd6   : > { %v3668_v32 = vpop.permute.xlu0 %276  ;;  %v3670_v33 = vpop.permute.xlu1 %220 }
  0xd8   : > { %1019 = vrot.lane.b32.xlu1 %v3606_v25, %s3394_s25  ;;  %1017 = vrot.lane.b32.xlu0 %v3602_v23, %s3394_s25  ;;  %s3411_s25 = smov 112  }
  0xda   : > { %v3674_v34 = vpop.permute.xlu0 %333  ;;  %v3676_v35 = vpop.permute.xlu1 %222 }
  0xdb   : > { %v224_v7 = vsel %vm217_vm1, %v3670_v33, %v3676_v35  ;;  %v225_v8 = vsel %vm217_vm1, %v3676_v35, %v3670_v33  ;;  %v226_v33 = vld [vmem:[#allocation2] ss:$8 sm:$0x3]  ;;  %v228_v35 = vld [vmem:[#allocation2 + $0x61] ss:$8 sm:$0x3] }
  0xdc   : > { %1069 = vrot.lane.b32.xlu1 %v3616_v31, %s3395_s19  ;;  %1067 = vrot.lane.b32.xlu0 %v3610_v28, %s3395_s19  ;;  %v251_v13 = vcombine.low %v225_v8, %v224_v7 }
  0xde   : > { %v3680_v36 = vpop.permute.xlu0 %211  ;;  %v3682_v37 = vpop.permute.xlu1 %278  ;;  %v258_v19 = vrot.slane %v251_v13, %v3772_v12 }
  0xdf   : > { %v280_v20 = vsel %vm273_vm2, %v3668_v32, %v3682_v37  ;;  %v281_v21 = vsel %vm273_vm2, %v3682_v37, %v3668_v32 }
  0xe0   : > { %1076 = vrot.lane.b32.xlu1 %v3606_v25, %s3395_s19  ;;  %1074 = vrot.lane.b32.xlu0 %v3602_v23, %s3395_s19  ;;  %v265_v29 = vrot.slane %v258_v19, %v3772_v12  ;;  %v308_v30 = vcombine.low %v281_v21, %v280_v20  ;;  %s3412_s19 = smov 111  }
  0xe2   : > { %v3686_v38 = vpop.permute.xlu0 %269  ;;  %v3688_v39 = vpop.permute.xlu1 %335  ;;  %v267_v56 = vmul.f32 %v265_v29, %v228_v35  ;;  %v315_v62 = vrot.slane %v308_v30, %v3772_v12 }
  0xe3   : > { %v337_v3 = vsel %vm330_vm3, %v3674_v34, %v3688_v39 }
  0xe4   : > { %1126 = vrot.lane.b32.xlu1 %v3616_v31, %s3396_s15  ;;  %1124 = vrot.lane.b32.xlu0 %v3610_v28, %s3396_s15 }
  0xe6   : > { %v3692_v40 = vpop.permute.xlu0 %326  ;;  %v3694_v41 = vpop.permute.xlu1 %271 }
  0xe7   : > { %v274_v14 = vsel %vm273_vm2, %v3686_v38, %v3694_v41  ;;  %v275_v15 = vsel %vm273_vm2, %v3694_v41, %v3686_v38  ;;  %vm1185_vm2 = vcmp.lt.s32.totalorder %v3744_v59, 16 }
  0xe8   : > { %1133 = vrot.lane.b32.xlu1 %v3606_v25, %s3396_s15  ;;  %1131 = vrot.lane.b32.xlu0 %v3602_v23, %s3396_s15  ;;  %v288_v22 = vcombine.low %v275_v15, %v274_v14  ;;  %s3413_s15 = smov 110  }
  0xea   : > { %v3698_v42 = vpop.permute.xlu0 %383  ;;  %v3700_v43 = vpop.permute.xlu1 %328  ;;  %v295_v32 = vrot.slane %v288_v22, %v3772_v12 }
  0xeb   : > { %v332_v37 = vsel %vm330_vm3, %v3700_v43, %v3692_v40 }
  0xec   : > { %1183 = vrot.lane.b32.xlu1 %v3616_v31, %s3397_s17  ;;  %1181 = vrot.lane.b32.xlu0 %v3610_v28, %s3397_s17 }
  0xee   : > { %v3704_v44 = vpop.permute.xlu1 %385  ;;  %v214_v45 = vpop.permute.xlu0 %213 }
  0xef   : > { %v218_v5 = vsel %vm217_vm1, %v3680_v36, %v214_v45  ;;  %v219_v6 = vsel %vm217_vm1, %v214_v45, %v3680_v36  ;;  %v331_v36 = vsel %vm330_vm3, %v3692_v40, %v3700_v43  ;;  %v338_v40 = vsel %vm330_vm3, %v3688_v39, %v3674_v34 }
  0xf0   : > { %1190 = vrot.lane.b32.xlu1 %v3606_v25, %s3397_s17  ;;  %1188 = vrot.lane.b32.xlu0 %v3602_v23, %s3397_s17  ;;  %v231_v9 = vcombine.low %v219_v6, %v218_v5  ;;  %v345_v63 = vcombine.low %v332_v37, %v331_v36  ;;  %v302_v43 = vrot.slane %v295_v32, %v3772_v12  ;;  %v283_v5 = vld [vmem:[#allocation2 + $0x1] ss:$8 sm:$0x3]  ;;  %vm1128_vm1 = vcmp.lt.s32.totalorder %v3744_v59, 17  ;;  %s3414_s17 = smov 109  }
  0xf1   : > { %v365_v13 = vcombine.low %v338_v40, %v337_v3  ;;  %v388_v39 = vsel %vm387_vm4, %v3698_v42, %v3704_v44  ;;  %v389_v15 = vsel %vm387_vm4, %v3704_v44, %v3698_v42  ;;  %vm1242_vm3 = vcmp.lt.s32.totalorder %v3744_v59, 15 }
  0xf2   : > { %v3708_v46 = vpop.permute.xlu1 %392  ;;  %v3710_v47 = vpop.permute.xlu0 %390  ;;  %v238_v16 = vrot.slane %v231_v9, %v3772_v12  ;;  %v322_v9 = vrot.slane %v315_v62, %v3772_v12  ;;  %v352_v14 = vrot.slane %v345_v63, %v3772_v12  ;;  %v304_v34 = vmul.f32 %v302_v43, %v283_v5  ;;  %v342_v62 = vld [vmem:[#allocation2 + $0x63] ss:$8 sm:$0x3] }
  0xf3   : > { %v372_v22 = vrot.slane %v365_v13, %v3772_v12  ;;  %v402_v29 = vcombine.low %v389_v15, %v388_v39  ;;  %v394_v42 = vsel %vm387_vm4, %v3710_v47, %v3708_v46  ;;  %v395_v44 = vsel %vm387_vm4, %v3708_v46, %v3710_v47 }
  0xf4   : > { %1240 = vrot.lane.b32.xlu1 %v3616_v31, %s3398_s22  ;;  %1238 = vrot.lane.b32.xlu0 %v3610_v28, %s3398_s22  ;;  %v245_v24 = vrot.slane %v238_v16, %v3772_v12  ;;  %v285_v16 = vld [vmem:[#allocation2 + $0x62] ss:$8 sm:$0x3]  ;;  %v422_v63 = vcombine.low %v395_v44, %v394_v42  ;;  %vm1299_vm4 = vcmp.lt.s32.totalorder %v3744_v59, 14 }
  0xf5   : > { %v324_v30 = vmul.f32 %v322_v9, %v285_v16  ;;  %v379_v37 = vrot.slane %v372_v22, %v3772_v12 }
  0xf6   : > { %v3714_v48 = vpop.permute.xlu1 %442  ;;  %v3716_v49 = vpop.permute.xlu0 %440  ;;  %v247_v38 = vmul.f32 %v245_v24, %v226_v33  ;;  %v359_v24 = vrot.slane %v352_v14, %v3772_v12  ;;  %v340_v33 = vld [vmem:[#allocation2 + $0x2] ss:$8 sm:$0x3]  ;;  %v429_v13 = vrot.slane %v422_v63, %v3772_v12  ;;  %v397_v14 = vld [vmem:[#allocation2 + $0x3] ss:$8 sm:$0x3] }
  0xf7   : > { %v445_v3 = vsel %vm444_vm5, %v3716_v49, %v3714_v48  ;;  %v446_v46 = vsel %vm444_vm5, %v3714_v48, %v3716_v49  ;;  %v381_v5 = vmul.f32 %v379_v37, %v342_v62 }
  0xf8   : > { %1247 = vrot.lane.b32.xlu1 %v3606_v25, %s3398_s22  ;;  %1245 = vrot.lane.b32.xlu0 %v3602_v23, %s3398_s22  ;;  %v268_v6 = vadd.f32 %v267_v56, %v247_v38  ;;  %v361_v38 = vmul.f32 %v359_v24, %v340_v33  ;;  %v409_v56 = vrot.slane %v402_v29, %v3772_v12  ;;  %s3415_s22 = smov 99  }
  0xf9   : > { %v459_v9 = vcombine.low %v446_v46, %v445_v3  ;;  %v436_v24 = vrot.slane %v429_v13, %v3772_v12 }
  0xfa   : > { %v3720_v50 = vpop.permute.xlu1 %449  ;;  %v3722_v51 = vpop.permute.xlu0 %447  ;;  %v305_v19 = vadd.f32 %v304_v34, %v268_v6  ;;  %v416_v6 = vrot.slane %v409_v56, %v3772_v12 }
  0xfb   : > { %v451_v48 = vsel %vm444_vm5, %v3722_v51, %v3720_v50  ;;  %v452_v49 = vsel %vm444_vm5, %v3720_v50, %v3722_v51  ;;  %v466_v16 = vrot.slane %v459_v9, %v3772_v12  ;;  %v399_v50 = vld [vmem:[#allocation2 + $0x64] ss:$8 sm:$0x3]  ;;  %vm1356_vm5 = vcmp.lt.s32.totalorder %v3744_v59, 13 }
  0xfc   : > { %1297 = vrot.lane.b32.xlu1 %v3616_v31, %s3399_s23  ;;  %1295 = vrot.lane.b32.xlu0 %v3610_v28, %s3399_s23  ;;  %v325_v35 = vadd.f32 %v324_v30, %v305_v19  ;;  %v479_v19 = vcombine.low %v452_v49, %v451_v48  ;;  %v418_v22 = vmul.f32 %v416_v6, %v397_v14  ;;  %v456_v6 = vld [vmem:[#allocation2 + $0x65] ss:$8 sm:$0x3] }
  0xfd   : > { %v473_v44 = vrot.slane %v466_v16, %v3772_v12 }
  0xfe   : > { %v3726_v52 = vpop.permute.xlu1 %499  ;;  %v3728_v53 = vpop.permute.xlu0 %497  ;;  %v362_v47 = vadd.f32 %v361_v38, %v325_v35  ;;  %v486_v35 = vrot.slane %v479_v19, %v3772_v12  ;;  %v454_v38 = vld [vmem:[#allocation2 + $0x4] ss:$8 sm:$0x3] }
  0xff   : > { %v502_v51 = vsel %vm501_vm6, %v3728_v53, %v3726_v52  ;;  %v503_v29 = vsel %vm501_vm6, %v3726_v52, %v3728_v53  ;;  %v438_v53 = vmul.f32 %v436_v24, %v399_v50 }
 0x100   : > { %1304 = vrot.lane.b32.xlu1 %v3606_v25, %s3399_s23  ;;  %1302 = vrot.lane.b32.xlu0 %v3602_v23, %s3399_s23  ;;  %v382_v34 = vadd.f32 %v381_v5, %v362_v47  ;;  %v516_v56 = vcombine.low %v503_v29, %v502_v51  ;;  %v475_v47 = vmul.f32 %v473_v44, %v454_v38  ;;  %s3416_s23 = smov 98  }
 0x101   : > { %v493_v5 = vrot.slane %v486_v35, %v3772_v12 }
 0x102   : > { %v3732_v54 = vpop.permute.xlu1 %506  ;;  %v3734_v55 = vpop.permute.xlu0 %504  ;;  %v419_v30 = vadd.f32 %v418_v22, %v382_v34  ;;  %v523_v9 = vrot.slane %v516_v56, %v3772_v12 }
 0x103   : > { %v508_v37 = vsel %vm501_vm6, %v3734_v55, %v3732_v54  ;;  %v509_v52 = vsel %vm501_vm6, %v3732_v54, %v3734_v55  ;;  %v495_v16 = vmul.f32 %v493_v5, %v456_v6  ;;  %vm1413_vm6 = vcmp.lt.s32.totalorder %v3744_v59, 3 }
 0x104   : > { %1354 = vrot.lane.b32.xlu1 %v3616_v31, %s3400_s28  ;;  %1352 = vrot.lane.b32.xlu0 %v3610_v28, %s3400_s28  ;;  %v439_v62 = vadd.f32 %v438_v53, %v419_v30  ;;  %v536_v63 = vcombine.low %v509_v52, %v508_v37  ;;  %v530_v22 = vrot.slane %v523_v9, %v3772_v12  ;;  %v513_v37 = vld [vmem:[#allocation2 + $0x66] ss:$8 sm:$0x3] }
 0x106   : > { %v3738_v57 = vpop.permute.xlu1 %556  ;;  %v3740_v58 = vpop.permute.xlu0 %554  ;;  %v476_v48 = vadd.f32 %v475_v47, %v439_v62  ;;  %v543_v49 = vrot.slane %v536_v63, %v3772_v12 }
 0x107   : > { %v559_v3 = vsel %vm558_vm7, %v3740_v58, %v3738_v57  ;;  %v560_v46 = vsel %vm558_vm7, %v3738_v57, %v3740_v58 }
 0x108   : > { %1361 = vrot.lane.b32.xlu1 %v3606_v25, %s3400_s28  ;;  %1359 = vrot.lane.b32.xlu0 %v3602_v23, %s3400_s28  ;;  %v573_v58 = vcombine.low %v560_v46, %v559_v3  ;;  %v496_v29 = vadd.f32 %v495_v16, %v476_v48  ;;  %v550_v30 = vrot.slane %v543_v49, %v3772_v12  ;;  %v568_v46 = vld [vmem:[#allocation2 + $0x6] ss:$8 sm:$0x3]  ;;  %s3417_s28 = smov 97  }
 0x10a   : > { %v3746_v60 = vpop.permute.xlu1 %563  ;;  %v3748_v61 = vpop.permute.xlu0 %561  ;;  %v552_v3 = vmul.f32 %v550_v30, %v513_v37 }
 0x10b   : > { %v565_v13 = vsel %vm558_vm7, %v3748_v61, %v3746_v60  ;;  %v566_v57 = vsel %vm558_vm7, %v3746_v60, %v3748_v61  ;;  %vm1470_vm7 = vcmp.lt.s32.totalorder %v3744_v59, 2 }
 0x10c   : > { %1411 = vrot.lane.b32.xlu1 %v3616_v31, %s3402_s29  ;;  %1409 = vrot.lane.b32.xlu0 %v3610_v28, %s3402_s29  ;;  %v593_v19 = vcombine.low %v566_v57, %v565_v13 }
 0x10e   : > { %v3753_v0 = vpop.permute.xlu1 %613  ;;  %v3755_v1 = vpop.permute.xlu0 %611 }
 0x10f   : > { %v616_v14 = vsel %vm615_vm8, %v3755_v1, %v3753_v0  ;;  %v617_v34 = vsel %vm615_vm8, %v3753_v0, %v3755_v1  ;;  %v511_v0 = vld [vmem:[#allocation2 + $0x5] ss:$8 sm:$0x3]  ;;  %v580_v1 = vrot.slane %v573_v58, %v3772_v12 }
 0x110   : > { %1418 = vrot.lane.b32.xlu1 %v3606_v25, %s3402_s29  ;;  %1416 = vrot.lane.b32.xlu0 %v3602_v23, %s3402_s29  ;;  %v630_v51 = vcombine.low %v617_v34, %v616_v14  ;;  %v532_v38 = vmul.f32 %v530_v22, %v511_v0  ;;  %v625_v14 = vld [vmem:[#allocation2 + $0x7] ss:$8 sm:$0x3]  ;;  %s3418_s29 = smov 96  }
 0x111   : > { %v587_v56 = vrot.slane %v580_v1, %v3772_v12  ;;  %v627_v1 = vld [vmem:[#allocation2 + $0x70] ss:$8 sm:$0x3] }
 0x112   : > { %v3767_v10 = vpop.permute.xlu1 %620  ;;  %v3769_v11 = vpop.permute.xlu0 %618  ;;  %v637_v62 = vrot.slane %v630_v51, %v3772_v12 }
 0x113   : > { %v622_v24 = vsel %vm615_vm8, %v3769_v11, %v3767_v10  ;;  %v623_v50 = vsel %vm615_vm8, %v3767_v10, %v3769_v11  ;;  %v600_v10 = vrot.slane %v593_v19, %v3772_v12  ;;  %v589_v48 = vmul.f32 %v587_v56, %v568_v46 }
 0x114   : > { %1468 = vrot.lane.b32.xlu1 %v3616_v31, %s3403_s30  ;;  %1466 = vrot.lane.b32.xlu0 %v3610_v28, %s3403_s30  ;;  %v650_v11 = vcombine.low %v623_v50, %v622_v24  ;;  %v644_v49 = vrot.slane %v637_v62, %v3772_v12  ;;  %v682_v62 = vld [vmem:[#allocation2 + $0x10] ss:$8 sm:$0x3]  ;;  %vm1527_vm8 = vcmp.lt.s32.totalorder %v3744_v59, 1 }
 0x115   : > { %v607_v9 = vrot.slane %v600_v10, %v3772_v12 }
 0x116   : > { %v3782_v17 = vpop.permute.xlu1 %670  ;;  %v3784_v18 = vpop.permute.xlu0 %668  ;;  %v657_v13 = vrot.slane %v650_v11, %v3772_v12  ;;  %v646_v30 = vmul.f32 %v644_v49, %v625_v14 }
 0x117   : > { %v673_v52 = vsel %vm672_vm9, %v3784_v18, %v3782_v17  ;;  %v674_v53 = vsel %vm672_vm9, %v3782_v17, %v3784_v18  ;;  %v533_v18 = vadd.f32 %v532_v38, %v496_v29 }
 0x118   : > { %1475 = vrot.lane.b32.xlu1 %v3606_v25, %s3403_s30  ;;  %1473 = vrot.lane.b32.xlu0 %v3602_v23, %s3403_s30  ;;  %v687_v47 = vcombine.low %v674_v53, %v673_v52  ;;  %v664_v0 = vrot.slane %v657_v13, %v3772_v12  ;;  %s3419_s30 = smov 95  }
 0x119   : > { %v553_v24 = vadd.f32 %v552_v3, %v533_v18 }
 0x11a   : > { %v3794_v26 = vpop.permute.xlu1 %677  ;;  %v3796_v27 = vpop.permute.xlu0 %675  ;;  %v694_v34 = vrot.slane %v687_v47, %v3772_v12  ;;  %v666_v56 = vmul.f32 %v664_v0, %v627_v1 }
 0x11b   : > { %v679_v63 = vsel %vm672_vm9, %v3796_v27, %v3794_v26  ;;  %v680_v17 = vsel %vm672_vm9, %v3794_v26, %v3796_v27  ;;  %v570_v27 = vld [vmem:[#allocation2 + $0x67] ss:$8 sm:$0x3]  ;;  %vm1628_vm9 = vcmp.lt.s32.totalorder %v3744_v59, 127 }
 0x11c   : > { %1525 = vrot.lane.b32.xlu1 %v3616_v31, %s3404_s3  ;;  %1523 = vrot.lane.b32.xlu0 %v3610_v28, %s3404_s3  ;;  %v707_v58 = vcombine.low %v680_v17, %v679_v63  ;;  %v609_v50 = vmul.f32 %v607_v9, %v570_v27  ;;  %v701_v10 = vrot.slane %v694_v34, %v3772_v12  ;;  %v739_v27 = vld [vmem:[#allocation2 + $0x11] ss:$8 sm:$0x3] }
 0x11e   : > { %v3811_v41 = vpop.permute.xlu1 %727  ;;  %v3813_v45 = vpop.permute.xlu0 %725  ;;  %v714_v51 = vrot.slane %v707_v58, %v3772_v12  ;;  %v703_v9 = vmul.f32 %v701_v10, %v682_v62 }
 0x11f   : > { %v730_v57 = vsel %vm729_vm10, %v3813_v45, %v3811_v41  ;;  %v731_v26 = vsel %vm729_vm10, %v3811_v41, %v3813_v45 }
 0x120   : > { %1532 = vrot.lane.b32.xlu1 %v3606_v25, %s3404_s3  ;;  %1530 = vrot.lane.b32.xlu0 %v3602_v23, %s3404_s3  ;;  %v744_v16 = vcombine.low %v731_v26, %v730_v57  ;;  %v721_v17 = vrot.slane %v714_v51, %v3772_v12  ;;  %s3420_s3 = smov 94  }
 0x122   : > { %v3828_v7 = vpop.permute.xlu1 %734  ;;  %v3830_v8 = vpop.permute.xlu0 %732  ;;  %v751_v11 = vrot.slane %v744_v16, %v3772_v12 }
 0x123   : > { %v736_v41 = vsel %vm729_vm10, %v3830_v8, %v3828_v7  ;;  %v737_v45 = vsel %vm729_vm10, %v3828_v7, %v3830_v8  ;;  %v590_v8 = vadd.f32 %v589_v48, %v553_v24  ;;  %v741_v24 = vld [vmem:[#allocation2 + $0x72] ss:$8 sm:$0x3]  ;;  %vm1685_vm10 = vcmp.lt.s32.totalorder %v3744_v59, 126 }
 0x124   : > { %1626 = vrot.lane.b32.xlu1 %v3616_v31, %s3405_s4  ;;  %1624 = vrot.lane.b32.xlu0 %v3610_v28, %s3405_s4  ;;  %v764_v37 = vcombine.low %v737_v45, %v736_v41  ;;  %v758_v13 = vrot.slane %v751_v11, %v3772_v12  ;;  %v798_v11 = vld [vmem:[#allocation2 + $0x73] ss:$8 sm:$0x3] }
 0x125   : > { %v610_v38 = vadd.f32 %v609_v50, %v590_v8 }
 0x126   : > { %v3844_v20 = vpop.permute.xlu1 %784  ;;  %v3846_v21 = vpop.permute.xlu0 %782  ;;  %v771_v3 = vrot.slane %v764_v37, %v3772_v12  ;;  %v760_v45 = vmul.f32 %v758_v13, %v739_v27 }
 0x127   : > { %v787_v29 = vsel %vm786_vm11, %v3846_v21, %v3844_v20  ;;  %v788_v7 = vsel %vm786_vm11, %v3844_v20, %v3846_v21  ;;  %v647_v47 = vadd.f32 %v646_v30, %v610_v38 }
 0x128   : > { %1633 = vrot.lane.b32.xlu1 %v3606_v25, %s3405_s4  ;;  %1631 = vrot.lane.b32.xlu0 %v3602_v23, %s3405_s4  ;;  %v801_v63 = vcombine.low %v788_v7, %v787_v29  ;;  %v778_v34 = vrot.slane %v771_v3, %v3772_v12  ;;  %s3421_s4 = smov 93  }
 0x129   : > { %v667_v49 = vadd.f32 %v666_v56, %v647_v47 }
 0x12a   : > { %v3861_v32 = vpop.permute.xlu1 %791  ;;  %v3863_v36 = vpop.permute.xlu0 %789  ;;  %v780_v37 = vmul.f32 %v778_v34, %v741_v24 }
 0x12b   : > { %v793_v52 = vsel %vm786_vm11, %v3863_v36, %v3861_v32  ;;  %v794_v20 = vsel %vm786_vm11, %v3861_v32, %v3863_v36  ;;  %v684_v36 = vld [vmem:[#allocation2 + $0x71] ss:$8 sm:$0x3]  ;;  %vm1742_vm11 = vcmp.lt.s32.totalorder %v3744_v59, 125 }
 0x12c   : > { %1683 = vrot.lane.b32.xlu1 %v3616_v31, %s3406_s5  ;;  %1681 = vrot.lane.b32.xlu0 %v3610_v28, %s3406_s5  ;;  %v821_v46 = vcombine.low %v794_v20, %v793_v52  ;;  %v723_v14 = vmul.f32 %v721_v17, %v684_v36 }
 0x12e   : > { %v3877_v40 = vpop.permute.xlu1 %841  ;;  %v3879_v43 = vpop.permute.xlu0 %839  ;;  %v828_v16 = vrot.slane %v821_v46, %v3772_v12 }
 0x12f   : > { %v844_v18 = vsel %vm843_vm12, %v3879_v43, %v3877_v40  ;;  %v845_v32 = vsel %vm843_vm12, %v3877_v40, %v3879_v43  ;;  %v808_v40 = vrot.slane %v801_v63, %v3772_v12 }
 0x130   : > { %1690 = vrot.lane.b32.xlu1 %v3606_v25, %s3406_s5  ;;  %1688 = vrot.lane.b32.xlu0 %v3602_v23, %s3406_s5  ;;  %v858_v43 = vcombine.low %v845_v32, %v844_v18  ;;  %v835_v10 = vrot.slane %v828_v16, %v3772_v12  ;;  %v853_v18 = vld [vmem:[#allocation2 + $0x13] ss:$8 sm:$0x3]  ;;  %s3422_s5 = smov 83  }
 0x131   : > { %v815_v51 = vrot.slane %v808_v40, %v3772_v12 }
 0x132   : > { %v3894_v39 = vpop.permute.xlu1 %848  ;;  %v3896_v15 = vpop.permute.xlu0 %846  ;;  %v865_v29 = vrot.slane %v858_v43, %v3772_v12  ;;  %v837_v3 = vmul.f32 %v835_v10, %v798_v11  ;;  %v967_v10 = vld [vmem:[#allocation2 + $0x15] ss:$8 sm:$0x3] }
 0x133   : > { %v850_v58 = vsel %vm843_vm12, %v3896_v15, %v3894_v39  ;;  %v851_v48 = vsel %vm843_vm12, %v3894_v39, %v3896_v15  ;;  %v704_v15 = vadd.f32 %v703_v9, %v667_v49  ;;  %vm1799_vm12 = vcmp.lt.s32.totalorder %v3744_v59, 115 }
 0x134   : > { %1740 = vrot.lane.b32.xlu1 %v3616_v31, %s3407_s6  ;;  %1738 = vrot.lane.b32.xlu0 %v3610_v28, %s3407_s6  ;;  %v878_v50 = vcombine.low %v851_v48, %v850_v58  ;;  %v872_v17 = vrot.slane %v865_v29, %v3772_v12  ;;  %v855_v58 = vld [vmem:[#allocation2 + $0x74] ss:$8 sm:$0x3] }
 0x135   : > { %v724_v30 = vadd.f32 %v723_v14, %v704_v15 }
 0x136   : > { %v3911_v33 = vpop.permute.xlu1 %898  ;;  %v3913_v42 = vpop.permute.xlu0 %896  ;;  %v885_v52 = vrot.slane %v878_v50, %v3772_v12  ;;  %v874_v43 = vmul.f32 %v872_v17, %v853_v18  ;;  %v912_v50 = vld [vmem:[#allocation2 + $0x75] ss:$8 sm:$0x3] }
 0x137   : > { %v901_v41 = vsel %vm900_vm13, %v3913_v42, %v3911_v33  ;;  %v902_v39 = vsel %vm900_vm13, %v3911_v33, %v3913_v42  ;;  %v796_v42 = vld [vmem:[#allocation2 + $0x12] ss:$8 sm:$0x3]  ;;  %v761_v62 = vadd.f32 %v760_v45, %v724_v30 }
 0x138   : > { %1747 = vrot.lane.b32.xlu1 %v3606_v25, %s3407_s6  ;;  %1745 = vrot.lane.b32.xlu0 %v3602_v23, %s3407_s6  ;;  %v915_v8 = vcombine.low %v902_v39, %v901_v41  ;;  %v817_v63 = vmul.f32 %v815_v51, %v796_v42  ;;  %v892_v47 = vrot.slane %v885_v52, %v3772_v12  ;;  %s3423_s6 = smov 82  }
 0x13a   : > { %v3935_v54 = vpop.permute.xlu1 %905  ;;  %v3937_v55 = vpop.permute.xlu0 %903  ;;  %v922_v32 = vrot.slane %v915_v8, %v3772_v12  ;;  %v894_v39 = vmul.f32 %v892_v47, %v855_v58 }
 0x13b   : > { %v907_v7 = vsel %vm900_vm13, %v3937_v55, %v3935_v54  ;;  %v908_v33 = vsel %vm900_vm13, %v3935_v54, %v3937_v55  ;;  %vm1856_vm13 = vcmp.lt.s32.totalorder %v3744_v59, 114 }
 0x13c   : > { %1797 = vrot.lane.b32.xlu1 %v3616_v31, %s3408_s7  ;;  %1795 = vrot.lane.b32.xlu0 %v3610_v28, %s3408_s7  ;;  %v935_v20 = vcombine.low %v908_v33, %v907_v7  ;;  %v929_v49 = vrot.slane %v922_v32, %v3772_v12 }
 0x13e   : > { %v3961_v60 = vpop.permute.xlu1 %955  ;;  %v3963_v61 = vpop.permute.xlu0 %953  ;;  %v942_v9 = vrot.slane %v935_v20, %v3772_v12 }
 0x13f   : > { %v958_v38 = vsel %vm957_vm14, %v3963_v61, %v3961_v60  ;;  %v959_v54 = vsel %vm957_vm14, %v3961_v60, %v3963_v61  ;;  %v781_v61 = vadd.f32 %v780_v37, %v761_v62 }
 0x140   : > { %1804 = vrot.lane.b32.xlu1 %v3606_v25, %s3408_s7  ;;  %1802 = vrot.lane.b32.xlu0 %v3602_v23, %s3408_s7  ;;  %v972_v46 = vcombine.low %v959_v54, %v958_v38  ;;  %v949_v15 = vrot.slane %v942_v9, %v3772_v12  ;;  %s3424_s7 = smov 81  }
 0x141   : > { %v818_v40 = vadd.f32 %v817_v63, %v781_v61 }
 0x142   : > { %v3979_v44 = vpop.permute.xlu1 %962  ;;  %v3981_v35 = vpop.permute.xlu0 %960  ;;  %v979_v34 = vrot.slane %v972_v46, %v3772_v12  ;;  %v951_v37 = vmul.f32 %v949_v15, %v912_v50 }
 0x143   : > { %v964_v36 = vsel %vm957_vm14, %v3981_v35, %v3979_v44  ;;  %v965_v60 = vsel %vm957_vm14, %v3979_v44, %v3981_v35  ;;  %v838_v41 = vadd.f32 %v837_v3, %v818_v40  ;;  %vm1913_vm14 = vcmp.lt.s32.totalorder %v3744_v59, 113 }
 0x144   : > { %1854 = vrot.lane.b32.xlu1 %v3616_v31, %s3409_s18  ;;  %1852 = vrot.lane.b32.xlu0 %v3610_v28, %s3409_s18  ;;  %v992_v48 = vcombine.low %v965_v60, %v964_v36  ;;  %v986_v42 = vrot.slane %v979_v34, %v3772_v12  ;;  %v1024_v36 = vld [vmem:[#allocation2 + $0x16] ss:$8 sm:$0x3] }
 0x145   : > { %v875_v7 = vadd.f32 %v874_v43, %v838_v41  ;;  %v1081_v41 = vld [vmem:[#allocation2 + $0x17] ss:$8 sm:$0x3] }
 0x146   : > { %v4005_v5 = vpop.permute.xlu1 %1012  ;;  %v4007_v6 = vpop.permute.xlu0 %1010  ;;  %v999_v51 = vrot.slane %v992_v48, %v3772_v12  ;;  %v988_v18 = vmul.f32 %v986_v42, %v967_v10 }
 0x147   : > { %v1015_v13 = vsel %vm1014_vm15, %v4007_v6, %v4005_v5  ;;  %v1016_v44 = vsel %vm1014_vm15, %v4005_v5, %v4007_v6  ;;  %v910_v6 = vld [vmem:[#allocation2 + $0x14] ss:$8 sm:$0x3] }
 0x148   : > { %1861 = vrot.lane.b32.xlu1 %v3606_v25, %s3409_s18  ;;  %1859 = vrot.lane.b32.xlu0 %v3602_v23, %s3409_s18  ;;  %v1029_v16 = vcombine.low %v1016_v44, %v1015_v13  ;;  %v931_v33 = vmul.f32 %v929_v49, %v910_v6  ;;  %v1006_v38 = vrot.slane %v999_v51, %v3772_v12  ;;  %v1026_v44 = vld [vmem:[#allocation2 + $0x77] ss:$8 sm:$0x3]  ;;  %s3425_s18 = smov 80  }
 0x14a   : > { %v4032_v19 = vpop.permute.xlu1 %1019  ;;  %v4034_v22 = vpop.permute.xlu0 %1017  ;;  %v1036_v8 = vrot.slane %v1029_v16, %v3772_v12 }
 0x14b   : > { %v1021_v14 = vsel %vm1014_vm15, %v4034_v22, %v4032_v19  ;;  %v1022_v5 = vsel %vm1014_vm15, %v4032_v19, %v4034_v22  ;;  %vm1970_vm15 = vcmp.lt.s32.totalorder %v3744_v59, 112 }
 0x14c   : > { %1911 = vrot.lane.b32.xlu1 %v3616_v31, %s3410_s24  ;;  %1909 = vrot.lane.b32.xlu0 %v3610_v28, %s3410_s24  ;;  %v1049_v19 = vcombine.low %v1022_v5, %v1021_v14  ;;  %v1043_v32 = vrot.slane %v1036_v8, %v3772_v12  ;;  %v1138_v8 = vld [vmem:[#allocation2 + $0x20] ss:$8 sm:$0x3] }
 0x14e   : > { %v4059_v21 = vpop.permute.xlu1 %1069  ;;  %v4061_v53 = vpop.permute.xlu0 %1067  ;;  %v1056_v54 = vrot.slane %v1049_v19, %v3772_v12  ;;  %v1083_v19 = vld [vmem:[#allocation2 + $0x80] ss:$8 sm:$0x3] }
 0x14f   : > { %v1072_v22 = vsel %vm1071_vm0, %v4061_v53, %v4059_v21  ;;  %v1073_v29 = vsel %vm1071_vm0, %v4059_v21, %v4061_v53  ;;  %v895_v53 = vadd.f32 %v894_v39, %v875_v7 }
 0x150   : > { %1918 = vrot.lane.b32.xlu1 %v3606_v25, %s3410_s24  ;;  %1916 = vrot.lane.b32.xlu0 %v3602_v23, %s3410_s24  ;;  %v1086_v11 = vcombine.low %v1073_v29, %v1072_v22  ;;  %v1063_v13 = vrot.slane %v1056_v54, %v3772_v12  ;;  %s3426_s24 = smov 79  }
 0x151   : > { %v932_v17 = vadd.f32 %v931_v33, %v895_v53 }
 0x152   : > { %v4077_v57 = vpop.permute.xlu1 %1076  ;;  %v4079_v26 = vpop.permute.xlu0 %1074  ;;  %v1093_v60 = vrot.slane %v1086_v11, %v3772_v12  ;;  %v1065_v16 = vmul.f32 %v1063_v13, %v1026_v44 }
 0x153   : > { %v1078_v30 = vsel %vm1071_vm0, %v4079_v26, %v4077_v57  ;;  %v1079_v21 = vsel %vm1071_vm0, %v4077_v57, %v4079_v26  ;;  %v969_v26 = vld [vmem:[#allocation2 + $0x76] ss:$8 sm:$0x3]  ;;  %v952_v47 = vadd.f32 %v951_v37, %v932_v17  ;;  %vm2027_vm0 = vcmp.lt.s32.totalorder %v3744_v59, 111 }
 0x154   : > { %1968 = vrot.lane.b32.xlu1 %v3616_v31, %s3411_s25  ;;  %1966 = vrot.lane.b32.xlu0 %v3610_v28, %s3411_s25  ;;  %v1106_v63 = vcombine.low %v1079_v21, %v1078_v30  ;;  %v1008_v9 = vmul.f32 %v1006_v38, %v969_v26  ;;  %v1100_v49 = vrot.slane %v1093_v60, %v3772_v12  ;;  %v1140_v26 = vld [vmem:[#allocation2 + $0x81] ss:$8 sm:$0x3] }
 0x156   : > { %v4103_v0 = vpop.permute.xlu1 %1126  ;;  %v4105_v1 = vpop.permute.xlu0 %1124  ;;  %v1113_v40 = vrot.slane %v1106_v63, %v3772_v12  ;;  %v1102_v29 = vmul.f32 %v1100_v49, %v1081_v41 }
 0x157   : > { %v1129_v62 = vsel %vm1128_vm1, %v4105_v1, %v4103_v0  ;;  %v1130_v57 = vsel %vm1128_vm1, %v4103_v0, %v4105_v1 }
 0x158   : > { %1975 = vrot.lane.b32.xlu1 %v3606_v25, %s3411_s25  ;;  %1973 = vrot.lane.b32.xlu0 %v3602_v23, %s3411_s25  ;;  %v1143_v61 = vcombine.low %v1130_v57, %v1129_v62  ;;  %v1120_v15 = vrot.slane %v1113_v40, %v3772_v12  ;;  %s3427_s25 = smov 78  }
 0x15a   : > { %v4129_v55 = vpop.permute.xlu1 %1133  ;;  %v4131_v56 = vpop.permute.xlu0 %1131  ;;  %v1150_v14 = vrot.slane %v1143_v61, %v3772_v12  ;;  %v1122_v11 = vmul.f32 %v1120_v15, %v1083_v19 }
 0x15b   : > { %v1135_v0 = vsel %vm1128_vm1, %v4131_v56, %v4129_v55  ;;  %v1136_v1 = vsel %vm1128_vm1, %v4129_v55, %v4131_v56  ;;  %v989_v55 = vadd.f32 %v988_v18, %v952_v47  ;;  %v1045_v56 = vmul.f32 %v1043_v32, %v1024_v36 }
 0x15c   : > { %2025 = vrot.lane.b32.xlu1 %v3616_v31, %s3412_s19  ;;  %2023 = vrot.lane.b32.xlu0 %v3610_v28, %s3412_s19  ;;  %v1163_v48 = vcombine.low %v1136_v1, %v1135_v0  ;;  %v1157_v7 = vrot.slane %v1150_v14, %v3772_v12  ;;  %v1195_v0 = vld [vmem:[#allocation2 + $0x21] ss:$8 sm:$0x3]  ;;  %vm2084_vm1 = vcmp.lt.s32.totalorder %v3744_v59, 110 }
 0x15d   : > { %v1009_v34 = vadd.f32 %v1008_v9, %v989_v55 }
 0x15e   : > { %v4156_v35 = vpop.permute.xlu1 %1183  ;;  %v4158_v27 = vpop.permute.xlu0 %1181  ;;  %v1159_v57 = vmul.f32 %v1157_v7, %v1138_v8 }
 0x15f   : > { %v1186_v43 = vsel %vm1185_vm2, %v4158_v27, %v4156_v35  ;;  %v1187_v58 = vsel %vm1185_vm2, %v4156_v35, %v4158_v27  ;;  %v1046_v22 = vadd.f32 %v1045_v56, %v1009_v34 }
 0x160   : > { %2032 = vrot.lane.b32.xlu1 %v3606_v25, %s3412_s19  ;;  %2030 = vrot.lane.b32.xlu0 %v3602_v23, %s3412_s19  ;;  %v1200_v39 = vcombine.low %v1187_v58, %v1186_v43  ;;  %s3428_s19 = smov 77  }
 0x161   : > { %v1066_v10 = vadd.f32 %v1065_v16, %v1046_v22 }
 0x162   : > { %v1191_v45 = vpop.permute.xlu1 %1190  ;;  %v1189_v24 = vpop.permute.xlu0 %1188  ;;  %v1207_v30 = vrot.slane %v1200_v39, %v3772_v12 }
 0x163   : > { %v1192_v5 = vsel %vm1185_vm2, %v1189_v24, %v1191_v45  ;;  %v1193_v35 = vsel %vm1185_vm2, %v1191_v45, %v1189_v24  ;;  %v1170_v45 = vrot.slane %v1163_v48, %v3772_v12  ;;  %v1103_v62 = vadd.f32 %v1102_v29, %v1066_v10  ;;  %v1197_v48 = vld [vmem:[#allocation2 + $0x82] ss:$8 sm:$0x3] }
 0x164   : > { %2082 = vrot.lane.b32.xlu1 %v3616_v31, %s3413_s15  ;;  %2080 = vrot.lane.b32.xlu0 %v3610_v28, %s3413_s15  ;;  %v1220_v24 = vcombine.low %v1193_v35, %v1192_v5  ;;  %v1214_v32 = vrot.slane %v1207_v30, %v3772_v12  ;;  %vm2141_vm2 = vcmp.lt.s32.totalorder %v3744_v59, 109 }
 0x166   : > { %v1241_v52 = vpop.permute.xlu1 %1240  ;;  %v1239_v20 = vpop.permute.xlu0 %1238  ;;  %v1216_v56 = vmul.f32 %v1214_v32, %v1195_v0  ;;  %v1366_v32 = vld [vmem:[#allocation2 + $0x24] ss:$8 sm:$0x3] }
 0x167   : > { %v1243_v50 = vsel %vm1242_vm3, %v1239_v20, %v1241_v52  ;;  %v1244_v51 = vsel %vm1242_vm3, %v1241_v52, %v1239_v20  ;;  %v1177_v52 = vrot.slane %v1170_v45, %v3772_v12  ;;  %v1227_v20 = vrot.slane %v1220_v24, %v3772_v12 }
 0x168   : > { %2089 = vrot.lane.b32.xlu1 %v3606_v25, %s3413_s15  ;;  %2087 = vrot.lane.b32.xlu0 %v3602_v23, %s3413_s15  ;;  %v1257_v21 = vcombine.low %v1244_v51, %v1243_v50  ;;  %v1254_v51 = vld [vmem:[#allocation2 + $0x83] ss:$8 sm:$0x3]  ;;  %s3131_s15 = sshll.u32 %s3466_s13, 7  ;;  %s3017_s13 = scalar_lea.sflag [#allocation4], %s3585_s20 }
 0x169   : > { %v1234_v47 = vrot.slane %v1227_v20, %v3772_v12 }
 0x16a   : > { %v1248_v3 = vpop.permute.xlu1 %1247  ;;  %v1246_v46 = vpop.permute.xlu0 %1245  ;;  %v1264_v36 = vrot.slane %v1257_v21, %v3772_v12 }
 0x16b   : > { %v1249_v53 = vsel %vm1242_vm3, %v1246_v46, %v1248_v3  ;;  %v1250_v37 = vsel %vm1242_vm3, %v1248_v3, %v1246_v46  ;;  %v1123_v3 = vadd.f32 %v1122_v11, %v1103_v62  ;;  %v1179_v46 = vmul.f32 %v1177_v52, %v1140_v26  ;;  %v1311_v11 = vld [vmem:[#allocation2 + $0x84] ss:$8 sm:$0x3] }
 0x16c   : > { %2139 = vrot.lane.b32.xlu1 %v3616_v31, %s3414_s17  ;;  %2137 = vrot.lane.b32.xlu0 %v3610_v28, %s3414_s17  ;;  %v1277_v63 = vcombine.low %v1250_v37, %v1249_v53  ;;  %v1271_v49 = vrot.slane %v1264_v36, %v3772_v12  ;;  %v1236_v16 = vmul.f32 %v1234_v47, %v1197_v48  ;;  %v1368_v47 = vld [vmem:[#allocation2 + $0x85] ss:$8 sm:$0x3]  ;;  %vm2198_vm3 = vcmp.lt.s32.totalorder %v3744_v59, 99 }
 0x16d   : > { %v1160_v55 = vadd.f32 %v1159_v57, %v1123_v3 }
 0x16e   : > { %v1298_v27 = vpop.permute.xlu1 %1297  ;;  %v1296_v6 = vpop.permute.xlu0 %1295  ;;  %v1284_v9 = vrot.slane %v1277_v63, %v3772_v12 }
 0x16f   : > { %v1300_v38 = vsel %vm1299_vm4, %v1296_v6, %v1298_v27  ;;  %v1301_v54 = vsel %vm1299_vm4, %v1298_v27, %v1296_v6  ;;  %v1252_v27 = vld [vmem:[#allocation2 + $0x22] ss:$8 sm:$0x3]  ;;  %v1180_v34 = vadd.f32 %v1179_v46, %v1160_v55 }
 0x170   : > { %2146 = vrot.lane.b32.xlu1 %v3606_v25, %s3414_s17  ;;  %2144 = vrot.lane.b32.xlu0 %v3602_v23, %s3414_s17  ;;  %v1314_v1 = vcombine.low %v1301_v54, %v1300_v38  ;;  %v1291_v41 = vrot.slane %v1284_v9, %v3772_v12  ;;  %v1273_v29 = vmul.f32 %v1271_v49, %v1252_v27  ;;  %s174_s17 = scalar_lea.vmem [#allocation7], %s3122_s26  ;;  %s3429_s26 = smov [#allocation7]  }
 0x171   : > { %v1217_v22 = vadd.f32 %v1216_v56, %v1180_v34 }
 0x172   : > { %v1305_v33 = vpop.permute.xlu1 %1304  ;;  %v1303_v42 = vpop.permute.xlu0 %1302  ;;  %v1321_v14 = vrot.slane %v1314_v1, %v3772_v12  ;;  %v1293_v21 = vmul.f32 %v1291_v41, %v1254_v51  ;;  %v1586_v51 = vcombine.low %v3610_v28, %v3616_v31 }
 0x173   : > { %v1306_v60 = vsel %vm1299_vm4, %v1303_v42, %v1305_v33  ;;  %v1307_v61 = vsel %vm1299_vm4, %v1305_v33, %v1303_v42  ;;  %v1309_v33 = vld [vmem:[#allocation2 + $0x23] ss:$8 sm:$0x3]  ;;  %v1237_v30 = vadd.f32 %v1236_v16, %v1217_v22  ;;  %vm2255_vm4 = vcmp.lt.s32.totalorder %v3744_v59, 98 }
 0x174   : > { %2196 = vrot.lane.b32.xlu1 %v3616_v31, %s3415_s22  ;;  %2194 = vrot.lane.b32.xlu0 %v3610_v28, %s3415_s22  ;;  %v1334_v13 = vcombine.low %v1307_v61, %v1306_v60  ;;  %v1328_v7 = vrot.slane %v1321_v14, %v3772_v12 }
 0x175   : > { %v1274_v54 = vadd.f32 %v1273_v29, %v1237_v30 }
 0x176   : > { %v1355_v17 = vpop.permute.xlu1 %1354  ;;  %v1353_v18 = vpop.permute.xlu0 %1352  ;;  %v1341_v39 = vrot.slane %v1334_v13, %v3772_v12  ;;  %v1330_v62 = vmul.f32 %v1328_v7, %v1309_v33 }
 0x177   : > { %v1357_v44 = vsel %vm1356_vm5, %v1353_v18, %v1355_v17  ;;  %v1358_v40 = vsel %vm1356_vm5, %v1355_v17, %v1353_v18  ;;  %v1294_v17 = vadd.f32 %v1293_v21, %v1274_v54 }
 0x178   : > { %2203 = vrot.lane.b32.xlu1 %v3606_v25, %s3415_s22  ;;  %2201 = vrot.lane.b32.xlu0 %v3602_v23, %s3415_s22  ;;  %v1371_v6 = vcombine.low %v1358_v40, %v1357_v44  ;;  %v1348_v53 = vrot.slane %v1341_v39, %v3772_v12  ;;  %s3031_s22 = sshll.u32 %s174_s17, 4  ;;  %s4776_s22 = int_to_ptr.vmem [resolvable:$true] %s3031_s22 }
 0x179   : > { %v1331_v46 = vadd.f32 %v1330_v62, %v1294_v17 }
 0x17a   : > { %v1362_v43 = vpop.permute.xlu1 %1361  ;;  %v1360_v58 = vpop.permute.xlu0 %1359  ;;  %v1378_v42 = vrot.slane %v1371_v6, %v3772_v12  ;;  %v1350_v18 = vmul.f32 %v1348_v53, %v1311_v11 }
 0x17b   : > { %v1363_v5 = vsel %vm1356_vm5, %v1360_v58, %v1362_v43  ;;  %v1364_v35 = vsel %vm1356_vm5, %v1362_v43, %v1360_v58  ;;  %v1423_v43 = vld [vmem:[#allocation2 + $0x25] ss:$8 sm:$0x3]  ;;  %vm2312_vm5 = vcmp.lt.s32.totalorder %v3744_v59, 97 }
 0x17c   : > { %2253 = vrot.lane.b32.xlu1 %v3616_v31, %s3416_s23  ;;  %2251 = vrot.lane.b32.xlu0 %v3610_v28, %s3416_s23  ;;  %v1391_v19 = vcombine.low %v1364_v35, %v1363_v5  ;;  %v1385_v26 = vrot.slane %v1378_v42, %v3772_v12  ;;  %v1351_v40 = vadd.f32 %v1350_v18, %v1331_v46  ;;  %v1425_v35 = vld [vmem:[#allocation2 + $0x86] ss:$8 sm:$0x3] }
 0x17e   : > { %v1412_v15 = vpop.permute.xlu1 %1411  ;;  %v1410_v50 = vpop.permute.xlu0 %1409  ;;  %v1398_v52 = vrot.slane %v1391_v19, %v3772_v12  ;;  %v1387_v13 = vmul.f32 %v1385_v26, %v1366_v32 }
 0x17f   : > { %v1414_v45 = vsel %vm1413_vm6, %v1410_v50, %v1412_v15  ;;  %v1415_v24 = vsel %vm1413_vm6, %v1412_v15, %v1410_v50  ;;  %v1606_v50 = vcombine.low %v3602_v23, %v3606_v25 }
 0x180   : > { %2260 = vrot.lane.b32.xlu1 %v3606_v25, %s3416_s23  ;;  %2258 = vrot.lane.b32.xlu0 %v3602_v23, %s3416_s23  ;;  %v1428_v8 = vcombine.low %v1415_v24, %v1414_v45  ;;  %v1405_v61 = vrot.slane %v1398_v52, %v3772_v12  ;;  %v1388_v6 = vadd.f32 %v1387_v13, %v1351_v40  ;;  %v1480_v24 = vld [vmem:[#allocation2 + $0x26] ss:$8 sm:$0x3]  ;;  %v1537_v52 = vld [vmem:[#allocation2 + $0x27] ss:$8 sm:$0x3] }
 0x182   : > { %v1419_v37 = vpop.permute.xlu1 %1418  ;;  %v1417_v10 = vpop.permute.xlu0 %1416  ;;  %v1435_v63 = vrot.slane %v1428_v8, %v3772_v12  ;;  %v1407_v48 = vmul.f32 %v1405_v61, %v1368_v47  ;;  %v1482_v8 = vld [vmem:[#allocation2 + $0x87] ss:$8 sm:$0x3]  ;;  %v1539_v61 = vld [vmem:[#allocation2 + $0x90] ss:$8 sm:$0x3] }
 0x183   : > { %v1420_v20 = vsel %vm1413_vm6, %v1417_v10, %v1419_v37  ;;  %v1421_v38 = vsel %vm1413_vm6, %v1419_v37, %v1417_v10  ;;  %v1593_v10 = vrot.slane %v1586_v51, %v3772_v12  ;;  %v1640_v51 = vld [vmem:[#allocation2 + $0x92] ss:$8 sm:$0x3]  ;;  %vm2369_vm6 = vcmp.lt.s32.totalorder %v3744_v59, 96 }
 0x184   : > { %v1448_v57 = vcombine.low %v1421_v38, %v1420_v20  ;;  %2310 = vrot.lane.b32.xlu1 %v3616_v31, %s3417_s28  ;;  %2308 = vrot.lane.b32.xlu0 %v3610_v28, %s3417_s28  ;;  %v1442_v44 = vrot.slane %v1435_v63, %v3772_v12  ;;  %v1408_v19 = vadd.f32 %v1407_v48, %v1388_v6 }
 0x185   : > { %v1613_v20 = vrot.slane %v1606_v50, %v3772_v12  ;;  %v1600_v32 = vrot.slane %v1593_v10, %v3772_v12 }
 0x186   : > { %v1469_v36 = vpop.permute.xlu1 %1468  ;;  %v1467_v60 = vpop.permute.xlu0 %1466  ;;  %v1455_v0 = vrot.slane %v1448_v57, %v3772_v12  ;;  %v1444_v34 = vmul.f32 %v1442_v44, %v1423_v43 }
 0x187   : > { %v1471_v1 = vsel %vm1470_vm7, %v1467_v60, %v1469_v36  ;;  %v1472_v3 = vsel %vm1470_vm7, %v1469_v36, %v1467_v60 }
 0x188   : > { %v1485_v9 = vcombine.low %v1472_v3, %v1471_v1  ;;  %2317 = vrot.lane.b32.xlu1 %v3606_v25, %s3417_s28  ;;  %2315 = vrot.lane.b32.xlu0 %v3602_v23, %s3417_s28  ;;  %v1462_v49 = vrot.slane %v1455_v0, %v3772_v12  ;;  %v1445_v42 = vadd.f32 %v1444_v34, %v1408_v19  ;;  %v1581_v0 = vld [vmem:[#allocation2 + $0x30] ss:$8 sm:$0x3] }
 0x189   : > { %v1620_v1 = vrot.slane %v1613_v20, %v3772_v12 }
 0x18a   : > { %v1492_v58 = vrot.slane %v1485_v9, %v3772_v12  ;;  %v1476_v55 = vpop.permute.xlu1 %1475  ;;  %v1474_v56 = vpop.permute.xlu0 %1473  ;;  %v1464_v45 = vmul.f32 %v1462_v49, %v1425_v35  ;;  %v1583_v9 = vld [vmem:[#allocation2 + $0x91] ss:$8 sm:$0x3] }
 0x18b   : > { %v1477_v14 = vsel %vm1470_vm7, %v1474_v56, %v1476_v55  ;;  %v1478_v5 = vsel %vm1470_vm7, %v1476_v55, %v1474_v56  ;;  %v1622_v49 = vmul.f32 %v1620_v1, %v1583_v9  ;;  %v1752_v1 = vld [vmem:[#allocation2 + $0x33] ss:$8 sm:$0x3]  ;;  %vm2426_vm7 = vcmp.lt.s32.totalorder %v3744_v59, 95 }
 0x18c   : > { %v1505_v27 = vcombine.low %v1478_v5, %v1477_v14  ;;  %2367 = vrot.lane.b32.xlu1 %v3616_v31, %s3418_s29  ;;  %2365 = vrot.lane.b32.xlu0 %v3610_v28, %s3418_s29  ;;  %v1499_v16 = vrot.slane %v1492_v58, %v3772_v12  ;;  %v1465_v11 = vadd.f32 %v1464_v45, %v1445_v42 }
 0x18d   : > { %v1602_v58 = vmul.f32 %v1600_v32, %v1581_v0 }
 0x18e   : > { %v1512_v41 = vrot.slane %v1505_v27, %v3772_v12  ;;  %v1526_v39 = vpop.permute.xlu1 %1525  ;;  %v1524_v15 = vpop.permute.xlu0 %1523  ;;  %v1501_v30 = vmul.f32 %v1499_v16, %v1480_v24  ;;  %v1638_v27 = vld [vmem:[#allocation2 + $0x31] ss:$8 sm:$0x3] }
 0x18f   : > { %v1528_v22 = vsel %vm1527_vm8, %v1524_v15, %v1526_v39  ;;  %v1529_v29 = vsel %vm1527_vm8, %v1526_v39, %v1524_v15 }
 0x190   : > { %v1519_v7 = vrot.slane %v1512_v41, %v3772_v12  ;;  %v1542_v33 = vcombine.low %v1529_v29, %v1528_v22  ;;  %2374 = vrot.lane.b32.xlu1 %v3606_v25, %s3418_s29  ;;  %2372 = vrot.lane.b32.xlu0 %v3602_v23, %s3418_s29  ;;  %v1502_v63 = vadd.f32 %v1501_v30, %v1465_v11  ;;  %s4774_s29 = scalar_lea.hbm %s4820_s2, %s3131_s15 }
 0x192   : > { %v1549_v21 = vrot.slane %v1542_v33, %v3772_v12  ;;  %v1533_v53 = vpop.permute.xlu1 %1532  ;;  %v1531_v37 = vpop.permute.xlu0 %1530  ;;  %v1521_v62 = vmul.f32 %v1519_v7, %v1482_v8 }
 0x193   : > { %v1534_v38 = vsel %vm1527_vm8, %v1531_v37, %v1533_v53  ;;  %v1535_v54 = vsel %vm1527_vm8, %v1533_v53, %v1531_v37  ;;  %vm2483_vm8 = vcmp.lt.s32.totalorder %v3744_v59, 94 }
 0x194   : > { %v1556_v57 = vrot.slane %v1549_v21, %v3772_v12  ;;  %v1562_v26 = vcombine.low %v1535_v54, %v1534_v38  ;;  %2424 = vrot.lane.b32.xlu1 %v3616_v31, %s3419_s30  ;;  %2422 = vrot.lane.b32.xlu0 %v3610_v28, %s3419_s30  ;;  %v1522_v47 = vadd.f32 %v1521_v62, %v1502_v63  ;;  %v1695_v21 = vld [vmem:[#allocation2 + $0x32] ss:$8 sm:$0x3] }
 0x196   : > { %v1558_v17 = vmul.f32 %v1556_v57, %v1537_v52  ;;  %v1569_v18 = vrot.slane %v1562_v26, %v3772_v12  ;;  %v1627_v36 = vpop.permute.xlu1 %1626  ;;  %v1625_v60 = vpop.permute.xlu0 %1624  ;;  %v1697_v57 = vld [vmem:[#allocation2 + $0x93] ss:$8 sm:$0x3] }
 0x197   : > { %v1629_v3 = vsel %vm1628_vm9, %v1625_v60, %v1627_v36  ;;  %v1630_v46 = vsel %vm1628_vm9, %v1627_v36, %v1625_v60 }
 0x198   : > { %v1576_v13 = vrot.slane %v1569_v18, %v3772_v12  ;;  %v1643_v44 = vcombine.low %v1629_v3, %v1630_v46  ;;  %2431 = vrot.lane.b32.xlu1 %v3606_v25, %s3419_s30  ;;  %2429 = vrot.lane.b32.xlu0 %v3602_v23, %s3419_s30  ;;  %v1559_v40 = vadd.f32 %v1558_v17, %v1522_v47  ;;  %s3304_s30 = scalar_lea.vmem %s4776_s22, 128 }
 0x199   : > { %p3305_p4 = scmp.ne.s32.totalorder %s4776_s22, %s3304_s30 }
 0x19a   : > { %v1578_v43 = vmul.f32 %v1576_v13, %v1539_v61  ;;  %v1650_v55 = vrot.slane %v1643_v44, %v3772_v12  ;;  %v1634_v56 = vpop.permute.xlu1 %1633  ;;  %v1632_v48 = vpop.permute.xlu0 %1631 }
 0x19b   : > { %v1635_v14 = vsel %vm1628_vm9, %v1632_v48, %v1634_v56  ;;  %v1636_v5 = vsel %vm1628_vm9, %v1634_v56, %v1632_v48  ;;  %vm2540_vm9 = vcmp.lt.s32.totalorder %v3744_v59, 93  ;;  %p3306_p6 = pnand %p3305_p4, %p3536_p12 }
 0x19c   : > { %v1579_v35 = vadd.f32 %v1578_v43, %v1559_v40  ;;  %v1657_v6 = vrot.slane %v1650_v55, %v3772_v12  ;;  %v1663_v34 = vcombine.low %v1635_v14, %v1636_v5  ;;  %2481 = vrot.lane.b32.xlu1 %v3616_v31, %s3420_s3  ;;  %2479 = vrot.lane.b32.xlu0 %v3610_v28, %s3420_s3  ;;  %v1754_v55 = vld [vmem:[#allocation2 + $0x94] ss:$8 sm:$0x3] }
 0x19d   : > { %p3307_p8 = pneg %p3306_p6 }
 0x19e   : > { %v1603_v16 = vadd.f32 %v1602_v58, %v1579_v35  ;;  %v1670_v41 = vrot.slane %v1663_v34, %v3772_v12  ;;  %v1684_v39 = vpop.permute.xlu1 %1683  ;;  %v1682_v15 = vpop.permute.xlu0 %1681  ;;  %v1659_v50 = vmul.f32 %v1657_v6, %v1638_v27 }
 0x19f   : > { %v1686_v19 = vsel %vm1685_vm10, %v1682_v15, %v1684_v39  ;;  %v1687_v45 = vsel %vm1685_vm10, %v1684_v39, %v1682_v15 }
 0x1a0   : > { %v1623_v24 = vadd.f32 %v1622_v49, %v1603_v16  ;;  %v1677_v22 = vrot.slane %v1670_v41, %v3772_v12  ;;  %v1700_v29 = vcombine.low %v1686_v19, %v1687_v45  ;;  %2488 = vrot.lane.b32.xlu1 %v3606_v25, %s3420_s3  ;;  %2486 = vrot.lane.b32.xlu0 %v3602_v23, %s3420_s3  ;;  %v1809_v16 = vld [vmem:[#allocation2 + $0x34] ss:$8 sm:$0x3] }
 0x1a2   : > { %v1660_v7 = vadd.f32 %v1659_v50, %v1623_v24  ;;  %v1679_v33 = vmul.f32 %v1677_v22, %v1640_v51  ;;  %v1707_v42 = vrot.slane %v1700_v29, %v3772_v12  ;;  %v1691_v8 = vpop.permute.xlu1 %1690  ;;  %v1689_v30 = vpop.permute.xlu0 %1688  ;;  %v1811_v29 = vld [vmem:[#allocation2 + $0x95] ss:$8 sm:$0x3] }
 0x1a3   : > { %v1692_v53 = vsel %vm1685_vm10, %v1689_v30, %v1691_v8  ;;  %v1693_v37 = vsel %vm1685_vm10, %v1691_v8, %v1689_v30  ;;  %vm2597_vm10 = vcmp.lt.s32.totalorder %v3744_v59, 83 }
 0x1a4   : > { %v1680_v10 = vadd.f32 %v1679_v33, %v1660_v7  ;;  %v1714_v11 = vrot.slane %v1707_v42, %v3772_v12  ;;  %v1720_v52 = vcombine.low %v1692_v53, %v1693_v37  ;;  %2538 = vrot.lane.b32.xlu1 %v3616_v31, %s3421_s4  ;;  %2536 = vrot.lane.b32.xlu0 %v3610_v28, %s3421_s4 }
 0x1a6   : > { %v1716_v20 = vmul.f32 %v1714_v11, %v1695_v21  ;;  %v1727_v38 = vrot.slane %v1720_v52, %v3772_v12  ;;  %v1741_v54 = vpop.permute.xlu1 %1740  ;;  %v1739_v62 = vpop.permute.xlu0 %1738  ;;  %v1866_v11 = vld [vmem:[#allocation2 + $0x35] ss:$8 sm:$0x3] }
 0x1a7   : > { %v1743_v26 = vsel %vm1742_vm11, %v1739_v62, %v1741_v54  ;;  %v1744_v63 = vsel %vm1742_vm11, %v1741_v54, %v1739_v62 }
 0x1a8   : > { %v1717_v17 = vadd.f32 %v1716_v20, %v1680_v10  ;;  %v1734_v18 = vrot.slane %v1727_v38, %v3772_v12  ;;  %v1757_v32 = vcombine.low %v1743_v26, %v1744_v63  ;;  %2545 = vrot.lane.b32.xlu1 %v3606_v25, %s3421_s4  ;;  %2543 = vrot.lane.b32.xlu0 %v3602_v23, %s3421_s4 }
 0x1aa   : > { %v1736_v36 = vmul.f32 %v1734_v18, %v1697_v57  ;;  %v1764_v60 = vrot.slane %v1757_v32, %v3772_v12  ;;  %v1748_v61 = vpop.permute.xlu1 %1747  ;;  %v1746_v0 = vpop.permute.xlu0 %1745  ;;  %v1868_v18 = vld [vmem:[#allocation2 + $0x96] ss:$8 sm:$0x3] }
 0x1ab   : > { %v1749_v3 = vsel %vm1742_vm11, %v1746_v0, %v1748_v61  ;;  %v1750_v46 = vsel %vm1742_vm11, %v1748_v61, %v1746_v0  ;;  %vm2654_vm11 = vcmp.lt.s32.totalorder %v3744_v59, 82 }
 0x1ac   : > { %v1737_v47 = vadd.f32 %v1736_v36, %v1717_v17  ;;  %v1771_v9 = vrot.slane %v1764_v60, %v3772_v12  ;;  %v1777_v13 = vcombine.low %v1749_v3, %v1750_v46  ;;  %2595 = vrot.lane.b32.xlu1 %v3616_v31, %s3422_s5  ;;  %2593 = vrot.lane.b32.xlu0 %v3610_v28, %s3422_s5 }
 0x1ae   : > { %v1773_v44 = vmul.f32 %v1771_v9, %v1752_v1  ;;  %v1784_v40 = vrot.slane %v1777_v13, %v3772_v12  ;;  %v1798_v43 = vpop.permute.xlu1 %1797  ;;  %v1796_v58 = vpop.permute.xlu0 %1795  ;;  %v1923_v9 = vld [vmem:[#allocation2 + $0x36] ss:$8 sm:$0x3] }
 0x1af   : > { %v1800_v56 = vsel %vm1799_vm12, %v1796_v58, %v1798_v43  ;;  %v1801_v48 = vsel %vm1799_vm12, %v1798_v43, %v1796_v58 }
 0x1b0   : > { %v1774_v49 = vadd.f32 %v1773_v44, %v1737_v47  ;;  %v1791_v14 = vrot.slane %v1784_v40, %v3772_v12  ;;  %v1814_v5 = vcombine.low %v1800_v56, %v1801_v48  ;;  %2602 = vrot.lane.b32.xlu1 %v3606_v25, %s3422_s5  ;;  %2600 = vrot.lane.b32.xlu0 %v3602_v23, %s3422_s5 }
 0x1b2   : > { %v1793_v35 = vmul.f32 %v1791_v14, %v1754_v55  ;;  %v1821_v27 = vrot.slane %v1814_v5, %v3772_v12  ;;  %v1805_v6 = vpop.permute.xlu1 %1804  ;;  %v1803_v34 = vpop.permute.xlu0 %1802  ;;  %v1925_v14 = vld [vmem:[#allocation2 + $0x97] ss:$8 sm:$0x3] }
 0x1b3   : > { %v1806_v41 = vsel %vm1799_vm12, %v1803_v34, %v1805_v6  ;;  %v1807_v39 = vsel %vm1799_vm12, %v1805_v6, %v1803_v34  ;;  %vm2711_vm12 = vcmp.lt.s32.totalorder %v3744_v59, 81 }
 0x1b4   : > { %v1794_v15 = vadd.f32 %v1793_v35, %v1774_v49  ;;  %v1828_v50 = vrot.slane %v1821_v27, %v3772_v12  ;;  %v1834_v51 = vcombine.low %v1806_v41, %v1807_v39  ;;  %2652 = vrot.lane.b32.xlu1 %v3616_v31, %s3423_s6  ;;  %2650 = vrot.lane.b32.xlu0 %v3610_v28, %s3423_s6 }
 0x1b6   : > { %v1830_v19 = vmul.f32 %v1828_v50, %v1809_v16  ;;  %v1841_v45 = vrot.slane %v1834_v51, %v3772_v12  ;;  %v1855_v24 = vpop.permute.xlu1 %1854  ;;  %v1853_v22 = vpop.permute.xlu0 %1852  ;;  %v1980_v50 = vld [vmem:[#allocation2 + $0x37] ss:$8 sm:$0x3] }
 0x1b7   : > { %v1857_v7 = vsel %vm1856_vm13, %v1853_v22, %v1855_v24  ;;  %v1858_v33 = vsel %vm1856_vm13, %v1855_v24, %v1853_v22 }
 0x1b8   : > { %v1831_v42 = vadd.f32 %v1830_v19, %v1794_v15  ;;  %v1848_v8 = vrot.slane %v1841_v45, %v3772_v12  ;;  %v1871_v30 = vcombine.low %v1857_v7, %v1858_v33  ;;  %2659 = vrot.lane.b32.xlu1 %v3606_v25, %s3423_s6  ;;  %2657 = vrot.lane.b32.xlu0 %v3602_v23, %s3423_s6 }
 0x1ba   : > { %v1850_v21 = vmul.f32 %v1848_v8, %v1811_v29  ;;  %v1878_v53 = vrot.slane %v1871_v30, %v3772_v12  ;;  %v1862_v37 = vpop.permute.xlu1 %1861  ;;  %v1860_v10 = vpop.permute.xlu0 %1859  ;;  %v1982_v8 = vld [vmem:[#allocation2 + $0xa0] ss:$8 sm:$0x3] }
 0x1bb   : > { %v1863_v52 = vsel %vm1856_vm13, %v1860_v10, %v1862_v37  ;;  %v1864_v20 = vsel %vm1856_vm13, %v1862_v37, %v1860_v10  ;;  %vm2768_vm13 = vcmp.lt.s32.totalorder %v3744_v59, 80 }
 0x1bc   : > { %v1851_v38 = vadd.f32 %v1850_v21, %v1831_v42  ;;  %v1885_v54 = vrot.slane %v1878_v53, %v3772_v12  ;;  %v1891_v62 = vcombine.low %v1863_v52, %v1864_v20  ;;  %2709 = vrot.lane.b32.xlu1 %v3616_v31, %s3424_s7  ;;  %2707 = vrot.lane.b32.xlu0 %v3610_v28, %s3424_s7 }
 0x1be   : > { %v1887_v57 = vmul.f32 %v1885_v54, %v1866_v11  ;;  %v1898_v26 = vrot.slane %v1891_v62, %v3772_v12  ;;  %v1912_v63 = vpop.permute.xlu1 %1911  ;;  %v1910_v17 = vpop.permute.xlu0 %1909  ;;  %v2037_v54 = vld [vmem:[#allocation2 + $0x40] ss:$8 sm:$0x3] }
 0x1bf   : > { %v1914_v32 = vsel %vm1913_vm14, %v1910_v17, %v1912_v63  ;;  %v1915_v36 = vsel %vm1913_vm14, %v1912_v63, %v1910_v17 }
 0x1c0   : > { %v1888_v60 = vadd.f32 %v1887_v57, %v1851_v38  ;;  %v1905_v61 = vrot.slane %v1898_v26, %v3772_v12  ;;  %v1928_v0 = vcombine.low %v1914_v32, %v1915_v36  ;;  %2716 = vrot.lane.b32.xlu1 %v3606_v25, %s3424_s7  ;;  %2714 = vrot.lane.b32.xlu0 %v3602_v23, %s3424_s7 }
 0x1c2   : > { %v1907_v1 = vmul.f32 %v1905_v61, %v1868_v18  ;;  %v1935_v3 = vrot.slane %v1928_v0, %v3772_v12  ;;  %v1919_v46 = vpop.permute.xlu1 %1918  ;;  %v1917_v47 = vpop.permute.xlu0 %1916  ;;  %v2039_v61 = vld [vmem:[#allocation2 + $0xa1] ss:$8 sm:$0x3] }
 0x1c3   : > { %v1920_v13 = vsel %vm1913_vm14, %v1917_v47, %v1919_v46  ;;  %v1921_v44 = vsel %vm1913_vm14, %v1919_v46, %v1917_v47  ;;  %vm2825_vm14 = vcmp.lt.s32.totalorder %v3744_v59, 79 }
 0x1c4   : > { %v1908_v40 = vadd.f32 %v1907_v1, %v1888_v60  ;;  %v1942_v43 = vrot.slane %v1935_v3, %v3772_v12  ;;  %v1948_v58 = vcombine.low %v1920_v13, %v1921_v44  ;;  %2766 = vrot.lane.b32.xlu1 %v3616_v31, %s3425_s18  ;;  %2764 = vrot.lane.b32.xlu0 %v3610_v28, %s3425_s18 }
 0x1c6   : > { %v1944_v55 = vmul.f32 %v1942_v43, %v1923_v9  ;;  %v1955_v56 = vrot.slane %v1948_v58, %v3772_v12  ;;  %v1969_v48 = vpop.permute.xlu1 %1968  ;;  %v1967_v49 = vpop.permute.xlu0 %1966 }
 0x1c7   : > { %v1971_v5 = vsel %vm1970_vm15, %v1967_v49, %v1969_v48  ;;  %v1972_v35 = vsel %vm1970_vm15, %v1969_v48, %v1967_v49 }
 0x1c8   : > { %v1945_v27 = vadd.f32 %v1944_v55, %v1908_v40  ;;  %v1962_v6 = vrot.slane %v1955_v56, %v3772_v12  ;;  %v1985_v34 = vcombine.low %v1971_v5, %v1972_v35  ;;  %2773 = vrot.lane.b32.xlu1 %v3606_v25, %s3425_s18  ;;  %2771 = vrot.lane.b32.xlu0 %v3602_v23, %s3425_s18 }
 0x1ca   : > { %v1964_v16 = vmul.f32 %v1962_v6, %v1925_v14  ;;  %v1992_v41 = vrot.slane %v1985_v34, %v3772_v12  ;;  %v1976_v39 = vpop.permute.xlu1 %1975  ;;  %v1974_v15 = vpop.permute.xlu0 %1973 }
 0x1cb   : > { %v1977_v51 = vsel %vm1970_vm15, %v1974_v15, %v1976_v39  ;;  %v1978_v19 = vsel %vm1970_vm15, %v1976_v39, %v1974_v15  ;;  %vm2882_vm15 = vcmp.lt.s32.totalorder %v3744_v59, 78 }
 0x1cc   : > { %v1965_v45 = vadd.f32 %v1964_v16, %v1945_v27  ;;  %v1999_v24 = vrot.slane %v1992_v41, %v3772_v12  ;;  %v2005_v22 = vcombine.low %v1977_v51, %v1978_v19  ;;  %2823 = vrot.lane.b32.xlu1 %v3616_v31, %s3426_s24  ;;  %2821 = vrot.lane.b32.xlu0 %v3610_v28, %s3426_s24 }
 0x1ce   : > { %v2001_v29 = vmul.f32 %v1999_v24, %v1980_v50  ;;  %v2012_v7 = vrot.slane %v2005_v22, %v3772_v12  ;;  %v2026_v33 = vpop.permute.xlu1 %2025  ;;  %v2024_v42 = vpop.permute.xlu0 %2023 }
 0x1cf   : > { %v2028_v30 = vsel %vm2027_vm0, %v2024_v42, %v2026_v33  ;;  %v2029_v21 = vsel %vm2027_vm0, %v2026_v33, %v2024_v42 }
 0x1d0   : > { %v2002_v53 = vadd.f32 %v2001_v29, %v1965_v45  ;;  %v2019_v37 = vrot.slane %v2012_v7, %v3772_v12  ;;  %v2042_v10 = vcombine.low %v2028_v30, %v2029_v21  ;;  %2830 = vrot.lane.b32.xlu1 %v3606_v25, %s3426_s24  ;;  %2828 = vrot.lane.b32.xlu0 %v3602_v23, %s3426_s24 }
 0x1d2   : > { %v2021_v11 = vmul.f32 %v2019_v37, %v1982_v8  ;;  %v2049_v52 = vrot.slane %v2042_v10, %v3772_v12  ;;  %v2033_v20 = vpop.permute.xlu1 %2032  ;;  %v2031_v38 = vpop.permute.xlu0 %2030 }
 0x1d3   : > { %v2034_v62 = vsel %vm2027_vm0, %v2031_v38, %v2033_v20  ;;  %v2035_v57 = vsel %vm2027_vm0, %v2033_v20, %v2031_v38  ;;  %vm2939_vm0 = vcmp.lt.s32.totalorder %v3744_v59, 77 }
 0x1d4   : > { %v2022_v26 = vadd.f32 %v2021_v11, %v2002_v53  ;;  %v2056_v63 = vrot.slane %v2049_v52, %v3772_v12  ;;  %v2062_v17 = vcombine.low %v2034_v62, %v2035_v57  ;;  %2880 = vrot.lane.b32.xlu1 %v3616_v31, %s3427_s25  ;;  %2878 = vrot.lane.b32.xlu0 %v3610_v28, %s3427_s25  ;;  %v2094_v57 = vld [vmem:[#allocation2 + $0x41] ss:$8 sm:$0x3] }
 0x1d6   : > { %v2058_v18 = vmul.f32 %v2056_v63, %v2037_v54  ;;  %v2069_v32 = vrot.slane %v2062_v17, %v3772_v12  ;;  %v2083_v36 = vpop.permute.xlu1 %2082  ;;  %v2081_v60 = vpop.permute.xlu0 %2080 }
 0x1d7   : > { %v2085_v41 = vsel %vm2084_vm1, %v2081_v60, %v2083_v36  ;;  %v2086_v39 = vsel %vm2084_vm1, %v2083_v36, %v2081_v60  ;;  %v2096_v36 = vld [vmem:[#allocation2 + $0xa2] ss:$8 sm:$0x3] }
 0x1d8   : > { %v2059_v0 = vadd.f32 %v2058_v18, %v2022_v26  ;;  %v2076_v1 = vrot.slane %v2069_v32, %v3772_v12  ;;  %2887 = vrot.lane.b32.xlu1 %v3606_v25, %s3427_s25  ;;  %2885 = vrot.lane.b32.xlu0 %v3602_v23, %s3427_s25  ;;  %v2099_v45 = vcombine.low %v2085_v41, %v2086_v39 }
 0x1da   : > { %v2078_v3 = vmul.f32 %v2076_v1, %v2039_v61  ;;  %v2090_v46 = vpop.permute.xlu1 %2089  ;;  %v2088_v47 = vpop.permute.xlu0 %2087  ;;  %v2106_v42 = vrot.slane %v2099_v45, %v3772_v12 }
 0x1db   : > { %v2091_v51 = vsel %vm2084_vm1, %v2088_v47, %v2090_v46  ;;  %v2092_v19 = vsel %vm2084_vm1, %v2090_v46, %v2088_v47 }
 0x1dc   : > { %v4489_v9 = vadd.f32 %v2078_v3, %v2059_v0  ;;  %2937 = vrot.lane.b32.xlu1 %v3616_v31, %s3428_s19  ;;  %2935 = vrot.lane.b32.xlu0 %v3610_v28, %s3428_s19  ;;  %v2119_v24 = vcombine.low %v2091_v51, %v2092_v19  ;;  %v2113_v38 = vrot.slane %v2106_v42, %v3772_v12 }
 0x1de   : > { %v2140_v13 = vpop.permute.xlu1 %2139  ;;  %v2138_v44 = vpop.permute.xlu0 %2137  ;;  %v2126_v53 = vrot.slane %v2119_v24, %v3772_v12  ;;  %v2115_v3 = vmul.f32 %v2113_v38, %v2094_v57 }
 0x1df   : > { %v2142_v22 = vsel %vm2141_vm2, %v2138_v44, %v2140_v13  ;;  %v2143_v29 = vsel %vm2141_vm2, %v2140_v13, %v2138_v44 }
 0x1e0   : > { %2944 = vrot.lane.b32.xlu1 %v3606_v25, %s3428_s19  ;;  %2942 = vrot.lane.b32.xlu0 %v3602_v23, %s3428_s19  ;;  %v2156_v21 = vcombine.low %v2142_v22, %v2143_v29  ;;  %v2133_v17 = vrot.slane %v2126_v53, %v3772_v12 }
 0x1e2   : > { %v2147_v40 = vpop.permute.xlu1 %2146  ;;  %v2145_v43 = vpop.permute.xlu0 %2144  ;;  %v2163_v26 = vrot.slane %v2156_v21, %v3772_v12  ;;  %v2210_v21 = vld [vmem:[#allocation2 + $0xa4] ss:$8 sm:$0x3] }
 0x1e3   : > { %v2148_v8 = vsel %vm2141_vm2, %v2145_v43, %v2147_v40  ;;  %v2149_v30 = vsel %vm2141_vm2, %v2147_v40, %v2145_v43  ;;  %v2135_v40 = vmul.f32 %v2133_v17, %v2096_v36  ;;  %v2151_v43 = vld [vmem:[#allocation2 + $0x42] ss:$8 sm:$0x3]  ;;  %v2265_v17 = vld [vmem:[#allocation2 + $0x44] ss:$8 sm:$0x3] }
 0x1e4   : > { %v2176_v20 = vcombine.low %v2148_v8, %v2149_v30  ;;  %v2170_v46 = vrot.slane %v2163_v26, %v3772_v12 }
 0x1e6   : > { %v2197_v58 = vpop.permute.xlu1 %2196  ;;  %v2195_v55 = vpop.permute.xlu0 %2194  ;;  %v2183_v60 = vrot.slane %v2176_v20, %v3772_v12  ;;  %v2172_v51 = vmul.f32 %v2170_v46, %v2151_v43 }
 0x1e7   : > { %v2199_v37 = vsel %vm2198_vm3, %v2195_v55, %v2197_v58  ;;  %v2200_v10 = vsel %vm2198_vm3, %v2197_v58, %v2195_v55 }
 0x1e8   : > { %v2213_v63 = vcombine.low %v2199_v37, %v2200_v10 }
 0x1ea   : > { %v2204_v56 = vpop.permute.xlu1 %2203  ;;  %v2202_v48 = vpop.permute.xlu0 %2201  ;;  %v2220_v47 = vrot.slane %v2213_v63, %v3772_v12 }
 0x1eb   : > { %v2205_v54 = vsel %vm2198_vm3, %v2202_v48, %v2204_v56  ;;  %v2206_v62 = vsel %vm2198_vm3, %v2204_v56, %v2202_v48  ;;  %v2190_v48 = vrot.slane %v2183_v60, %v3772_v12 }
 0x1ec   : > { %v2233_v61 = vcombine.low %v2205_v54, %v2206_v62  ;;  %v2227_v19 = vrot.slane %v2220_v47, %v3772_v12 }
 0x1ee   : > { %v2254_v49 = vpop.permute.xlu1 %2253  ;;  %v2252_v14 = vpop.permute.xlu0 %2251 }
 0x1ef   : > { %v2256_v0 = vsel %vm2255_vm4, %v2252_v14, %v2254_v49  ;;  %v2257_v1 = vsel %vm2255_vm4, %v2254_v49, %v2252_v14  ;;  %v2240_v49 = vrot.slane %v2233_v61, %v3772_v12 }
 0x1f0   : > { %v2270_v58 = vcombine.low %v2256_v0, %v2257_v1  ;;  %v2267_v1 = vld [vmem:[#allocation2 + $0xa5] ss:$8 sm:$0x3] }
 0x1f1   : > { %v2247_v30 = vrot.slane %v2240_v49, %v3772_v12 }
 0x1f2   : > { %v2261_v5 = vpop.permute.xlu1 %2260  ;;  %v2259_v35 = vpop.permute.xlu0 %2258 }
 0x1f3   : > { %v2262_v13 = vsel %vm2255_vm4, %v2259_v35, %v2261_v5  ;;  %v2263_v44 = vsel %vm2255_vm4, %v2261_v5, %v2259_v35  ;;  %v2116_v5 = vadd.f32 %v2115_v3, %v4489_v9  ;;  %v2153_v35 = vld [vmem:[#allocation2 + $0xa3] ss:$8 sm:$0x3]  ;;  %v2277_v9 = vrot.slane %v2270_v58, %v3772_v12 }
 0x1f4   : > { %v2290_v39 = vcombine.low %v2262_v13, %v2263_v44  ;;  %v2192_v8 = vmul.f32 %v2190_v48, %v2153_v35  ;;  %v2249_v63 = vmul.f32 %v2247_v30, %v2210_v21 }
 0x1f5   : > { %v2136_v42 = vadd.f32 %v2135_v40, %v2116_v5  ;;  %v2284_v38 = vrot.slane %v2277_v9, %v3772_v12 }
 0x1f6   : > { %v4495_v27 = vpop.permute.xlu1 %2310  ;;  %v2309_v31 = vpop.permute.xlu0 %2308  ;;  %v2297_v53 = vrot.slane %v2290_v39, %v3772_v12 }
 0x1f7   : > { %v2313_v14 = vsel %vm2312_vm5, %v2309_v31, %v4495_v27  ;;  %v2314_v41 = vsel %vm2312_vm5, %v4495_v27, %v2309_v31  ;;  %v2208_v27 = vld [vmem:[#allocation2 + $0x43] ss:$8 sm:$0x3]  ;;  %v2173_v10 = vadd.f32 %v2172_v51, %v2136_v42  ;;  %v2286_v46 = vmul.f32 %v2284_v38, %v2265_v17  ;;  %v2379_v42 = vld [vmem:[#allocation2 + $0x46] ss:$8 sm:$0x3] }
 0x1f8   : > { %v2327_v31 = vcombine.low %v2313_v14, %v2314_v41  ;;  %v2229_v20 = vmul.f32 %v2227_v19, %v2208_v27  ;;  %v2304_v60 = vrot.slane %v2297_v53, %v3772_v12  ;;  %v2324_v41 = vld [vmem:[#allocation2 + $0xa6] ss:$8 sm:$0x3] }
 0x1fa   : > { %v4497_v28 = vpop.permute.xlu1 %2317  ;;  %v4499_v6 = vpop.permute.xlu0 %2315  ;;  %v2334_v54 = vrot.slane %v2327_v31, %v3772_v12  ;;  %v2306_v49 = vmul.f32 %v2304_v60, %v2267_v1 }
 0x1fb   : > { %v2319_v45 = vsel %vm2312_vm5, %v4499_v6, %v4497_v28  ;;  %v2320_v24 = vsel %vm2312_vm5, %v4497_v28, %v4499_v6 }
 0x1fc   : > { %v2347_v37 = vcombine.low %v2319_v45, %v2320_v24  ;;  %v2341_v47 = vrot.slane %v2334_v54, %v3772_v12 }
 0x1fe   : > { %v4501_v25 = vpop.permute.xlu1 %2367  ;;  %v4503_v23 = vpop.permute.xlu0 %2365  ;;  %v2354_v61 = vrot.slane %v2347_v37, %v3772_v12 }
 0x1ff   : > { %v2370_v28 = vsel %vm2369_vm6, %v4503_v23, %v4501_v25  ;;  %v2371_v6 = vsel %vm2369_vm6, %v4501_v25, %v4503_v23  ;;  %v2193_v23 = vadd.f32 %v2192_v8, %v2173_v10 }
 0x200   : > { %v2384_v36 = vcombine.low %v2370_v28, %v2371_v6  ;;  %v2361_v14 = vrot.slane %v2354_v61, %v3772_v12 }
 0x202   : > { %v4506_v34 = vpop.permute.xlu1 %2374  ;;  %v4508_v16 = vpop.permute.xlu0 %2372  ;;  %v2391_v43 = vrot.slane %v2384_v36, %v3772_v12  ;;  %v2363_v31 = vmul.f32 %v2361_v14, %v2324_v41  ;;  %v2438_v36 = vld [vmem:[#allocation2 + $0xb0] ss:$8 sm:$0x3] }
 0x203   : > { %v2376_v62 = vsel %vm2369_vm6, %v4508_v16, %v4506_v34  ;;  %v2377_v57 = vsel %vm2369_vm6, %v4506_v34, %v4508_v16  ;;  %v2230_v16 = vadd.f32 %v2229_v20, %v2193_v23 }
 0x204   : > { %v2404_v3 = vcombine.low %v2376_v62, %v2377_v57  ;;  %v2398_v24 = vrot.slane %v2391_v43, %v3772_v12  ;;  %v2493_v43 = vld [vmem:[#allocation2 + $0x50] ss:$8 sm:$0x3] }
 0x205   : > { %v2250_v48 = vadd.f32 %v2249_v63, %v2230_v16 }
 0x206   : > { %v4510_v15 = vpop.permute.xlu1 %2424  ;;  %v4512_v50 = vpop.permute.xlu0 %2422  ;;  %v2411_v5 = vrot.slane %v2404_v3, %v3772_v12  ;;  %v2400_v20 = vmul.f32 %v2398_v24, %v2379_v42 }
 0x207   : > { %v2427_v0 = vsel %vm2426_vm7, %v4512_v50, %v4510_v15  ;;  %v2428_v34 = vsel %vm2426_vm7, %v4510_v15, %v4512_v50  ;;  %v2322_v50 = vld [vmem:[#allocation2 + $0x45] ss:$8 sm:$0x3] }
 0x208   : > { %v2441_v58 = vcombine.low %v2427_v0, %v2428_v34  ;;  %v2343_v51 = vmul.f32 %v2341_v47, %v2322_v50  ;;  %v2418_v30 = vrot.slane %v2411_v5, %v3772_v12 }
 0x20a   : > { %v4515_v7 = vpop.permute.xlu1 %2431  ;;  %v4517_v33 = vpop.permute.xlu0 %2429  ;;  %v2448_v27 = vrot.slane %v2441_v58, %v3772_v12 }
 0x20b   : > { %v2433_v13 = vsel %vm2426_vm7, %v4517_v33, %v4515_v7  ;;  %v2434_v44 = vsel %vm2426_vm7, %v4515_v7, %v4517_v33  ;;  %v2287_v33 = vadd.f32 %v2286_v46, %v2250_v48 }
 0x20c   : > { %v2461_v35 = vcombine.low %v2433_v13, %v2434_v44  ;;  %v2455_v38 = vrot.slane %v2448_v27, %v3772_v12 }
 0x20e   : > { %v4522_v11 = vpop.permute.xlu1 %2481  ;;  %v4524_v52 = vpop.permute.xlu0 %2479  ;;  %v2468_v21 = vrot.slane %v2461_v35, %v3772_v12  ;;  %v2495_v35 = vld [vmem:[#allocation2 + $0xb1] ss:$8 sm:$0x3] }
 0x20f   : > { %v2484_v39 = vsel %vm2483_vm8, %v4524_v52, %v4522_v11  ;;  %v2485_v7 = vsel %vm2483_vm8, %v4522_v11, %v4524_v52  ;;  %v2307_v52 = vadd.f32 %v2306_v49, %v2287_v33 }
 0x210   : > { %v2498_v8 = vcombine.low %v2484_v39, %v2485_v7  ;;  %v2475_v17 = vrot.slane %v2468_v21, %v3772_v12 }
 0x211   : > { %v2344_v28 = vadd.f32 %v2343_v51, %v2307_v52  ;;  %v2550_v51 = vld [vmem:[#allocation2 + $0x51] ss:$8 sm:$0x3] }
 0x212   : > { %v4530_v18 = vpop.permute.xlu1 %2488  ;;  %v4532_v32 = vpop.permute.xlu0 %2486  ;;  %v2505_v62 = vrot.slane %v2498_v8, %v3772_v12  ;;  %v2477_v50 = vmul.f32 %v2475_v17, %v2438_v36  ;;  %v2609_v36 = vld [vmem:[#allocation2 + $0xb3] ss:$8 sm:$0x3] }
 0x213   : > { %v2490_v9 = vsel %vm2483_vm8, %v4532_v32, %v4530_v18  ;;  %v2491_v11 = vsel %vm2483_vm8, %v4530_v18, %v4532_v32  ;;  %v2381_v18 = vld [vmem:[#allocation2 + $0xa7] ss:$8 sm:$0x3]  ;;  %v2364_v23 = vadd.f32 %v2363_v31, %v2344_v28  ;;  %v2552_v31 = vld [vmem:[#allocation2 + $0xb2] ss:$8 sm:$0x3] }
 0x214   : > { %v2518_v32 = vcombine.low %v2490_v9, %v2491_v11  ;;  %v2420_v63 = vmul.f32 %v2418_v30, %v2381_v18  ;;  %v2512_v3 = vrot.slane %v2505_v62, %v3772_v12 }
 0x215   : > { %v2401_v16 = vadd.f32 %v2400_v20, %v2364_v23 }
 0x216   : > { %v4546_v55 = vpop.permute.xlu1 %2538  ;;  %v4548_v56 = vpop.permute.xlu0 %2536  ;;  %v2525_v60 = vrot.slane %v2518_v32, %v3772_v12 }
 0x217   : > { %v2541_v53 = vsel %vm2540_vm9, %v4548_v56, %v4546_v55  ;;  %v2542_v37 = vsel %vm2540_vm9, %v4546_v55, %v4548_v56  ;;  %v2436_v56 = vld [vmem:[#allocation2 + $0x47] ss:$8 sm:$0x3]  ;;  %v2421_v44 = vadd.f32 %v2420_v63, %v2401_v16  ;;  %v2664_v16 = vld [vmem:[#allocation2 + $0x53] ss:$8 sm:$0x3] }
 0x218   : > { %v2555_v57 = vcombine.low %v2541_v53, %v2542_v37  ;;  %v2457_v1 = vmul.f32 %v2455_v38, %v2436_v56  ;;  %v2607_v38 = vld [vmem:[#allocation2 + $0x52] ss:$8 sm:$0x3] }
 0x21a   : > { %v4570_v22 = vpop.permute.xlu1 %2545  ;;  %v4572_v29 = vpop.permute.xlu0 %2543  ;;  %v2562_v46 = vrot.slane %v2555_v57, %v3772_v12  ;;  %v2458_v5 = vadd.f32 %v2457_v1, %v2421_v44 }
 0x21b   : > { %v2547_v54 = vsel %vm2540_vm9, %v4572_v29, %v4570_v22  ;;  %v2548_v55 = vsel %vm2540_vm9, %v4570_v22, %v4572_v29 }
 0x21c   : > { %v2575_v61 = vcombine.low %v2547_v54, %v2548_v55 }
 0x21e   : > { %v4595_v26 = vpop.permute.xlu1 %2595  ;;  %v4597_v25 = vpop.permute.xlu0 %2593  ;;  %v2582_v58 = vrot.slane %v2575_v61, %v3772_v12 }
 0x21f   : > { %v2598_v0 = vsel %vm2597_vm10, %v4597_v25, %v4595_v26  ;;  %v2599_v22 = vsel %vm2597_vm10, %v4595_v26, %v4597_v25  ;;  %v2532_v25 = vrot.slane %v2525_v60, %v3772_v12 }
 0x220   : > { %v2612_v26 = vcombine.low %v2598_v0, %v2599_v22  ;;  %v2589_v9 = vrot.slane %v2582_v58, %v3772_v12 }
 0x221   : > { %v2534_v27 = vmul.f32 %v2532_v25, %v2495_v35 }
 0x222   : > { %v2603_v40 = vpop.permute.xlu1 %2602  ;;  %v2601_v15 = vpop.permute.xlu0 %2600  ;;  %v2619_v24 = vrot.slane %v2612_v26, %v3772_v12  ;;  %v2591_v20 = vmul.f32 %v2589_v9, %v2552_v31  ;;  %v2666_v26 = vld [vmem:[#allocation2 + $0xb4] ss:$8 sm:$0x3]  ;;  %v2723_v9 = vld [vmem:[#allocation2 + $0xb5] ss:$8 sm:$0x3] }
 0x223   : > { %v2604_v47 = vsel %vm2597_vm10, %v2601_v15, %v2603_v40  ;;  %v2605_v13 = vsel %vm2597_vm10, %v2603_v40, %v2601_v15  ;;  %v2514_v40 = vmul.f32 %v2512_v3, %v2493_v43  ;;  %v2569_v15 = vrot.slane %v2562_v46, %v3772_v12 }
 0x224   : > { %v2632_v39 = vcombine.low %v2604_v47, %v2605_v13  ;;  %v2626_v28 = vrot.slane %v2619_v24, %v3772_v12 }
 0x225   : > { %v2571_v37 = vmul.f32 %v2569_v15, %v2550_v51 }
 0x226   : > { %v2653_v19 = vpop.permute.xlu1 %2652  ;;  %v2651_v45 = vpop.permute.xlu0 %2650  ;;  %v2639_v42 = vrot.slane %v2632_v39, %v3772_v12  ;;  %v2628_v61 = vmul.f32 %v2626_v28, %v2607_v38 }
 0x227   : > { %v2655_v48 = vsel %vm2654_vm11, %v2651_v45, %v2653_v19  ;;  %v2656_v49 = vsel %vm2654_vm11, %v2653_v19, %v2651_v45  ;;  %v2478_v45 = vadd.f32 %v2477_v50, %v2458_v5 }
 0x228   : > { %v2669_v19 = vcombine.low %v2655_v48, %v2656_v49  ;;  %v2646_v62 = vrot.slane %v2639_v42, %v3772_v12 }
 0x229   : > { %v2515_v53 = vadd.f32 %v2514_v40, %v2478_v45 }
 0x22a   : > { %v2660_v6 = vpop.permute.xlu1 %2659  ;;  %v2658_v10 = vpop.permute.xlu0 %2657  ;;  %v2676_v18 = vrot.slane %v2669_v19, %v3772_v12  ;;  %v2648_v13 = vmul.f32 %v2646_v62, %v2609_v36 }
 0x22b   : > { %v2661_v7 = vsel %vm2654_vm11, %v2658_v10, %v2660_v6  ;;  %v2662_v33 = vsel %vm2654_vm11, %v2660_v6, %v2658_v10  ;;  %v2535_v10 = vadd.f32 %v2534_v27, %v2515_v53 }
 0x22c   : > { %v2689_v8 = vcombine.low %v2661_v7, %v2662_v33  ;;  %v2683_v0 = vrot.slane %v2676_v18, %v3772_v12  ;;  %v2721_v7 = vld [vmem:[#allocation2 + $0x54] ss:$8 sm:$0x3] }
 0x22d   : > { %v2572_v17 = vadd.f32 %v2571_v37, %v2535_v10  ;;  %v2780_v10 = vld [vmem:[#allocation2 + $0xb6] ss:$8 sm:$0x3] }
 0x22e   : > { %v2710_v29 = vpop.permute.xlu1 %2709  ;;  %v2708_v34 = vpop.permute.xlu0 %2707  ;;  %v2696_v57 = vrot.slane %v2689_v8, %v3772_v12  ;;  %v2685_v49 = vmul.f32 %v2683_v0, %v2664_v16  ;;  %v2837_v0 = vld [vmem:[#allocation2 + $0xb7] ss:$8 sm:$0x3] }
 0x22f   : > { %v2712_v30 = vsel %vm2711_vm12, %v2708_v34, %v2710_v29  ;;  %v2713_v21 = vsel %vm2711_vm12, %v2710_v29, %v2708_v34  ;;  %v2592_v34 = vadd.f32 %v2591_v20, %v2572_v17 }
 0x230   : > { %v2726_v54 = vcombine.low %v2712_v30, %v2713_v21  ;;  %v2703_v44 = vrot.slane %v2696_v57, %v3772_v12  ;;  %v2778_v21 = vld [vmem:[#allocation2 + $0x55] ss:$8 sm:$0x3]  ;;  %v2835_v57 = vld [vmem:[#allocation2 + $0x56] ss:$8 sm:$0x3] }
 0x231   : > { %v2629_v48 = vadd.f32 %v2628_v61, %v2592_v34 }
 0x232   : > { %v2717_v14 = vpop.permute.xlu1 %2716  ;;  %v2715_v41 = vpop.permute.xlu0 %2714  ;;  %v2733_v1 = vrot.slane %v2726_v54, %v3772_v12  ;;  %v2705_v15 = vmul.f32 %v2703_v44, %v2666_v26 }
 0x233   : > { %v2718_v32 = vsel %vm2711_vm12, %v2715_v41, %v2717_v14  ;;  %v2719_v6 = vsel %vm2711_vm12, %v2717_v14, %v2715_v41  ;;  %v2649_v40 = vadd.f32 %v2648_v13, %v2629_v48 }
 0x234   : > { %v2746_v60 = vcombine.low %v2718_v32, %v2719_v6  ;;  %v2740_v14 = vrot.slane %v2733_v1, %v3772_v12 }
 0x235   : > { %v2686_v27 = vadd.f32 %v2685_v49, %v2649_v40 }
 0x236   : > { %v2767_v11 = vpop.permute.xlu1 %2766  ;;  %v2765_v52 = vpop.permute.xlu0 %2764  ;;  %v2753_v25 = vrot.slane %v2746_v60, %v3772_v12 }
 0x237   : > { %v2769_v23 = vsel %vm2768_vm13, %v2765_v52, %v2767_v11  ;;  %v2770_v63 = vsel %vm2768_vm13, %v2767_v11, %v2765_v52  ;;  %v2742_v11 = vmul.f32 %v2740_v14, %v2721_v7  ;;  %v2706_v30 = vadd.f32 %v2705_v15, %v2686_v27 }
 0x238   : > { %v2783_v3 = vcombine.low %v2769_v23, %v2770_v63  ;;  %v2760_v24 = vrot.slane %v2753_v25, %v3772_v12  ;;  %v2894_v25 = vld [vmem:[#allocation2 + $0xc0] ss:$8 sm:$0x3] }
 0x239   : > { %v2743_v20 = vadd.f32 %v2742_v11, %v2706_v30  ;;  %v3001_v30 = vsub.s32 0, %v3757_v4 }
 0x23a   : > { %v2774_v55 = vpop.permute.xlu1 %2773  ;;  %v2772_v56 = vpop.permute.xlu0 %2771  ;;  %v2790_v41 = vrot.slane %v2783_v3, %v3772_v12  ;;  %v2762_v28 = vmul.f32 %v2760_v24, %v2723_v9 }
 0x23b   : > { %v2775_v22 = vsel %vm2768_vm13, %v2772_v56, %v2774_v55  ;;  %v2776_v29 = vsel %vm2768_vm13, %v2774_v55, %v2772_v56 }
 0x23c   : > { %v2803_v58 = vcombine.low %v2775_v22, %v2776_v29  ;;  %v2797_v52 = vrot.slane %v2790_v41, %v3772_v12  ;;  %v2763_v17 = vadd.f32 %v2762_v28, %v2743_v20 }
 0x23e   : > { %v2824_v46 = vpop.permute.xlu1 %2823  ;;  %v2822_v47 = vpop.permute.xlu0 %2821  ;;  %v2810_v19 = vrot.slane %v2803_v58, %v3772_v12  ;;  %v2799_v38 = vmul.f32 %v2797_v52, %v2778_v21  ;;  %v3005_v21 = vsub.s32 1, %v3757_v4 }
 0x23f   : > { %v2826_v50 = vsel %vm2825_vm14, %v2822_v47, %v2824_v46  ;;  %v2827_v43 = vsel %vm2825_vm14, %v2824_v46, %v2822_v47  ;;  %v2892_v46 = vld [vmem:[#allocation2 + $0x57] ss:$8 sm:$0x3] }
 0x240   : > { %v2840_v5 = vcombine.low %v2826_v50, %v2827_v43  ;;  %v2817_v18 = vrot.slane %v2810_v19, %v3772_v12  ;;  %v2800_v22 = vadd.f32 %v2799_v38, %v2763_v17 }
 0x242   : > { %v2831_v35 = vpop.permute.xlu1 %2830  ;;  %v2829_v39 = vpop.permute.xlu0 %2828  ;;  %v2847_v31 = vrot.slane %v2840_v5, %v3772_v12  ;;  %v2819_v36 = vmul.f32 %v2817_v18, %v2780_v10  ;;  %v2949_v5 = vld [vmem:[#allocation2 + $0x60] ss:$8 sm:$0x3] }
 0x243   : > { %v2832_v33 = vsel %vm2825_vm14, %v2829_v39, %v2831_v35  ;;  %v2833_v51 = vsel %vm2825_vm14, %v2831_v35, %v2829_v39 }
 0x244   : > { %v2860_v45 = vcombine.low %v2832_v33, %v2833_v51  ;;  %v2854_v54 = vrot.slane %v2847_v31, %v3772_v12  ;;  %v2820_v44 = vadd.f32 %v2819_v36, %v2800_v22 }
 0x246   : > { %v2881_v42 = vpop.permute.xlu1 %2880  ;;  %v2879_v8 = vpop.permute.xlu0 %2878  ;;  %v2867_v32 = vrot.slane %v2860_v45, %v3772_v12  ;;  %v2856_v29 = vmul.f32 %v2854_v54, %v2835_v57  ;;  %v2951_v45 = vld [vmem:[#allocation2 + $0xc1] ss:$8 sm:$0x3] }
 0x247   : > { %v2883_v53 = vsel %vm2882_vm15, %v2879_v8, %v2881_v42  ;;  %v2884_v37 = vsel %vm2882_vm15, %v2881_v42, %v2879_v8 }
 0x248   : > { %v2897_v6 = vcombine.low %v2883_v53, %v2884_v37  ;;  %v2874_v60 = vrot.slane %v2867_v32, %v3772_v12  ;;  %v2857_v58 = vadd.f32 %v2856_v29, %v2820_v44 }
 0x24a   : > { %v2904_v55 = vrot.slane %v2897_v6, %v3772_v12  ;;  %v2888_v56 = vpop.permute.xlu1 %2887  ;;  %v2886_v62 = vpop.permute.xlu0 %2885  ;;  %v2876_v50 = vmul.f32 %v2874_v60, %v2837_v0 }
 0x24b   : > { %v2889_v23 = vsel %vm2882_vm15, %v2886_v62, %v2888_v56  ;;  %v2890_v63 = vsel %vm2882_vm15, %v2888_v56, %v2886_v62 }
 0x24c   : > { %v2917_v61 = vcombine.low %v2889_v23, %v2890_v63  ;;  %v2911_v34 = vrot.slane %v2904_v55, %v3772_v12  ;;  %v2877_v40 = vadd.f32 %v2876_v50, %v2857_v58 }
 0x24e   : > { %v2924_v16 = vrot.slane %v2917_v61, %v3772_v12  ;;  %v2938_v1 = vpop.permute.xlu1 %2937  ;;  %v2936_v3 = vpop.permute.xlu0 %2935  ;;  %v2913_v48 = vmul.f32 %v2911_v34, %v2892_v46 }
 0x24f   : > { %v2940_v47 = vsel %vm2939_vm0, %v2936_v3, %v2938_v1  ;;  %v2941_v13 = vsel %vm2939_vm0, %v2938_v1, %v2936_v3 }
 0x250   : > { %v2931_v43 = vrot.slane %v2924_v16, %v3772_v12  ;;  %v2954_v26 = vcombine.low %v2940_v47, %v2941_v13  ;;  %v2914_v51 = vadd.f32 %v2913_v48, %v2877_v40 }
 0x252   : > { %v2961_v49 = vrot.slane %v2954_v26, %v3772_v12  ;;  %v2945_v14 = vpop.permute.xlu1 %2944  ;;  %v2943_v41 = vpop.permute.xlu0 %2942  ;;  %v2933_v15 = vmul.f32 %v2931_v43, %v2894_v25 }
 0x253   : > { %v2946_v35 = vsel %vm2939_vm0, %v2943_v41, %v2945_v14  ;;  %v2947_v39 = vsel %vm2939_vm0, %v2945_v14, %v2943_v41 }
 0x254   : > { %v2968_v7 = vrot.slane %v2961_v49, %v3772_v12  ;;  %v2974_v33 = vcombine.low %v2946_v35, %v2947_v39  ;;  %v2934_v27 = vadd.f32 %v2933_v15, %v2914_v51 }
 0x256   : > { %v2970_v24 = vmul.f32 %v2968_v7, %v2949_v5  ;;  %v2981_v19 = vrot.slane %v2974_v33, %v3772_v12 }
 0x258   : > { %v2988_v9 = vrot.slane %v2981_v19, %v3772_v12  ;;  %v2971_v11 = vadd.f32 %v2970_v24, %v2934_v27  ;;  %v3245_v12 = vld [vmem:[%s3591_s27] sm:$0xff]  ;;  %s3308_s27 = sshll.u32 %s3429_s26, 4  ;;  %s3309_s27 = int_to_ptr.vmem [resolvable:$false] %s3308_s27 }
 0x259   : > { %s3310_s3 = scalar_lea.vmem %s3309_s27, 256  ;;  %p3311_p10 = scmp.lt.s32.totalorder %s4776_s22, %s3309_s27 }
 0x25a   : > { %v2990_v52 = vmul.f32 %v2988_v9, %v2951_v45  ;;  %p3312_p13 = scmp.lt.s32.totalorder %s3310_s3, %s3304_s30 }
 0x25c   : > { %v2991_v59 = vadd.f32 %v2990_v52, %v2971_v11  ;;  %p3313_p3 = por %p3312_p13, %p3311_p10 }
 0x25e   : > { %v3124_v31 = vmul.f32 -1.442695, %v2991_v59  ;;  %p3314_p7 = pnand %p3313_p3, %p3307_p8 }
 0x260   : > { %3241 = vpow2.f32 %v3124_v31 }
 0x26a   : > { %v3242_v42 = vpop.eup %3241 }
 0x26b   : > { %v2995_v8 = vadd.f32 1.0, %v3242_v42 }
 0x26d   : > { %3243 = vrcp.f32 %v2995_v8 }
 0x277   : > { %v3244_v53 = vpop.eup %3243 }
 0x278   : > { %v3002_v37 = vrot.slane %v3244_v53, %v3001_v30  ;;  %v3006_v28 = vrot.slane %v3244_v53, %v3005_v21 }
 0x27a   : > { %v3009_v18 = vmul.f32 %v3245_v12, %v3002_v37  ;;  %v3010_v32 = vmul.f32 %v3006_v28, %v3598_v2 }
 0x27c   : > { %v3013_v6 = vcombine.low %v3009_v18, %v3010_v32 }
 0x27e   : > { %3015 = vst [vmem:[%s174_s17] sm:$0xff] %v3013_v6 }
 0x27f   : > { %3317 = shalt.err (!%p3314_p7)
}
 0x280   : > { %s3318_s20 = scalar_lea.hbm %s4774_s29, 128  ;;  %s3322_s6 = scalar_lea.hbm %s4820_s2, 256 }
 0x281   : > { %p3319_p9 = scmp.ne.s32.totalorder %s4774_s29, %s3318_s20  ;;  %p3323_p0 = scmp.lt.u32.totalorder %s4774_s29, %s4820_s2 }
 0x282   : > { %p3324_p1 = scmp.lt.u32.totalorder %s3322_s6, %s3318_s20  ;;  %p3326_p4 = scmp.lt.u32.totalorder %s3318_s20, %s4774_s29 }
 0x283   : > { %p3320_p2 = pnand %p3319_p9, %p3536_p12 }
 0x284   : > { %p3325_p11 = por %p3324_p1, %p3323_p0 }
 0x285   : > { %p3321_p5 = pneg %p3320_p2 }
 0x286   : > { %p3327_p6 = por %p3326_p4, %p3325_p11 }
 0x288   : > { %p3328_p8 = pnand %p3327_p6, %p3321_p5 }
 0x28a   : > { %3331 = shalt.err (!%p3328_p8)
}
 0x28b   : > { %3138 = dma.vmem_to_hbm [thread:$0]  (%p3536_p12), %s4776_s22, 128, %s4774_s29, %s3017_s13  }
 0x28c PF: > { %s3043_s24 = sand.u32 1, %s3362_s9   ;;  %p4835_p10 = scmp.ne.s32.totalorder %s4825_s16, 0 }
 0x28d   : > { %p4836_p13 = scmp.ge.s32.totalorder %s3374_s12, 2  ;;  %s3044_s25 = scalar_lea.sflag [#allocation4], %s3043_s24 }
 0x28f   : > { %p3149_p3 = pnand %p4836_p13, %p4835_p10 }
 0x291   : > { %3357 = dma.done.wait (!%p3149_p3), %s3044_s25, 128  }
 0x292   : > { %3359 = vsyncadd (!%p3149_p3), %s3044_s25, 4294967168  ;;  %p16_p7 = scmp.ge.s32.totalorder %s3501_s21, 4   ;;  %s4837_s9 = smov %s3366_s10 }
 0x293   : > { %s4838_s10 = smov %s3370_s11  ;;  %s4839_s11 = smov %s3532_s8 }
 0x294   : > { %s4840_s12 = smov %s3501_s21  ;;  %18 = sbr.rel (!%p16_p7) target bundleno = 6 (0x6), region = 175 }
 0x29b   :  { %3049 = vsyncpa [#allocation3], 1 }
 0x29c   :  { %3051 = vsyncpa [#allocation3 + $0x1], 1 }
 0x29d   :  { %3052 = vsyncpa [#allocation6], 1 }
 0x29e   :  { %3054 = vsyncpa [#allocation6 + $0x1], 1 }
 0x29f   :  { %3055 = vsyncpa [#allocation4], 1 }
 0x2a0   :  { %3057 = vsyncpa [#allocation4 + $0x1], 1 }

</bundles_post_ra>
